<compile_context>
chip_gen: v6e
topology: v6e:2x2x1
jax: 0.10.0
libtpu: 0.0.40
codegen_flags: <defaults>
</compile_context>

<pallas_src>
import functools

import jax
import jax.numpy as jnp
from jax.experimental import pallas as pl
from jax.experimental.pallas import tpu as pltpu


def _round_up(x, m):
    return (x + m - 1) // m * m


def _choose_batch_block(bs):
    """Pick the per-grid-step batch block [R1/R2].

    - tiny batches: a single 8-sublane block (nothing to shard, grid=(1,)).
    - larger batches: >=2 grid blocks so v7x's second TensorCore gets work via
      dimension_semantics=("parallel",), each block capped at 256 rows so a
      single block still fills the MXU sublane dimension.
    """
    bs8 = _round_up(bs, 8)
    if bs8 < 16:
        return bs8
    return min(_round_up((bs8 + 1) // 2, 8), 256)


def _lstm_gates(gates, c_prev, D):
    """LSTM nonlinearity from pre-activation gates [i | f | g | o].

    NOTE [R11]: at D=32 the four 32-lane gate slices need XLU lane work each
    step/layer; they are hidden today (XLU slot has slack) but if the model is
    scaled, pick d_model as a multiple of 128 so each gate is a whole vreg.
    """
    i_g = jax.nn.sigmoid(gates[:, 0 * D:1 * D])
    f_g = jax.nn.sigmoid(gates[:, 1 * D:2 * D])
    g_g = jnp.tanh(gates[:, 2 * D:3 * D])
    o_g = jax.nn.sigmoid(gates[:, 3 * D:4 * D])
    c_new = f_g * c_prev + i_g * g_g
    h_new = o_g * jnp.tanh(c_new)
    return h_new, c_new


def _netg_lstm_kernel(n_chars, n_layers, d_model,
                      z_ref, whc_ref, bhc_ref, wemb4_ref, wih_ref, whh_ref,
                      bsum_ref, wfc_ref, bfc_ref, mask_ref,
                      idx_ref, logit_ref):
    L, D = n_layers, d_model
    BB = z_ref.shape[0]            # batch block (multiple of 8 sublanes)
    CP = wfc_ref.shape[1]          # n_chars padded to 128 lanes
    G4 = 4 * D
    T = mask_ref.shape[0]
    wdt = wemb4_ref.dtype          # bf16 weight dtype (MXU-native), f32 accumulate

    # ---- prologue: fused h0/c0 projection (single MXU push), ReLU, split ----
    hc = jnp.maximum(
        jnp.dot(z_ref[...].astype(wdt), whc_ref[...],
                preferred_element_type=jnp.float32) + bhc_ref[...], 0.0)  # (BB, 2*L*D)
    h = [hc[:, l * D:(l + 1) * D] for l in range(L)]
    c = [hc[:, (L + l) * D:(L + l + 1) * D] for l in range(L)]

    # ---- loop-invariant loads / broadcasts hoisted out of the T x L unroll ----
    # Scale-up guard [R6]: these whole-weight vreg loads and (BB, G4) bias
    # broadcasts are the right call at toy size (JAX does not CSE
    # broadcast_in_dim), but if D/L/T/BB are scaled up they will exceed the 64
    # vregs and spill -> switch to indexing the refs / (1, G4) implicit sublane
    # broadcast at each use instead.
    wemb4 = wemb4_ref[...]                                                # (CP, 4D)
    wih = [wih_ref[l] for l in range(L - 1)]                              # (D, 4D) each
    whh = [whh_ref[l] for l in range(L)]                                  # (D, 4D) each
    bsum = [jnp.broadcast_to(bsum_ref[l], (BB, G4)) for l in range(L)]
    wfc = wfc_ref[...]                                                    # (D, CP)
    bfc = jnp.broadcast_to(bfc_ref[...], (BB, CP))
    col_i = jax.lax.broadcasted_iota(jnp.int32, (BB, CP), 1)              # lane ids
    col_f = col_i.astype(jnp.float32)

    # start token = n_chars, one-hot over the padded lane dim (constant, hoisted)
    x_onehot = (col_i == n_chars).astype(jnp.float32)                     # (BB, CP)

    idx_cols = []
    # Scale-up guard [R10]: T (seq_len) <= ~16 -> static unroll is fine.  Beyond
    # that, switch this to lax.fori_loop (small unroll factor) with h/c carried
    # as stacked arrays / VMEM scratch to keep code size and vreg pressure down.
    for t in range(T):
        # [R5] Recurrent gate contributions depend only on h from step t-1 (NOT
        # on the argmax feedback sel(t-1)), so the LLO scheduler can overlap
        # these MXU pushes with the previous step's fc matmul / argmax tail.
        # (The fused [sel | h] @ [Wemb4 ; Whh] form is only preferable in a
        # large-BB, MXU-throughput-bound regime.)
        rec = [jnp.dot(h[l].astype(wdt), whh[l],
                       preferred_element_type=jnp.float32) + bsum[l]
               for l in range(L)]

        # layer 0: embedding lookup folded into wemb4 = pad(emb) @ Wih0
        gates = jnp.dot(x_onehot.astype(wdt), wemb4,
                        preferred_element_type=jnp.float32) + rec[0]
        h[0], c[0] = _lstm_gates(gates, c[0], D)
        layer_in = h[0]
        for l in range(1, L):
            gates = jnp.dot(layer_in.astype(wdt), wih[l - 1],
                            preferred_element_type=jnp.float32) + rec[l]
            h[l], c[l] = _lstm_gates(gates, c[l], D)
            layer_in = h[l]
        # TODO(synk): nn.LSTM inter-layer dropout omitted (inference semantics).

        logit = jnp.dot(layer_in.astype(wdt), wfc,
                        preferred_element_type=jnp.float32) + bfc         # (BB, CP)

        # [R4] mask codes -> additive penalty with one convert + one multiply:
        #   0 (valid) -> 0, 1 (invalid real lane) -> -1e8, 2 (pad lane/row) -> -2e8
        # so pad lanes never beat real lanes.  (Fully-masked rows pick the best
        # invalid real lane; the reference asserts mask validity upstream.)
        pen = mask_ref[t].astype(jnp.float32) * jnp.float32(-1e8)
        masked = logit + pen

        # [R7] argmax with numpy first-index tie semantics, done fully in f32.
        # Kept as two XLU reductions (max + tie-breaking min) rather than a
        # paired (value,index) reduction: exact tie semantics, proven lowering;
        # the second reduce is hidden under slack at this size.
        maxv = jnp.max(masked, axis=1, keepdims=True)
        idx = jnp.min(jnp.where(masked == maxv, col_f, jnp.float32(CP)),
                      axis=1, keepdims=True)                              # (BB, 1)
        sel = (col_f == idx).astype(jnp.float32)                          # (BB, CP)

        logit_ref[t] = logit.astype(logit_ref.dtype)   # full (BB, 128) lane-dense store
        idx_cols.append(idx)
        # greedy feedback: chosen index < n_chars < CP -> reuse the one-hot directly
        x_onehot = sel

    # [R3] one small int32 store of the chosen tokens instead of a (T,BB,CP) one-hot
    idx_ref[...] = jnp.concatenate(idx_cols, axis=1).astype(jnp.int32)    # (BB, T)


def init_params(key, n_chars, n_layers, d_model, potential_size):
    """Deterministic (xavier-normal weights / zero biases) parameter init."""
    keys = jax.random.split(key, 6)

    def xavier(k, shape):
        fan_in, fan_out = shape[-2], shape[-1]
        std = (2.0 / (fan_in + fan_out)) ** 0.5
        return std * jax.random.normal(k, shape, dtype=jnp.float32)

    LD = n_layers * d_model
    return {
        "wh": xavier(keys[0], (potential_size, LD)),
        "bh": jnp.zeros((1, LD), jnp.float32),
        "wc": xavier(keys[1], (potential_size, LD)),
        "bc": jnp.zeros((1, LD), jnp.float32),
        "emb": xavier(keys[2], (n_chars + 1, d_model)).at[0].set(0.0),  # padding_idx=0
        "wih": xavier(keys[3], (n_layers, d_model, 4 * d_model)),
        "whh": xavier(keys[4], (n_layers, d_model, 4 * d_model)),
        "bih": jnp.zeros((n_layers, 1, 4 * d_model), jnp.float32),
        "bhh": jnp.zeros((n_layers, 1, 4 * d_model), jnp.float32),
        "wfc": xavier(keys[5], (d_model, n_chars)),
        "bfc": jnp.zeros((1, n_chars), jnp.float32),
    }


def netg_lstm_forward(z, params, mask_bool, seq_len, n_chars,
                      batch_block=None, weight_dtype=jnp.bfloat16,
                      logit_store_dtype=jnp.float32):
    # logit_store_dtype: keep f32 by default for reference fidelity; set to
    # jnp.bfloat16 on v5e to halve the per-step logit writeback [R8] (the
    # in-kernel argmax stays f32 either way).
    bs, P = z.shape
    T, C = seq_len, n_chars
    L, D, G4 = params["wih"].shape
    V = C + 1
    CP = max(128, _round_up(C, 128))       # lane-dense padded char dim
    BB = _choose_batch_block(bs) if batch_block is None else batch_block  # [R1/R2]
    bs_pad = _round_up(max(bs, BB), BB)

    # ---- one-time parameter fusion / padding (plain JAX, outside the kernel) ----
    whc = jnp.concatenate([params["wh"], params["wc"]], axis=1).astype(weight_dtype)
    bhc = jnp.concatenate([params["bh"], params["bc"]], axis=1)           # (1, 2LD) f32

    emb_pad = jnp.zeros((CP, D), jnp.float32).at[:V].set(params["emb"])
    wemb4 = jnp.dot(emb_pad, params["wih"][0]).astype(weight_dtype)       # (CP, 4D)

    whh = params["whh"].astype(weight_dtype)                              # (L, D, 4D)
    if L > 1:
        wih_rest = params["wih"][1:].astype(weight_dtype)                 # (L-1, D, 4D)
    else:
        wih_rest = jnp.zeros((1, D, G4), weight_dtype)                    # unused dummy
    bsum = params["bih"] + params["bhh"]                                  # (L, 1, 4D) f32

    wfc = jnp.zeros((D, CP), jnp.float32).at[:, :C].set(params["wfc"]).astype(weight_dtype)
    bfc = jnp.zeros((1, CP), jnp.float32).at[:, :C].set(params["bfc"])

    z_pad = jnp.zeros((bs_pad, P), jnp.float32).at[:bs].set(z)

    # [R4] int8 validity codes, time-major: 0 valid / 1 invalid real lane / 2 pad
    mask_tm = jnp.transpose(mask_bool, (1, 0, 2))                         # (T, bs, C)
    mask_codes = jnp.full((T, bs_pad, CP), 2, jnp.int8).at[:, :bs, :C].set(
        jnp.where(mask_tm, 0, 1).astype(jnp.int8))

    kernel = functools.partial(_netg_lstm_kernel, n_chars, L, D)

    def full_spec(shape):
        n = len(shape)
        return pl.BlockSpec(shape, lambda b, n=n: (0,) * n)

    zb_spec = pl.BlockSpec((BB, P), lambda b: (b, 0))
    mask_spec = pl.BlockSpec((T, BB, CP), lambda b: (0, b, 0))
    logit_spec = pl.BlockSpec((T, BB, CP), lambda b: (0, b, 0))
    idx_spec = pl.BlockSpec((BB, T), lambda b: (b, 0))

    # [R9] explicit VMEM budget: weights + double-buffered per-step blocks,
    # with 2x slack, kept under v7x's 64 MiB physical ceiling.
    weight_bytes = sum(int(a.size) * a.dtype.itemsize
                       for a in (whc, bhc, wemb4, wih_rest, whh, bsum, wfc, bfc))
    block_bytes = (BB * P * 4
                   + T * BB * CP * 1                                       # int8 mask
                   + T * BB * CP * jnp.dtype(logit_store_dtype).itemsize   # logits
                   + BB * T * 4)                                           # int32 idx
    vmem_limit = int(min(max(2 * (weight_bytes + 2 * block_bytes), 32 << 20),
                         56 << 20))

    idx_pad, logit_tm = pl.pallas_call(
        kernel,
        grid=(bs_pad // BB,),
        in_specs=[zb_spec,
                  full_spec(whc.shape), full_spec(bhc.shape),
                  full_spec(wemb4.shape), full_spec(wih_rest.shape),
                  full_spec(whh.shape), full_spec(bsum.shape),
                  full_spec(wfc.shape), full_spec(bfc.shape),
                  mask_spec],
        out_specs=(idx_spec, logit_spec),
        out_shape=(jax.ShapeDtypeStruct((bs_pad, T), jnp.int32),           # chosen tokens
                   jax.ShapeDtypeStruct((T, bs_pad, CP), logit_store_dtype)),  # raw logits
        compiler_params=pltpu.CompilerParams(
            dimension_semantics=("parallel",),       # batch blocks shard across v7x TCs
            vmem_limit_bytes=vmem_limit),
    )(z_pad, whc, bhc, wemb4, wih_rest, whh, bsum, wfc, bfc, mask_codes)

    # decode padded outputs back to the torch-reference shapes/dtypes
    onehot_s = idx_pad[:bs].astype(jnp.float32)                            # (bs, T)
    logit_s = jnp.transpose(logit_tm[:, :bs, :C], (1, 0, 2)).astype(jnp.float32)
    mask_s = mask_bool                                                     # (bs, T, C)
    # TODO(synk): external `Builders` grammar/validity oracle has no Pallas equivalent;
    # the caller supplies the per-step validity mask instead and `builders` is None.
    builders = None
    return (onehot_s, logit_s, mask_s), builders


if __name__ == "__main__":
    n_chars, n_layers, d_model, seq_len, potential_size = 12, 2, 32, 8, 16
    bs = 4

    key = jax.random.PRNGKey(0)
    kz, kp = jax.random.split(key)
    params = init_params(kp, n_chars, n_layers, d_model, potential_size)
    z = jax.random.normal(kz, (bs, potential_size), dtype=jnp.float32)

    # TODO(synk): Builders.get_valid_op() is an external validity oracle; use all-valid mask.
    mask_bool = jnp.ones((bs, seq_len, n_chars), dtype=jnp.bool_)

    (onehot_s, logit_s, mask_s), _builders = netg_lstm_forward(
        z, params, mask_bool, seq_len, n_chars)
    jax.block_until_ready((onehot_s, logit_s, mask_s))

    assert onehot_s.shape == (bs, seq_len)
    assert logit_s.shape == (bs, seq_len, n_chars)
    assert mask_s.shape == (bs, seq_len, n_chars)
    assert bool(jnp.all((onehot_s >= 0) & (onehot_s < n_chars)))
    assert bool(jnp.all(jnp.isfinite(logit_s)))
    print("KERNEL_OK")
</pallas_src>

<mosaic_0001>
module attributes {stable_mosaic.version = 11 : i64} {
  func.func @_netg_lstm_kernel(%arg0: i32, %arg1: memref<8x16xf32, #tpu.memory_space<vmem>>, %arg2: memref<16x128xbf16, #tpu.memory_space<vmem>>, %arg3: memref<1x128xf32, #tpu.memory_space<vmem>>, %arg4: memref<128x128xbf16, #tpu.memory_space<vmem>>, %arg5: memref<1x32x128xbf16, #tpu.memory_space<vmem>>, %arg6: memref<2x32x128xbf16, #tpu.memory_space<vmem>>, %arg7: memref<2x1x128xf32, #tpu.memory_space<vmem>>, %arg8: memref<32x128xbf16, #tpu.memory_space<vmem>>, %arg9: memref<1x128xf32, #tpu.memory_space<vmem>>, %arg10: memref<8x8x128xi8, #tpu.memory_space<vmem>>, %arg11: memref<8x8xi32, #tpu.memory_space<vmem>>, %arg12: memref<8x8x128xf32, #tpu.memory_space<vmem>>) attributes {dimension_semantics = [#tpu.dimension_semantics<parallel>], iteration_bounds = array<i64: 1>, scalar_prefetch = 0 : i64, scratch_operands = 0 : i64, tpu.core_type = #tpu.core_type<tc>, window_params = [{transform_indices = @transform_0, window_bounds = array<i64: 8, 16>}, {pipeline_mode = #tpu.pipeline_mode<synchronous>, transform_indices = @transform_1, window_bounds = array<i64: 16, 128>}, {pipeline_mode = #tpu.pipeline_mode<synchronous>, transform_indices = @transform_2, window_bounds = array<i64: 1, 128>}, {pipeline_mode = #tpu.pipeline_mode<synchronous>, transform_indices = @transform_3, window_bounds = array<i64: 128, 128>}, {pipeline_mode = #tpu.pipeline_mode<synchronous>, transform_indices = @transform_4, window_bounds = array<i64: 1, 32, 128>}, {pipeline_mode = #tpu.pipeline_mode<synchronous>, transform_indices = @transform_5, window_bounds = array<i64: 2, 32, 128>}, {pipeline_mode = #tpu.pipeline_mode<synchronous>, transform_indices = @transform_6, window_bounds = array<i64: 2, 1, 128>}, {pipeline_mode = #tpu.pipeline_mode<synchronous>, transform_indices = @transform_7, window_bounds = array<i64: 32, 128>}, {pipeline_mode = #tpu.pipeline_mode<synchronous>, transform_indices = @transform_8, window_bounds = array<i64: 1, 128>}, {transform_indices = @transform_9, window_bounds = array<i64: 8, 8, 128>}, {transform_indices = @transform_10, window_bounds = array<i64: 8, 8>}, {transform_indices = @transform_11, window_bounds = array<i64: 8, 8, 128>}]} {
    %c0 = arith.constant 0 : index
    %c0_0 = arith.constant 0 : index
    %0 = vector.load %arg1[%c0, %c0_0] : memref<8x16xf32, #tpu.memory_space<vmem>>, vector<8x16xf32>
    %1 = arith.truncf %0 : vector<8x16xf32> to vector<8x16xbf16>
    %c0_1 = arith.constant 0 : index
    %c0_2 = arith.constant 0 : index
    %2 = vector.load %arg2[%c0_1, %c0_2] : memref<16x128xbf16, #tpu.memory_space<vmem>>, vector<16x128xbf16>
    %cst = arith.constant dense<0.000000e+00> : vector<8x128xf32>
    %3 = tpu.matmul %1, %2, %cst {dimension_numbers = #tpu.dot_dimension_numbers<[1], [0], [0], [1], [0, 0, 1, 1], [], []>} : vector<8x16xbf16>, vector<16x128xbf16>, vector<8x128xf32> -> vector<8x128xf32>
    %c0_3 = arith.constant 0 : index
    %c0_4 = arith.constant 0 : index
    %4 = vector.load %arg3[%c0_3, %c0_4] : memref<1x128xf32, #tpu.memory_space<vmem>>, vector<1x128xf32>
    %5 = vector.broadcast %4 : vector<1x128xf32> to vector<8x128xf32>
    %6 = arith.addf %3, %5 : vector<8x128xf32>
    %cst_5 = arith.constant 0.000000e+00 : f32
    %7 = vector.broadcast %cst_5 : f32 to vector<8x128xf32>
    %8 = arith.maximumf %6, %7 : vector<8x128xf32>
    %9 = vector.extract_strided_slice %8 {offsets = [0, 0], sizes = [8, 32], strides = [1, 1]} : vector<8x128xf32> to vector<8x32xf32>
    %10 = vector.extract_strided_slice %8 {offsets = [0, 32], sizes = [8, 32], strides = [1, 1]} : vector<8x128xf32> to vector<8x32xf32>
    %11 = vector.extract_strided_slice %8 {offsets = [0, 64], sizes = [8, 32], strides = [1, 1]} : vector<8x128xf32> to vector<8x32xf32>
    %12 = vector.extract_strided_slice %8 {offsets = [0, 96], sizes = [8, 32], strides = [1, 1]} : vector<8x128xf32> to vector<8x32xf32>
    %c0_6 = arith.constant 0 : index
    %c0_7 = arith.constant 0 : index
    %13 = vector.load %arg4[%c0_6, %c0_7] : memref<128x128xbf16, #tpu.memory_space<vmem>>, vector<128x128xbf16>
    %c0_8 = arith.constant 0 : index
    %c0_9 = arith.constant 0 : index
    %c0_10 = arith.constant 0 : index
    %14 = vector.load %arg5[%c0_8, %c0_9, %c0_10] : memref<1x32x128xbf16, #tpu.memory_space<vmem>>, vector<1x32x128xbf16>
    %15 = vector.shape_cast %14 : vector<1x32x128xbf16> to vector<32x128xbf16>
    %c0_11 = arith.constant 0 : index
    %c0_12 = arith.constant 0 : index
    %c0_13 = arith.constant 0 : index
    %16 = vector.load %arg6[%c0_11, %c0_12, %c0_13] : memref<2x32x128xbf16, #tpu.memory_space<vmem>>, vector<1x32x128xbf16>
    %17 = vector.shape_cast %16 : vector<1x32x128xbf16> to vector<32x128xbf16>
    %c1 = arith.constant 1 : index
    %c0_14 = arith.constant 0 : index
    %c0_15 = arith.constant 0 : index
    %18 = vector.load %arg6[%c1, %c0_14, %c0_15] : memref<2x32x128xbf16, #tpu.memory_space<vmem>>, vector<1x32x128xbf16>
    %19 = vector.shape_cast %18 : vector<1x32x128xbf16> to vector<32x128xbf16>
    %c0_16 = arith.constant 0 : index
    %c0_17 = arith.constant 0 : index
    %c0_18 = arith.constant 0 : index
    %20 = vector.load %arg7[%c0_16, %c0_17, %c0_18] : memref<2x1x128xf32, #tpu.memory_space<vmem>>, vector<1x1x128xf32>
    %21 = vector.shape_cast %20 : vector<1x1x128xf32> to vector<1x128xf32>
    %22 = vector.shape_cast %21 : vector<1x128xf32> to vector<1x128xf32>
    %23 = vector.broadcast %22 : vector<1x128xf32> to vector<8x128xf32>
    %c1_19 = arith.constant 1 : index
    %c0_20 = arith.constant 0 : index
    %c0_21 = arith.constant 0 : index
    %24 = vector.load %arg7[%c1_19, %c0_20, %c0_21] : memref<2x1x128xf32, #tpu.memory_space<vmem>>, vector<1x1x128xf32>
    %25 = vector.shape_cast %24 : vector<1x1x128xf32> to vector<1x128xf32>
    %26 = vector.shape_cast %25 : vector<1x128xf32> to vector<1x128xf32>
    %27 = vector.broadcast %26 : vector<1x128xf32> to vector<8x128xf32>
    %c0_22 = arith.constant 0 : index
    %c0_23 = arith.constant 0 : index
    %28 = vector.load %arg8[%c0_22, %c0_23] : memref<32x128xbf16, #tpu.memory_space<vmem>>, vector<32x128xbf16>
    %c0_24 = arith.constant 0 : index
    %c0_25 = arith.constant 0 : index
    %29 = vector.load %arg9[%c0_24, %c0_25] : memref<1x128xf32, #tpu.memory_space<vmem>>, vector<1x128xf32>
    %30 = vector.shape_cast %29 : vector<1x128xf32> to vector<1x128xf32>
    %31 = vector.broadcast %30 : vector<1x128xf32> to vector<8x128xf32>
    %32 = tpu.iota {dimensions = array<i32: 1>} : vector<8x128xi32>
    %33 = arith.sitofp %32 : vector<8x128xi32> to vector<8x128xf32>
    %c12_i32 = arith.constant 12 : i32
    %34 = vector.broadcast %c12_i32 : i32 to vector<8x128xi32>
    %35 = arith.cmpi eq, %32, %34 : vector<8x128xi32>
    %36 = arith.extui %35 : vector<8x128xi1> to vector<8x128xi32>
    %37 = arith.sitofp %36 : vector<8x128xi32> to vector<8x128xf32>
    %38 = arith.truncf %9 : vector<8x32xf32> to vector<8x32xbf16>
    %cst_26 = arith.constant dense<0.000000e+00> : vector<8x128xf32>
    %39 = tpu.matmul %38, %17, %cst_26 {dimension_numbers = #tpu.dot_dimension_numbers<[1], [0], [0], [1], [0, 0, 1, 1], [], []>} : vector<8x32xbf16>, vector<32x128xbf16>, vector<8x128xf32> -> vector<8x128xf32>
    %40 = arith.addf %39, %23 : vector<8x128xf32>
    %41 = arith.truncf %10 : vector<8x32xf32> to vector<8x32xbf16>
    %cst_27 = arith.constant dense<0.000000e+00> : vector<8x128xf32>
    %42 = tpu.matmul %41, %19, %cst_27 {dimension_numbers = #tpu.dot_dimension_numbers<[1], [0], [0], [1], [0, 0, 1, 1], [], []>} : vector<8x32xbf16>, vector<32x128xbf16>, vector<8x128xf32> -> vector<8x128xf32>
    %43 = arith.addf %42, %27 : vector<8x128xf32>
    %44 = arith.truncf %37 : vector<8x128xf32> to vector<8x128xbf16>
    %cst_28 = arith.constant dense<0.000000e+00> : vector<8x128xf32>
    %45 = tpu.matmul %44, %13, %cst_28 {dimension_numbers = #tpu.dot_dimension_numbers<[1], [0], [0], [1], [0, 0, 1, 1], [], []>} : vector<8x128xbf16>, vector<128x128xbf16>, vector<8x128xf32> -> vector<8x128xf32>
    %46 = arith.addf %45, %40 : vector<8x128xf32>
    %47 = vector.extract_strided_slice %46 {offsets = [0, 0], sizes = [8, 32], strides = [1, 1]} : vector<8x128xf32> to vector<8x32xf32>
    %48 = arith.negf %47 : vector<8x32xf32>
    %49 = math.exp %48 : vector<8x32xf32>
    %cst_29 = arith.constant 1.000000e+00 : f32
    %50 = vector.broadcast %cst_29 : f32 to vector<8x32xf32>
    %51 = arith.addf %50, %49 : vector<8x32xf32>
    %52 = arith.divf %50, %51 : vector<8x32xf32>
    %53 = vector.extract_strided_slice %46 {offsets = [0, 32], sizes = [8, 32], strides = [1, 1]} : vector<8x128xf32> to vector<8x32xf32>
    %54 = arith.negf %53 : vector<8x32xf32>
    %55 = math.exp %54 : vector<8x32xf32>
    %cst_30 = arith.constant 1.000000e+00 : f32
    %56 = vector.broadcast %cst_30 : f32 to vector<8x32xf32>
    %57 = arith.addf %56, %55 : vector<8x32xf32>
    %58 = arith.divf %56, %57 : vector<8x32xf32>
    %59 = vector.extract_strided_slice %46 {offsets = [0, 64], sizes = [8, 32], strides = [1, 1]} : vector<8x128xf32> to vector<8x32xf32>
    %60 = math.tanh %59 : vector<8x32xf32>
    %61 = vector.extract_strided_slice %46 {offsets = [0, 96], sizes = [8, 32], strides = [1, 1]} : vector<8x128xf32> to vector<8x32xf32>
    %62 = arith.negf %61 : vector<8x32xf32>
    %63 = math.exp %62 : vector<8x32xf32>
    %cst_31 = arith.constant 1.000000e+00 : f32
    %64 = vector.broadcast %cst_31 : f32 to vector<8x32xf32>
    %65 = arith.addf %64, %63 : vector<8x32xf32>
    %66 = arith.divf %64, %65 : vector<8x32xf32>
    %67 = arith.mulf %58, %11 : vector<8x32xf32>
    %68 = arith.mulf %52, %60 : vector<8x32xf32>
    %69 = arith.addf %67, %68 : vector<8x32xf32>
    %70 = math.tanh %69 : vector<8x32xf32>
    %71 = arith.mulf %66, %70 : vector<8x32xf32>
    %72 = arith.truncf %71 : vector<8x32xf32> to vector<8x32xbf16>
    %cst_32 = arith.constant dense<0.000000e+00> : vector<8x128xf32>
    %73 = tpu.matmul %72, %15, %cst_32 {dimension_numbers = #tpu.dot_dimension_numbers<[1], [0], [0], [1], [0, 0, 1, 1], [], []>} : vector<8x32xbf16>, vector<32x128xbf16>, vector<8x128xf32> -> vector<8x128xf32>
    %74 = arith.addf %73, %43 : vector<8x128xf32>
    %75 = vector.extract_strided_slice %74 {offsets = [0, 0], sizes = [8, 32], strides = [1, 1]} : vector<8x128xf32> to vector<8x32xf32>
    %76 = arith.negf %75 : vector<8x32xf32>
    %77 = math.exp %76 : vector<8x32xf32>
    %cst_33 = arith.constant 1.000000e+00 : f32
    %78 = vector.broadcast %cst_33 : f32 to vector<8x32xf32>
    %79 = arith.addf %78, %77 : vector<8x32xf32>
    %80 = arith.divf %78, %79 : vector<8x32xf32>
    %81 = vector.extract_strided_slice %74 {offsets = [0, 32], sizes = [8, 32], strides = [1, 1]} : vector<8x128xf32> to vector<8x32xf32>
    %82 = arith.negf %81 : vector<8x32xf32>
    %83 = math.exp %82 : vector<8x32xf32>
    %cst_34 = arith.constant 1.000000e+00 : f32
    %84 = vector.broadcast %cst_34 : f32 to vector<8x32xf32>
    %85 = arith.addf %84, %83 : vector<8x32xf32>
    %86 = arith.divf %84, %85 : vector<8x32xf32>
    %87 = vector.extract_strided_slice %74 {offsets = [0, 64], sizes = [8, 32], strides = [1, 1]} : vector<8x128xf32> to vector<8x32xf32>
    %88 = math.tanh %87 : vector<8x32xf32>
    %89 = vector.extract_strided_slice %74 {offsets = [0, 96], sizes = [8, 32], strides = [1, 1]} : vector<8x128xf32> to vector<8x32xf32>
    %90 = arith.negf %89 : vector<8x32xf32>
    %91 = math.exp %90 : vector<8x32xf32>
    %cst_35 = arith.constant 1.000000e+00 : f32
    %92 = vector.broadcast %cst_35 : f32 to vector<8x32xf32>
    %93 = arith.addf %92, %91 : vector<8x32xf32>
    %94 = arith.divf %92, %93 : vector<8x32xf32>
    %95 = arith.mulf %86, %12 : vector<8x32xf32>
    %96 = arith.mulf %80, %88 : vector<8x32xf32>
    %97 = arith.addf %95, %96 : vector<8x32xf32>
    %98 = math.tanh %97 : vector<8x32xf32>
    %99 = arith.mulf %94, %98 : vector<8x32xf32>
    %100 = arith.truncf %99 : vector<8x32xf32> to vector<8x32xbf16>
    %cst_36 = arith.constant dense<0.000000e+00> : vector<8x128xf32>
    %101 = tpu.matmul %100, %28, %cst_36 {dimension_numbers = #tpu.dot_dimension_numbers<[1], [0], [0], [1], [0, 0, 1, 1], [], []>} : vector<8x32xbf16>, vector<32x128xbf16>, vector<8x128xf32> -> vector<8x128xf32>
    %102 = arith.addf %101, %31 : vector<8x128xf32>
    %c0_37 = arith.constant 0 : index
    %c0_38 = arith.constant 0 : index
    %c0_39 = arith.constant 0 : index
    %103 = vector.load %arg10[%c0_37, %c0_38, %c0_39] : memref<8x8x128xi8, #tpu.memory_space<vmem>>, vector<1x8x128xi8>
    %104 = vector.shape_cast %103 : vector<1x8x128xi8> to vector<8x128xi8>
    %105 = arith.sitofp %104 : vector<8x128xi8> to vector<8x128xf32>
    %cst_40 = arith.constant -1.000000e+08 : f32
    %106 = vector.broadcast %cst_40 : f32 to vector<8x128xf32>
    %107 = arith.mulf %105, %106 : vector<8x128xf32>
    %108 = arith.addf %102, %107 : vector<8x128xf32>
    %cst_41 = arith.constant dense<0xFF800000> : vector<8xf32>
    %109 = vector.multi_reduction <maximumf>, %108, %cst_41 [1] : vector<8x128xf32> to vector<8xf32>
    %110 = vector.shape_cast %109 : vector<8xf32> to vector<8x1xf32>
    %111 = vector.broadcast %110 : vector<8x1xf32> to vector<8x128xf32>
    %112 = arith.cmpf oeq, %108, %111 : vector<8x128xf32>
    %cst_42 = arith.constant 1.280000e+02 : f32
    %113 = vector.broadcast %cst_42 : f32 to vector<8x128xf32>
    %114 = arith.select %112, %33, %113 : vector<8x128xi1>, vector<8x128xf32>
    %cst_43 = arith.constant dense<0x7F800000> : vector<8xf32>
    %115 = vector.multi_reduction <minimumf>, %114, %cst_43 [1] : vector<8x128xf32> to vector<8xf32>
    %116 = vector.shape_cast %115 : vector<8xf32> to vector<8x1xf32>
    %117 = vector.broadcast %116 : vector<8x1xf32> to vector<8x128xf32>
    %118 = arith.cmpf oeq, %33, %117 : vector<8x128xf32>
    %119 = arith.extui %118 : vector<8x128xi1> to vector<8x128xi32>
    %120 = arith.sitofp %119 : vector<8x128xi32> to vector<8x128xf32>
    %c0_44 = arith.constant 0 : index
    %c0_45 = arith.constant 0 : index
    %c0_46 = arith.constant 0 : index
    %121 = vector.load %arg12[%c0_44, %c0_45, %c0_46] : memref<8x8x128xf32, #tpu.memory_space<vmem>>, vector<1x8x128xf32>
    %122 = vector.shape_cast %121 : vector<1x8x128xf32> to vector<8x128xf32>
    %123 = vector.shape_cast %102 : vector<8x128xf32> to vector<1x8x128xf32>
    tpu.vector_store %arg12[%c0_44, %c0_45, %c0_46], %123 {strides = array<i32>} : memref<8x8x128xf32, #tpu.memory_space<vmem>>, vector<1x8x128xf32>,
    %124 = arith.truncf %71 : vector<8x32xf32> to vector<8x32xbf16>
    %cst_47 = arith.constant dense<0.000000e+00> : vector<8x128xf32>
    %125 = tpu.matmul %124, %17, %cst_47 {dimension_numbers = #tpu.dot_dimension_numbers<[1], [0], [0], [1], [0, 0, 1, 1], [], []>} : vector<8x32xbf16>, vector<32x128xbf16>, vector<8x128xf32> -> vector<8x128xf32>
    %126 = arith.addf %125, %23 : vector<8x128xf32>
    %127 = arith.truncf %99 : vector<8x32xf32> to vector<8x32xbf16>
    %cst_48 = arith.constant dense<0.000000e+00> : vector<8x128xf32>
    %128 = tpu.matmul %127, %19, %cst_48 {dimension_numbers = #tpu.dot_dimension_numbers<[1], [0], [0], [1], [0, 0, 1, 1], [], []>} : vector<8x32xbf16>, vector<32x128xbf16>, vector<8x128xf32> -> vector<8x128xf32>
    %129 = arith.addf %128, %27 : vector<8x128xf32>
    %130 = arith.truncf %120 : vector<8x128xf32> to vector<8x128xbf16>
    %cst_49 = arith.constant dense<0.000000e+00> : vector<8x128xf32>
    %131 = tpu.matmul %130, %13, %cst_49 {dimension_numbers = #tpu.dot_dimension_numbers<[1], [0], [0], [1], [0, 0, 1, 1], [], []>} : vector<8x128xbf16>, vector<128x128xbf16>, vector<8x128xf32> -> vector<8x128xf32>
    %132 = arith.addf %131, %126 : vector<8x128xf32>
    %133 = vector.extract_strided_slice %132 {offsets = [0, 0], sizes = [8, 32], strides = [1, 1]} : vector<8x128xf32> to vector<8x32xf32>
    %134 = arith.negf %133 : vector<8x32xf32>
    %135 = math.exp %134 : vector<8x32xf32>
    %cst_50 = arith.constant 1.000000e+00 : f32
    %136 = vector.broadcast %cst_50 : f32 to vector<8x32xf32>
    %137 = arith.addf %136, %135 : vector<8x32xf32>
    %138 = arith.divf %136, %137 : vector<8x32xf32>
    %139 = vector.extract_strided_slice %132 {offsets = [0, 32], sizes = [8, 32], strides = [1, 1]} : vector<8x128xf32> to vector<8x32xf32>
    %140 = arith.negf %139 : vector<8x32xf32>
    %141 = math.exp %140 : vector<8x32xf32>
    %cst_51 = arith.constant 1.000000e+00 : f32
    %142 = vector.broadcast %cst_51 : f32 to vector<8x32xf32>
    %143 = arith.addf %142, %141 : vector<8x32xf32>
    %144 = arith.divf %142, %143 : vector<8x32xf32>
    %145 = vector.extract_strided_slice %132 {offsets = [0, 64], sizes = [8, 32], strides = [1, 1]} : vector<8x128xf32> to vector<8x32xf32>
    %146 = math.tanh %145 : vector<8x32xf32>
    %147 = vector.extract_strided_slice %132 {offsets = [0, 96], sizes = [8, 32], strides = [1, 1]} : vector<8x128xf32> to vector<8x32xf32>
    %148 = arith.negf %147 : vector<8x32xf32>
    %149 = math.exp %148 : vector<8x32xf32>
    %cst_52 = arith.constant 1.000000e+00 : f32
    %150 = vector.broadcast %cst_52 : f32 to vector<8x32xf32>
    %151 = arith.addf %150, %149 : vector<8x32xf32>
    %152 = arith.divf %150, %151 : vector<8x32xf32>
    %153 = arith.mulf %144, %69 : vector<8x32xf32>
    %154 = arith.mulf %138, %146 : vector<8x32xf32>
    %155 = arith.addf %153, %154 : vector<8x32xf32>
    %156 = math.tanh %155 : vector<8x32xf32>
    %157 = arith.mulf %152, %156 : vector<8x32xf32>
    %158 = arith.truncf %157 : vector<8x32xf32> to vector<8x32xbf16>
    %cst_53 = arith.constant dense<0.000000e+00> : vector<8x128xf32>
    %159 = tpu.matmul %158, %15, %cst_53 {dimension_numbers = #tpu.dot_dimension_numbers<[1], [0], [0], [1], [0, 0, 1, 1], [], []>} : vector<8x32xbf16>, vector<32x128xbf16>, vector<8x128xf32> -> vector<8x128xf32>
    %160 = arith.addf %159, %129 : vector<8x128xf32>
    %161 = vector.extract_strided_slice %160 {offsets = [0, 0], sizes = [8, 32], strides = [1, 1]} : vector<8x128xf32> to vector<8x32xf32>
    %162 = arith.negf %161 : vector<8x32xf32>
    %163 = math.exp %162 : vector<8x32xf32>
    %cst_54 = arith.constant 1.000000e+00 : f32
    %164 = vector.broadcast %cst_54 : f32 to vector<8x32xf32>
    %165 = arith.addf %164, %163 : vector<8x32xf32>
    %166 = arith.divf %164, %165 : vector<8x32xf32>
    %167 = vector.extract_strided_slice %160 {offsets = [0, 32], sizes = [8, 32], strides = [1, 1]} : vector<8x128xf32> to vector<8x32xf32>
    %168 = arith.negf %167 : vector<8x32xf32>
    %169 = math.exp %168 : vector<8x32xf32>
    %cst_55 = arith.constant 1.000000e+00 : f32
    %170 = vector.broadcast %cst_55 : f32 to vector<8x32xf32>
    %171 = arith.addf %170, %169 : vector<8x32xf32>
    %172 = arith.divf %170, %171 : vector<8x32xf32>
    %173 = vector.extract_strided_slice %160 {offsets = [0, 64], sizes = [8, 32], strides = [1, 1]} : vector<8x128xf32> to vector<8x32xf32>
    %174 = math.tanh %173 : vector<8x32xf32>
    %175 = vector.extract_strided_slice %160 {offsets = [0, 96], sizes = [8, 32], strides = [1, 1]} : vector<8x128xf32> to vector<8x32xf32>
    %176 = arith.negf %175 : vector<8x32xf32>
    %177 = math.exp %176 : vector<8x32xf32>
    %cst_56 = arith.constant 1.000000e+00 : f32
    %178 = vector.broadcast %cst_56 : f32 to vector<8x32xf32>
    %179 = arith.addf %178, %177 : vector<8x32xf32>
    %180 = arith.divf %178, %179 : vector<8x32xf32>
    %181 = arith.mulf %172, %97 : vector<8x32xf32>
    %182 = arith.mulf %166, %174 : vector<8x32xf32>
    %183 = arith.addf %181, %182 : vector<8x32xf32>
    %184 = math.tanh %183 : vector<8x32xf32>
    %185 = arith.mulf %180, %184 : vector<8x32xf32>
    %186 = arith.truncf %185 : vector<8x32xf32> to vector<8x32xbf16>
    %cst_57 = arith.constant dense<0.000000e+00> : vector<8x128xf32>
    %187 = tpu.matmul %186, %28, %cst_57 {dimension_numbers = #tpu.dot_dimension_numbers<[1], [0], [0], [1], [0, 0, 1, 1], [], []>} : vector<8x32xbf16>, vector<32x128xbf16>, vector<8x128xf32> -> vector<8x128xf32>
    %188 = arith.addf %187, %31 : vector<8x128xf32>
    %c1_58 = arith.constant 1 : index
    %c0_59 = arith.constant 0 : index
    %c0_60 = arith.constant 0 : index
    %189 = vector.load %arg10[%c1_58, %c0_59, %c0_60] : memref<8x8x128xi8, #tpu.memory_space<vmem>>, vector<1x8x128xi8>
    %190 = vector.shape_cast %189 : vector<1x8x128xi8> to vector<8x128xi8>
    %191 = arith.sitofp %190 : vector<8x128xi8> to vector<8x128xf32>
    %cst_61 = arith.constant -1.000000e+08 : f32
    %192 = vector.broadcast %cst_61 : f32 to vector<8x128xf32>
    %193 = arith.mulf %191, %192 : vector<8x128xf32>
    %194 = arith.addf %188, %193 : vector<8x128xf32>
    %cst_62 = arith.constant dense<0xFF800000> : vector<8xf32>
    %195 = vector.multi_reduction <maximumf>, %194, %cst_62 [1] : vector<8x128xf32> to vector<8xf32>
    %196 = vector.shape_cast %195 : vector<8xf32> to vector<8x1xf32>
    %197 = vector.broadcast %196 : vector<8x1xf32> to vector<8x128xf32>
    %198 = arith.cmpf oeq, %194, %197 : vector<8x128xf32>
    %cst_63 = arith.constant 1.280000e+02 : f32
    %199 = vector.broadcast %cst_63 : f32 to vector<8x128xf32>
    %200 = arith.select %198, %33, %199 : vector<8x128xi1>, vector<8x128xf32>
    %cst_64 = arith.constant dense<0x7F800000> : vector<8xf32>
    %201 = vector.multi_reduction <minimumf>, %200, %cst_64 [1] : vector<8x128xf32> to vector<8xf32>
    %202 = vector.shape_cast %201 : vector<8xf32> to vector<8x1xf32>
    %203 = vector.broadcast %202 : vector<8x1xf32> to vector<8x128xf32>
    %204 = arith.cmpf oeq, %33, %203 : vector<8x128xf32>
    %205 = arith.extui %204 : vector<8x128xi1> to vector<8x128xi32>
    %206 = arith.sitofp %205 : vector<8x128xi32> to vector<8x128xf32>
    %c1_65 = arith.constant 1 : index
    %c0_66 = arith.constant 0 : index
    %c0_67 = arith.constant 0 : index
    %207 = vector.load %arg12[%c1_65, %c0_66, %c0_67] : memref<8x8x128xf32, #tpu.memory_space<vmem>>, vector<1x8x128xf32>
    %208 = vector.shape_cast %207 : vector<1x8x128xf32> to vector<8x128xf32>
    %209 = vector.shape_cast %188 : vector<8x128xf32> to vector<1x8x128xf32>
    tpu.vector_store %arg12[%c1_65, %c0_66, %c0_67], %209 {strides = array<i32>} : memref<8x8x128xf32, #tpu.memory_space<vmem>>, vector<1x8x128xf32>,
    %210 = arith.truncf %157 : vector<8x32xf32> to vector<8x32xbf16>
    %cst_68 = arith.constant dense<0.000000e+00> : vector<8x128xf32>
    %211 = tpu.matmul %210, %17, %cst_68 {dimension_numbers = #tpu.dot_dimension_numbers<[1], [0], [0], [1], [0, 0, 1, 1], [], []>} : vector<8x32xbf16>, vector<32x128xbf16>, vector<8x128xf32> -> vector<8x128xf32>
    %212 = arith.addf %211, %23 : vector<8x128xf32>
    %213 = arith.truncf %185 : vector<8x32xf32> to vector<8x32xbf16>
    %cst_69 = arith.constant dense<0.000000e+00> : vector<8x128xf32>
    %214 = tpu.matmul %213, %19, %cst_69 {dimension_numbers = #tpu.dot_dimension_numbers<[1], [0], [0], [1], [0, 0, 1, 1], [], []>} : vector<8x32xbf16>, vector<32x128xbf16>, vector<8x128xf32> -> vector<8x128xf32>
    %215 = arith.addf %214, %27 : vector<8x128xf32>
    %216 = arith.truncf %206 : vector<8x128xf32> to vector<8x128xbf16>
    %cst_70 = arith.constant dense<0.000000e+00> : vector<8x128xf32>
    %217 = tpu.matmul %216, %13, %cst_70 {dimension_numbers = #tpu.dot_dimension_numbers<[1], [0], [0], [1], [0, 0, 1, 1], [], []>} : vector<8x128xbf16>, vector<128x128xbf16>, vector<8x128xf32> -> vector<8x128xf32>
    %218 = arith.addf %217, %212 : vector<8x128xf32>
    %219 = vector.extract_strided_slice %218 {offsets = [0, 0], sizes = [8, 32], strides = [1, 1]} : vector<8x128xf32> to vector<8x32xf32>
    %220 = arith.negf %219 : vector<8x32xf32>
    %221 = math.exp %220 : vector<8x32xf32>
    %cst_71 = arith.constant 1.000000e+00 : f32
    %222 = vector.broadcast %cst_71 : f32 to vector<8x32xf32>
    %223 = arith.addf %222, %221 : vector<8x32xf32>
    %224 = arith.divf %222, %223 : vector<8x32xf32>
    %225 = vector.extract_strided_slice %218 {offsets = [0, 32], sizes = [8, 32], strides = [1, 1]} : vector<8x128xf32> to vector<8x32xf32>
    %226 = arith.negf %225 : vector<8x32xf32>
    %227 = math.exp %226 : vector<8x32xf32>
    %cst_72 = arith.constant 1.000000e+00 : f32
    %228 = vector.broadcast %cst_72 : f32 to vector<8x32xf32>
    %229 = arith.addf %228, %227 : vector<8x32xf32>
    %230 = arith.divf %228, %229 : vector<8x32xf32>
    %231 = vector.extract_strided_slice %218 {offsets = [0, 64], sizes = [8, 32], strides = [1, 1]} : vector<8x128xf32> to vector<8x32xf32>
    %232 = math.tanh %231 : vector<8x32xf32>
    %233 = vector.extract_strided_slice %218 {offsets = [0, 96], sizes = [8, 32], strides = [1, 1]} : vector<8x128xf32> to vector<8x32xf32>
    %234 = arith.negf %233 : vector<8x32xf32>
    %235 = math.exp %234 : vector<8x32xf32>
    %cst_73 = arith.constant 1.000000e+00 : f32
    %236 = vector.broadcast %cst_73 : f32 to vector<8x32xf32>
    %237 = arith.addf %236, %235 : vector<8x32xf32>
    %238 = arith.divf %236, %237 : vector<8x32xf32>
    %239 = arith.mulf %230, %155 : vector<8x32xf32>
    %240 = arith.mulf %224, %232 : vector<8x32xf32>
    %241 = arith.addf %239, %240 : vector<8x32xf32>
    %242 = math.tanh %241 : vector<8x32xf32>
    %243 = arith.mulf %238, %242 : vector<8x32xf32>
    %244 = arith.truncf %243 : vector<8x32xf32> to vector<8x32xbf16>
    %cst_74 = arith.constant dense<0.000000e+00> : vector<8x128xf32>
    %245 = tpu.matmul %244, %15, %cst_74 {dimension_numbers = #tpu.dot_dimension_numbers<[1], [0], [0], [1], [0, 0, 1, 1], [], []>} : vector<8x32xbf16>, vector<32x128xbf16>, vector<8x128xf32> -> vector<8x128xf32>
    %246 = arith.addf %245, %215 : vector<8x128xf32>
    %247 = vector.extract_strided_slice %246 {offsets = [0, 0], sizes = [8, 32], strides = [1, 1]} : vector<8x128xf32> to vector<8x32xf32>
    %248 = arith.negf %247 : vector<8x32xf32>
    %249 = math.exp %248 : vector<8x32xf32>
    %cst_75 = arith.constant 1.000000e+00 : f32
    %250 = vector.broadcast %cst_75 : f32 to vector<8x32xf32>
    %251 = arith.addf %250, %249 : vector<8x32xf32>
    %252 = arith.divf %250, %251 : vector<8x32xf32>
    %253 = vector.extract_strided_slice %246 {offsets = [0, 32], sizes = [8, 32], strides = [1, 1]} : vector<8x128xf32> to vector<8x32xf32>
    %254 = arith.negf %253 : vector<8x32xf32>
    %255 = math.exp %254 : vector<8x32xf32>
    %cst_76 = arith.constant 1.000000e+00 : f32
    %256 = vector.broadcast %cst_76 : f32 to vector<8x32xf32>
    %257 = arith.addf %256, %255 : vector<8x32xf32>
    %258 = arith.divf %256, %257 : vector<8x32xf32>
    %259 = vector.extract_strided_slice %246 {offsets = [0, 64], sizes = [8, 32], strides = [1, 1]} : vector<8x128xf32> to vector<8x32xf32>
    %260 = math.tanh %259 : vector<8x32xf32>
    %261 = vector.extract_strided_slice %246 {offsets = [0, 96], sizes = [8, 32], strides = [1, 1]} : vector<8x128xf32> to vector<8x32xf32>
    %262 = arith.negf %261 : vector<8x32xf32>
    %263 = math.exp %262 : vector<8x32xf32>
    %cst_77 = arith.constant 1.000000e+00 : f32
    %264 = vector.broadcast %cst_77 : f32 to vector<8x32xf32>
    %265 = arith.addf %264, %263 : vector<8x32xf32>
    %266 = arith.divf %264, %265 : vector<8x32xf32>
    %267 = arith.mulf %258, %183 : vector<8x32xf32>
    %268 = arith.mulf %252, %260 : vector<8x32xf32>
    %269 = arith.addf %267, %268 : vector<8x32xf32>
    %270 = math.tanh %269 : vector<8x32xf32>
    %271 = arith.mulf %266, %270 : vector<8x32xf32>
    %272 = arith.truncf %271 : vector<8x32xf32> to vector<8x32xbf16>
    %cst_78 = arith.constant dense<0.000000e+00> : vector<8x128xf32>
    %273 = tpu.matmul %272, %28, %cst_78 {dimension_numbers = #tpu.dot_dimension_numbers<[1], [0], [0], [1], [0, 0, 1, 1], [], []>} : vector<8x32xbf16>, vector<32x128xbf16>, vector<8x128xf32> -> vector<8x128xf32>
    %274 = arith.addf %273, %31 : vector<8x128xf32>
    %c2 = arith.constant 2 : index
    %c0_79 = arith.constant 0 : index
    %c0_80 = arith.constant 0 : index
    %275 = vector.load %arg10[%c2, %c0_79, %c0_80] : memref<8x8x128xi8, #tpu.memory_space<vmem>>, vector<1x8x128xi8>
    %276 = vector.shape_cast %275 : vector<1x8x128xi8> to vector<8x128xi8>
    %277 = arith.sitofp %276 : vector<8x128xi8> to vector<8x128xf32>
    %cst_81 = arith.constant -1.000000e+08 : f32
    %278 = vector.broadcast %cst_81 : f32 to vector<8x128xf32>
    %279 = arith.mulf %277, %278 : vector<8x128xf32>
    %280 = arith.addf %274, %279 : vector<8x128xf32>
    %cst_82 = arith.constant dense<0xFF800000> : vector<8xf32>
    %281 = vector.multi_reduction <maximumf>, %280, %cst_82 [1] : vector<8x128xf32> to vector<8xf32>
    %282 = vector.shape_cast %281 : vector<8xf32> to vector<8x1xf32>
    %283 = vector.broadcast %282 : vector<8x1xf32> to vector<8x128xf32>
    %284 = arith.cmpf oeq, %280, %283 : vector<8x128xf32>
    %cst_83 = arith.constant 1.280000e+02 : f32
    %285 = vector.broadcast %cst_83 : f32 to vector<8x128xf32>
    %286 = arith.select %284, %33, %285 : vector<8x128xi1>, vector<8x128xf32>
    %cst_84 = arith.constant dense<0x7F800000> : vector<8xf32>
    %287 = vector.multi_reduction <minimumf>, %286, %cst_84 [1] : vector<8x128xf32> to vector<8xf32>
    %288 = vector.shape_cast %287 : vector<8xf32> to vector<8x1xf32>
    %289 = vector.broadcast %288 : vector<8x1xf32> to vector<8x128xf32>
    %290 = arith.cmpf oeq, %33, %289 : vector<8x128xf32>
    %291 = arith.extui %290 : vector<8x128xi1> to vector<8x128xi32>
    %292 = arith.sitofp %291 : vector<8x128xi32> to vector<8x128xf32>
    %c2_85 = arith.constant 2 : index
    %c0_86 = arith.constant 0 : index
    %c0_87 = arith.constant 0 : index
    %293 = vector.load %arg12[%c2_85, %c0_86, %c0_87] : memref<8x8x128xf32, #tpu.memory_space<vmem>>, vector<1x8x128xf32>
    %294 = vector.shape_cast %293 : vector<1x8x128xf32> to vector<8x128xf32>
    %295 = vector.shape_cast %274 : vector<8x128xf32> to vector<1x8x128xf32>
    tpu.vector_store %arg12[%c2_85, %c0_86, %c0_87], %295 {strides = array<i32>} : memref<8x8x128xf32, #tpu.memory_space<vmem>>, vector<1x8x128xf32>,
    %296 = arith.truncf %243 : vector<8x32xf32> to vector<8x32xbf16>
    %cst_88 = arith.constant dense<0.000000e+00> : vector<8x128xf32>
    %297 = tpu.matmul %296, %17, %cst_88 {dimension_numbers = #tpu.dot_dimension_numbers<[1], [0], [0], [1], [0, 0, 1, 1], [], []>} : vector<8x32xbf16>, vector<32x128xbf16>, vector<8x128xf32> -> vector<8x128xf32>
    %298 = arith.addf %297, %23 : vector<8x128xf32>
    %299 = arith.truncf %271 : vector<8x32xf32> to vector<8x32xbf16>
    %cst_89 = arith.constant dense<0.000000e+00> : vector<8x128xf32>
    %300 = tpu.matmul %299, %19, %cst_89 {dimension_numbers = #tpu.dot_dimension_numbers<[1], [0], [0], [1], [0, 0, 1, 1], [], []>} : vector<8x32xbf16>, vector<32x128xbf16>, vector<8x128xf32> -> vector<8x128xf32>
    %301 = arith.addf %300, %27 : vector<8x128xf32>
    %302 = arith.truncf %292 : vector<8x128xf32> to vector<8x128xbf16>
    %cst_90 = arith.constant dense<0.000000e+00> : vector<8x128xf32>
    %303 = tpu.matmul %302, %13, %cst_90 {dimension_numbers = #tpu.dot_dimension_numbers<[1], [0], [0], [1], [0, 0, 1, 1], [], []>} : vector<8x128xbf16>, vector<128x128xbf16>, vector<8x128xf32> -> vector<8x128xf32>
    %304 = arith.addf %303, %298 : vector<8x128xf32>
    %305 = vector.extract_strided_slice %304 {offsets = [0, 0], sizes = [8, 32], strides = [1, 1]} : vector<8x128xf32> to vector<8x32xf32>
    %306 = arith.negf %305 : vector<8x32xf32>
    %307 = math.exp %306 : vector<8x32xf32>
    %cst_91 = arith.constant 1.000000e+00 : f32
    %308 = vector.broadcast %cst_91 : f32 to vector<8x32xf32>
    %309 = arith.addf %308, %307 : vector<8x32xf32>
    %310 = arith.divf %308, %309 : vector<8x32xf32>
    %311 = vector.extract_strided_slice %304 {offsets = [0, 32], sizes = [8, 32], strides = [1, 1]} : vector<8x128xf32> to vector<8x32xf32>
    %312 = arith.negf %311 : vector<8x32xf32>
    %313 = math.exp %312 : vector<8x32xf32>
    %cst_92 = arith.constant 1.000000e+00 : f32
    %314 = vector.broadcast %cst_92 : f32 to vector<8x32xf32>
    %315 = arith.addf %314, %313 : vector<8x32xf32>
    %316 = arith.divf %314, %315 : vector<8x32xf32>
    %317 = vector.extract_strided_slice %304 {offsets = [0, 64], sizes = [8, 32], strides = [1, 1]} : vector<8x128xf32> to vector<8x32xf32>
    %318 = math.tanh %317 : vector<8x32xf32>
    %319 = vector.extract_strided_slice %304 {offsets = [0, 96], sizes = [8, 32], strides = [1, 1]} : vector<8x128xf32> to vector<8x32xf32>
    %320 = arith.negf %319 : vector<8x32xf32>
    %321 = math.exp %320 : vector<8x32xf32>
    %cst_93 = arith.constant 1.000000e+00 : f32
    %322 = vector.broadcast %cst_93 : f32 to vector<8x32xf32>
    %323 = arith.addf %322, %321 : vector<8x32xf32>
    %324 = arith.divf %322, %323 : vector<8x32xf32>
    %325 = arith.mulf %316, %241 : vector<8x32xf32>
    %326 = arith.mulf %310, %318 : vector<8x32xf32>
    %327 = arith.addf %325, %326 : vector<8x32xf32>
    %328 = math.tanh %327 : vector<8x32xf32>
    %329 = arith.mulf %324, %328 : vector<8x32xf32>
    %330 = arith.truncf %329 : vector<8x32xf32> to vector<8x32xbf16>
    %cst_94 = arith.constant dense<0.000000e+00> : vector<8x128xf32>
    %331 = tpu.matmul %330, %15, %cst_94 {dimension_numbers = #tpu.dot_dimension_numbers<[1], [0], [0], [1], [0, 0, 1, 1], [], []>} : vector<8x32xbf16>, vector<32x128xbf16>, vector<8x128xf32> -> vector<8x128xf32>
    %332 = arith.addf %331, %301 : vector<8x128xf32>
    %333 = vector.extract_strided_slice %332 {offsets = [0, 0], sizes = [8, 32], strides = [1, 1]} : vector<8x128xf32> to vector<8x32xf32>
    %334 = arith.negf %333 : vector<8x32xf32>
    %335 = math.exp %334 : vector<8x32xf32>
    %cst_95 = arith.constant 1.000000e+00 : f32
    %336 = vector.broadcast %cst_95 : f32 to vector<8x32xf32>
    %337 = arith.addf %336, %335 : vector<8x32xf32>
    %338 = arith.divf %336, %337 : vector<8x32xf32>
    %339 = vector.extract_strided_slice %332 {offsets = [0, 32], sizes = [8, 32], strides = [1, 1]} : vector<8x128xf32> to vector<8x32xf32>
    %340 = arith.negf %339 : vector<8x32xf32>
    %341 = math.exp %340 : vector<8x32xf32>
    %cst_96 = arith.constant 1.000000e+00 : f32
    %342 = vector.broadcast %cst_96 : f32 to vector<8x32xf32>
    %343 = arith.addf %342, %341 : vector<8x32xf32>
    %344 = arith.divf %342, %343 : vector<8x32xf32>
    %345 = vector.extract_strided_slice %332 {offsets = [0, 64], sizes = [8, 32], strides = [1, 1]} : vector<8x128xf32> to vector<8x32xf32>
    %346 = math.tanh %345 : vector<8x32xf32>
    %347 = vector.extract_strided_slice %332 {offsets = [0, 96], sizes = [8, 32], strides = [1, 1]} : vector<8x128xf32> to vector<8x32xf32>
    %348 = arith.negf %347 : vector<8x32xf32>
    %349 = math.exp %348 : vector<8x32xf32>
    %cst_97 = arith.constant 1.000000e+00 : f32
    %350 = vector.broadcast %cst_97 : f32 to vector<8x32xf32>
    %351 = arith.addf %350, %349 : vector<8x32xf32>
    %352 = arith.divf %350, %351 : vector<8x32xf32>
    %353 = arith.mulf %344, %269 : vector<8x32xf32>
    %354 = arith.mulf %338, %346 : vector<8x32xf32>
    %355 = arith.addf %353, %354 : vector<8x32xf32>
    %356 = math.tanh %355 : vector<8x32xf32>
    %357 = arith.mulf %352, %356 : vector<8x32xf32>
    %358 = arith.truncf %357 : vector<8x32xf32> to vector<8x32xbf16>
    %cst_98 = arith.constant dense<0.000000e+00> : vector<8x128xf32>
    %359 = tpu.matmul %358, %28, %cst_98 {dimension_numbers = #tpu.dot_dimension_numbers<[1], [0], [0], [1], [0, 0, 1, 1], [], []>} : vector<8x32xbf16>, vector<32x128xbf16>, vector<8x128xf32> -> vector<8x128xf32>
    %360 = arith.addf %359, %31 : vector<8x128xf32>
    %c3 = arith.constant 3 : index
    %c0_99 = arith.constant 0 : index
    %c0_100 = arith.constant 0 : index
    %361 = vector.load %arg10[%c3, %c0_99, %c0_100] : memref<8x8x128xi8, #tpu.memory_space<vmem>>, vector<1x8x128xi8>
    %362 = vector.shape_cast %361 : vector<1x8x128xi8> to vector<8x128xi8>
    %363 = arith.sitofp %362 : vector<8x128xi8> to vector<8x128xf32>
    %cst_101 = arith.constant -1.000000e+08 : f32
    %364 = vector.broadcast %cst_101 : f32 to vector<8x128xf32>
    %365 = arith.mulf %363, %364 : vector<8x128xf32>
    %366 = arith.addf %360, %365 : vector<8x128xf32>
    %cst_102 = arith.constant dense<0xFF800000> : vector<8xf32>
    %367 = vector.multi_reduction <maximumf>, %366, %cst_102 [1] : vector<8x128xf32> to vector<8xf32>
    %368 = vector.shape_cast %367 : vector<8xf32> to vector<8x1xf32>
    %369 = vector.broadcast %368 : vector<8x1xf32> to vector<8x128xf32>
    %370 = arith.cmpf oeq, %366, %369 : vector<8x128xf32>
    %cst_103 = arith.constant 1.280000e+02 : f32
    %371 = vector.broadcast %cst_103 : f32 to vector<8x128xf32>
    %372 = arith.select %370, %33, %371 : vector<8x128xi1>, vector<8x128xf32>
    %cst_104 = arith.constant dense<0x7F800000> : vector<8xf32>
    %373 = vector.multi_reduction <minimumf>, %372, %cst_104 [1] : vector<8x128xf32> to vector<8xf32>
    %374 = vector.shape_cast %373 : vector<8xf32> to vector<8x1xf32>
    %375 = vector.broadcast %374 : vector<8x1xf32> to vector<8x128xf32>
    %376 = arith.cmpf oeq, %33, %375 : vector<8x128xf32>
    %377 = arith.extui %376 : vector<8x128xi1> to vector<8x128xi32>
    %378 = arith.sitofp %377 : vector<8x128xi32> to vector<8x128xf32>
    %c3_105 = arith.constant 3 : index
    %c0_106 = arith.constant 0 : index
    %c0_107 = arith.constant 0 : index
    %379 = vector.load %arg12[%c3_105, %c0_106, %c0_107] : memref<8x8x128xf32, #tpu.memory_space<vmem>>, vector<1x8x128xf32>
    %380 = vector.shape_cast %379 : vector<1x8x128xf32> to vector<8x128xf32>
    %381 = vector.shape_cast %360 : vector<8x128xf32> to vector<1x8x128xf32>
    tpu.vector_store %arg12[%c3_105, %c0_106, %c0_107], %381 {strides = array<i32>} : memref<8x8x128xf32, #tpu.memory_space<vmem>>, vector<1x8x128xf32>,
    %382 = arith.truncf %329 : vector<8x32xf32> to vector<8x32xbf16>
    %cst_108 = arith.constant dense<0.000000e+00> : vector<8x128xf32>
    %383 = tpu.matmul %382, %17, %cst_108 {dimension_numbers = #tpu.dot_dimension_numbers<[1], [0], [0], [1], [0, 0, 1, 1], [], []>} : vector<8x32xbf16>, vector<32x128xbf16>, vector<8x128xf32> -> vector<8x128xf32>
    %384 = arith.addf %383, %23 : vector<8x128xf32>
    %385 = arith.truncf %357 : vector<8x32xf32> to vector<8x32xbf16>
    %cst_109 = arith.constant dense<0.000000e+00> : vector<8x128xf32>
    %386 = tpu.matmul %385, %19, %cst_109 {dimension_numbers = #tpu.dot_dimension_numbers<[1], [0], [0], [1], [0, 0, 1, 1], [], []>} : vector<8x32xbf16>, vector<32x128xbf16>, vector<8x128xf32> -> vector<8x128xf32>
    %387 = arith.addf %386, %27 : vector<8x128xf32>
    %388 = arith.truncf %378 : vector<8x128xf32> to vector<8x128xbf16>
    %cst_110 = arith.constant dense<0.000000e+00> : vector<8x128xf32>
    %389 = tpu.matmul %388, %13, %cst_110 {dimension_numbers = #tpu.dot_dimension_numbers<[1], [0], [0], [1], [0, 0, 1, 1], [], []>} : vector<8x128xbf16>, vector<128x128xbf16>, vector<8x128xf32> -> vector<8x128xf32>
    %390 = arith.addf %389, %384 : vector<8x128xf32>
    %391 = vector.extract_strided_slice %390 {offsets = [0, 0], sizes = [8, 32], strides = [1, 1]} : vector<8x128xf32> to vector<8x32xf32>
    %392 = arith.negf %391 : vector<8x32xf32>
    %393 = math.exp %392 : vector<8x32xf32>
    %cst_111 = arith.constant 1.000000e+00 : f32
    %394 = vector.broadcast %cst_111 : f32 to vector<8x32xf32>
    %395 = arith.addf %394, %393 : vector<8x32xf32>
    %396 = arith.divf %394, %395 : vector<8x32xf32>
    %397 = vector.extract_strided_slice %390 {offsets = [0, 32], sizes = [8, 32], strides = [1, 1]} : vector<8x128xf32> to vector<8x32xf32>
    %398 = arith.negf %397 : vector<8x32xf32>
    %399 = math.exp %398 : vector<8x32xf32>
    %cst_112 = arith.constant 1.000000e+00 : f32
    %400 = vector.broadcast %cst_112 : f32 to vector<8x32xf32>
    %401 = arith.addf %400, %399 : vector<8x32xf32>
    %402 = arith.divf %400, %401 : vector<8x32xf32>
    %403 = vector.extract_strided_slice %390 {offsets = [0, 64], sizes = [8, 32], strides = [1, 1]} : vector<8x128xf32> to vector<8x32xf32>
    %404 = math.tanh %403 : vector<8x32xf32>
    %405 = vector.extract_strided_slice %390 {offsets = [0, 96], sizes = [8, 32], strides = [1, 1]} : vector<8x128xf32> to vector<8x32xf32>
    %406 = arith.negf %405 : vector<8x32xf32>
    %407 = math.exp %406 : vector<8x32xf32>
    %cst_113 = arith.constant 1.000000e+00 : f32
    %408 = vector.broadcast %cst_113 : f32 to vector<8x32xf32>
    %409 = arith.addf %408, %407 : vector<8x32xf32>
    %410 = arith.divf %408, %409 : vector<8x32xf32>
    %411 = arith.mulf %402, %327 : vector<8x32xf32>
    %412 = arith.mulf %396, %404 : vector<8x32xf32>
    %413 = arith.addf %411, %412 : vector<8x32xf32>
    %414 = math.tanh %413 : vector<8x32xf32>
    %415 = arith.mulf %410, %414 : vector<8x32xf32>
    %416 = arith.truncf %415 : vector<8x32xf32> to vector<8x32xbf16>
    %cst_114 = arith.constant dense<0.000000e+00> : vector<8x128xf32>
    %417 = tpu.matmul %416, %15, %cst_114 {dimension_numbers = #tpu.dot_dimension_numbers<[1], [0], [0], [1], [0, 0, 1, 1], [], []>} : vector<8x32xbf16>, vector<32x128xbf16>, vector<8x128xf32> -> vector<8x128xf32>
    %418 = arith.addf %417, %387 : vector<8x128xf32>
    %419 = vector.extract_strided_slice %418 {offsets = [0, 0], sizes = [8, 32], strides = [1, 1]} : vector<8x128xf32> to vector<8x32xf32>
    %420 = arith.negf %419 : vector<8x32xf32>
    %421 = math.exp %420 : vector<8x32xf32>
    %cst_115 = arith.constant 1.000000e+00 : f32
    %422 = vector.broadcast %cst_115 : f32 to vector<8x32xf32>
    %423 = arith.addf %422, %421 : vector<8x32xf32>
    %424 = arith.divf %422, %423 : vector<8x32xf32>
    %425 = vector.extract_strided_slice %418 {offsets = [0, 32], sizes = [8, 32], strides = [1, 1]} : vector<8x128xf32> to vector<8x32xf32>
    %426 = arith.negf %425 : vector<8x32xf32>
    %427 = math.exp %426 : vector<8x32xf32>
    %cst_116 = arith.constant 1.000000e+00 : f32
    %428 = vector.broadcast %cst_116 : f32 to vector<8x32xf32>
    %429 = arith.addf %428, %427 : vector<8x32xf32>
    %430 = arith.divf %428, %429 : vector<8x32xf32>
    %431 = vector.extract_strided_slice %418 {offsets = [0, 64], sizes = [8, 32], strides = [1, 1]} : vector<8x128xf32> to vector<8x32xf32>
    %432 = math.tanh %431 : vector<8x32xf32>
    %433 = vector.extract_strided_slice %418 {offsets = [0, 96], sizes = [8, 32], strides = [1, 1]} : vector<8x128xf32> to vector<8x32xf32>
    %434 = arith.negf %433 : vector<8x32xf32>
    %435 = math.exp %434 : vector<8x32xf32>
    %cst_117 = arith.constant 1.000000e+00 : f32
    %436 = vector.broadcast %cst_117 : f32 to vector<8x32xf32>
    %437 = arith.addf %436, %435 : vector<8x32xf32>
    %438 = arith.divf %436, %437 : vector<8x32xf32>
    %439 = arith.mulf %430, %355 : vector<8x32xf32>
    %440 = arith.mulf %424, %432 : vector<8x32xf32>
    %441 = arith.addf %439, %440 : vector<8x32xf32>
    %442 = math.tanh %441 : vector<8x32xf32>
    %443 = arith.mulf %438, %442 : vector<8x32xf32>
    %444 = arith.truncf %443 : vector<8x32xf32> to vector<8x32xbf16>
    %cst_118 = arith.constant dense<0.000000e+00> : vector<8x128xf32>
    %445 = tpu.matmul %444, %28, %cst_118 {dimension_numbers = #tpu.dot_dimension_numbers<[1], [0], [0], [1], [0, 0, 1, 1], [], []>} : vector<8x32xbf16>, vector<32x128xbf16>, vector<8x128xf32> -> vector<8x128xf32>
    %446 = arith.addf %445, %31 : vector<8x128xf32>
    %c4 = arith.constant 4 : index
    %c0_119 = arith.constant 0 : index
    %c0_120 = arith.constant 0 : index
    %447 = vector.load %arg10[%c4, %c0_119, %c0_120] : memref<8x8x128xi8, #tpu.memory_space<vmem>>, vector<1x8x128xi8>
    %448 = vector.shape_cast %447 : vector<1x8x128xi8> to vector<8x128xi8>
    %449 = arith.sitofp %448 : vector<8x128xi8> to vector<8x128xf32>
    %cst_121 = arith.constant -1.000000e+08 : f32
    %450 = vector.broadcast %cst_121 : f32 to vector<8x128xf32>
    %451 = arith.mulf %449, %450 : vector<8x128xf32>
    %452 = arith.addf %446, %451 : vector<8x128xf32>
    %cst_122 = arith.constant dense<0xFF800000> : vector<8xf32>
    %453 = vector.multi_reduction <maximumf>, %452, %cst_122 [1] : vector<8x128xf32> to vector<8xf32>
    %454 = vector.shape_cast %453 : vector<8xf32> to vector<8x1xf32>
    %455 = vector.broadcast %454 : vector<8x1xf32> to vector<8x128xf32>
    %456 = arith.cmpf oeq, %452, %455 : vector<8x128xf32>
    %cst_123 = arith.constant 1.280000e+02 : f32
    %457 = vector.broadcast %cst_123 : f32 to vector<8x128xf32>
    %458 = arith.select %456, %33, %457 : vector<8x128xi1>, vector<8x128xf32>
    %cst_124 = arith.constant dense<0x7F800000> : vector<8xf32>
    %459 = vector.multi_reduction <minimumf>, %458, %cst_124 [1] : vector<8x128xf32> to vector<8xf32>
    %460 = vector.shape_cast %459 : vector<8xf32> to vector<8x1xf32>
    %461 = vector.broadcast %460 : vector<8x1xf32> to vector<8x128xf32>
    %462 = arith.cmpf oeq, %33, %461 : vector<8x128xf32>
    %463 = arith.extui %462 : vector<8x128xi1> to vector<8x128xi32>
    %464 = arith.sitofp %463 : vector<8x128xi32> to vector<8x128xf32>
    %c4_125 = arith.constant 4 : index
    %c0_126 = arith.constant 0 : index
    %c0_127 = arith.constant 0 : index
    %465 = vector.load %arg12[%c4_125, %c0_126, %c0_127] : memref<8x8x128xf32, #tpu.memory_space<vmem>>, vector<1x8x128xf32>
    %466 = vector.shape_cast %465 : vector<1x8x128xf32> to vector<8x128xf32>
    %467 = vector.shape_cast %446 : vector<8x128xf32> to vector<1x8x128xf32>
    tpu.vector_store %arg12[%c4_125, %c0_126, %c0_127], %467 {strides = array<i32>} : memref<8x8x128xf32, #tpu.memory_space<vmem>>, vector<1x8x128xf32>,
    %468 = arith.truncf %415 : vector<8x32xf32> to vector<8x32xbf16>
    %cst_128 = arith.constant dense<0.000000e+00> : vector<8x128xf32>
    %469 = tpu.matmul %468, %17, %cst_128 {dimension_numbers = #tpu.dot_dimension_numbers<[1], [0], [0], [1], [0, 0, 1, 1], [], []>} : vector<8x32xbf16>, vector<32x128xbf16>, vector<8x128xf32> -> vector<8x128xf32>
    %470 = arith.addf %469, %23 : vector<8x128xf32>
    %471 = arith.truncf %443 : vector<8x32xf32> to vector<8x32xbf16>
    %cst_129 = arith.constant dense<0.000000e+00> : vector<8x128xf32>
    %472 = tpu.matmul %471, %19, %cst_129 {dimension_numbers = #tpu.dot_dimension_numbers<[1], [0], [0], [1], [0, 0, 1, 1], [], []>} : vector<8x32xbf16>, vector<32x128xbf16>, vector<8x128xf32> -> vector<8x128xf32>
    %473 = arith.addf %472, %27 : vector<8x128xf32>
    %474 = arith.truncf %464 : vector<8x128xf32> to vector<8x128xbf16>
    %cst_130 = arith.constant dense<0.000000e+00> : vector<8x128xf32>
    %475 = tpu.matmul %474, %13, %cst_130 {dimension_numbers = #tpu.dot_dimension_numbers<[1], [0], [0], [1], [0, 0, 1, 1], [], []>} : vector<8x128xbf16>, vector<128x128xbf16>, vector<8x128xf32> -> vector<8x128xf32>
    %476 = arith.addf %475, %470 : vector<8x128xf32>
    %477 = vector.extract_strided_slice %476 {offsets = [0, 0], sizes = [8, 32], strides = [1, 1]} : vector<8x128xf32> to vector<8x32xf32>
    %478 = arith.negf %477 : vector<8x32xf32>
    %479 = math.exp %478 : vector<8x32xf32>
    %cst_131 = arith.constant 1.000000e+00 : f32
    %480 = vector.broadcast %cst_131 : f32 to vector<8x32xf32>
    %481 = arith.addf %480, %479 : vector<8x32xf32>
    %482 = arith.divf %480, %481 : vector<8x32xf32>
    %483 = vector.extract_strided_slice %476 {offsets = [0, 32], sizes = [8, 32], strides = [1, 1]} : vector<8x128xf32> to vector<8x32xf32>
    %484 = arith.negf %483 : vector<8x32xf32>
    %485 = math.exp %484 : vector<8x32xf32>
    %cst_132 = arith.constant 1.000000e+00 : f32
    %486 = vector.broadcast %cst_132 : f32 to vector<8x32xf32>
    %487 = arith.addf %486, %485 : vector<8x32xf32>
    %488 = arith.divf %486, %487 : vector<8x32xf32>
    %489 = vector.extract_strided_slice %476 {offsets = [0, 64], sizes = [8, 32], strides = [1, 1]} : vector<8x128xf32> to vector<8x32xf32>
    %490 = math.tanh %489 : vector<8x32xf32>
    %491 = vector.extract_strided_slice %476 {offsets = [0, 96], sizes = [8, 32], strides = [1, 1]} : vector<8x128xf32> to vector<8x32xf32>
    %492 = arith.negf %491 : vector<8x32xf32>
    %493 = math.exp %492 : vector<8x32xf32>
    %cst_133 = arith.constant 1.000000e+00 : f32
    %494 = vector.broadcast %cst_133 : f32 to vector<8x32xf32>
    %495 = arith.addf %494, %493 : vector<8x32xf32>
    %496 = arith.divf %494, %495 : vector<8x32xf32>
    %497 = arith.mulf %488, %413 : vector<8x32xf32>
    %498 = arith.mulf %482, %490 : vector<8x32xf32>
    %499 = arith.addf %497, %498 : vector<8x32xf32>
    %500 = math.tanh %499 : vector<8x32xf32>
    %501 = arith.mulf %496, %500 : vector<8x32xf32>
    %502 = arith.truncf %501 : vector<8x32xf32> to vector<8x32xbf16>
    %cst_134 = arith.constant dense<0.000000e+00> : vector<8x128xf32>
    %503 = tpu.matmul %502, %15, %cst_134 {dimension_numbers = #tpu.dot_dimension_numbers<[1], [0], [0], [1], [0, 0, 1, 1], [], []>} : vector<8x32xbf16>, vector<32x128xbf16>, vector<8x128xf32> -> vector<8x128xf32>
    %504 = arith.addf %503, %473 : vector<8x128xf32>
    %505 = vector.extract_strided_slice %504 {offsets = [0, 0], sizes = [8, 32], strides = [1, 1]} : vector<8x128xf32> to vector<8x32xf32>
    %506 = arith.negf %505 : vector<8x32xf32>
    %507 = math.exp %506 : vector<8x32xf32>
    %cst_135 = arith.constant 1.000000e+00 : f32
    %508 = vector.broadcast %cst_135 : f32 to vector<8x32xf32>
    %509 = arith.addf %508, %507 : vector<8x32xf32>
    %510 = arith.divf %508, %509 : vector<8x32xf32>
    %511 = vector.extract_strided_slice %504 {offsets = [0, 32], sizes = [8, 32], strides = [1, 1]} : vector<8x128xf32> to vector<8x32xf32>
    %512 = arith.negf %511 : vector<8x32xf32>
    %513 = math.exp %512 : vector<8x32xf32>
    %cst_136 = arith.constant 1.000000e+00 : f32
    %514 = vector.broadcast %cst_136 : f32 to vector<8x32xf32>
    %515 = arith.addf %514, %513 : vector<8x32xf32>
    %516 = arith.divf %514, %515 : vector<8x32xf32>
    %517 = vector.extract_strided_slice %504 {offsets = [0, 64], sizes = [8, 32], strides = [1, 1]} : vector<8x128xf32> to vector<8x32xf32>
    %518 = math.tanh %517 : vector<8x32xf32>
    %519 = vector.extract_strided_slice %504 {offsets = [0, 96], sizes = [8, 32], strides = [1, 1]} : vector<8x128xf32> to vector<8x32xf32>
    %520 = arith.negf %519 : vector<8x32xf32>
    %521 = math.exp %520 : vector<8x32xf32>
    %cst_137 = arith.constant 1.000000e+00 : f32
    %522 = vector.broadcast %cst_137 : f32 to vector<8x32xf32>
    %523 = arith.addf %522, %521 : vector<8x32xf32>
    %524 = arith.divf %522, %523 : vector<8x32xf32>
    %525 = arith.mulf %516, %441 : vector<8x32xf32>
    %526 = arith.mulf %510, %518 : vector<8x32xf32>
    %527 = arith.addf %525, %526 : vector<8x32xf32>
    %528 = math.tanh %527 : vector<8x32xf32>
    %529 = arith.mulf %524, %528 : vector<8x32xf32>
    %530 = arith.truncf %529 : vector<8x32xf32> to vector<8x32xbf16>
    %cst_138 = arith.constant dense<0.000000e+00> : vector<8x128xf32>
    %531 = tpu.matmul %530, %28, %cst_138 {dimension_numbers = #tpu.dot_dimension_numbers<[1], [0], [0], [1], [0, 0, 1, 1], [], []>} : vector<8x32xbf16>, vector<32x128xbf16>, vector<8x128xf32> -> vector<8x128xf32>
    %532 = arith.addf %531, %31 : vector<8x128xf32>
    %c5 = arith.constant 5 : index
    %c0_139 = arith.constant 0 : index
    %c0_140 = arith.constant 0 : index
    %533 = vector.load %arg10[%c5, %c0_139, %c0_140] : memref<8x8x128xi8, #tpu.memory_space<vmem>>, vector<1x8x128xi8>
    %534 = vector.shape_cast %533 : vector<1x8x128xi8> to vector<8x128xi8>
    %535 = arith.sitofp %534 : vector<8x128xi8> to vector<8x128xf32>
    %cst_141 = arith.constant -1.000000e+08 : f32
    %536 = vector.broadcast %cst_141 : f32 to vector<8x128xf32>
    %537 = arith.mulf %535, %536 : vector<8x128xf32>
    %538 = arith.addf %532, %537 : vector<8x128xf32>
    %cst_142 = arith.constant dense<0xFF800000> : vector<8xf32>
    %539 = vector.multi_reduction <maximumf>, %538, %cst_142 [1] : vector<8x128xf32> to vector<8xf32>
    %540 = vector.shape_cast %539 : vector<8xf32> to vector<8x1xf32>
    %541 = vector.broadcast %540 : vector<8x1xf32> to vector<8x128xf32>
    %542 = arith.cmpf oeq, %538, %541 : vector<8x128xf32>
    %cst_143 = arith.constant 1.280000e+02 : f32
    %543 = vector.broadcast %cst_143 : f32 to vector<8x128xf32>
    %544 = arith.select %542, %33, %543 : vector<8x128xi1>, vector<8x128xf32>
    %cst_144 = arith.constant dense<0x7F800000> : vector<8xf32>
    %545 = vector.multi_reduction <minimumf>, %544, %cst_144 [1] : vector<8x128xf32> to vector<8xf32>
    %546 = vector.shape_cast %545 : vector<8xf32> to vector<8x1xf32>
    %547 = vector.broadcast %546 : vector<8x1xf32> to vector<8x128xf32>
    %548 = arith.cmpf oeq, %33, %547 : vector<8x128xf32>
    %549 = arith.extui %548 : vector<8x128xi1> to vector<8x128xi32>
    %550 = arith.sitofp %549 : vector<8x128xi32> to vector<8x128xf32>
    %c5_145 = arith.constant 5 : index
    %c0_146 = arith.constant 0 : index
    %c0_147 = arith.constant 0 : index
    %551 = vector.load %arg12[%c5_145, %c0_146, %c0_147] : memref<8x8x128xf32, #tpu.memory_space<vmem>>, vector<1x8x128xf32>
    %552 = vector.shape_cast %551 : vector<1x8x128xf32> to vector<8x128xf32>
    %553 = vector.shape_cast %532 : vector<8x128xf32> to vector<1x8x128xf32>
    tpu.vector_store %arg12[%c5_145, %c0_146, %c0_147], %553 {strides = array<i32>} : memref<8x8x128xf32, #tpu.memory_space<vmem>>, vector<1x8x128xf32>,
    %554 = arith.truncf %501 : vector<8x32xf32> to vector<8x32xbf16>
    %cst_148 = arith.constant dense<0.000000e+00> : vector<8x128xf32>
    %555 = tpu.matmul %554, %17, %cst_148 {dimension_numbers = #tpu.dot_dimension_numbers<[1], [0], [0], [1], [0, 0, 1, 1], [], []>} : vector<8x32xbf16>, vector<32x128xbf16>, vector<8x128xf32> -> vector<8x128xf32>
    %556 = arith.addf %555, %23 : vector<8x128xf32>
    %557 = arith.truncf %529 : vector<8x32xf32> to vector<8x32xbf16>
    %cst_149 = arith.constant dense<0.000000e+00> : vector<8x128xf32>
    %558 = tpu.matmul %557, %19, %cst_149 {dimension_numbers = #tpu.dot_dimension_numbers<[1], [0], [0], [1], [0, 0, 1, 1], [], []>} : vector<8x32xbf16>, vector<32x128xbf16>, vector<8x128xf32> -> vector<8x128xf32>
    %559 = arith.addf %558, %27 : vector<8x128xf32>
    %560 = arith.truncf %550 : vector<8x128xf32> to vector<8x128xbf16>
    %cst_150 = arith.constant dense<0.000000e+00> : vector<8x128xf32>
    %561 = tpu.matmul %560, %13, %cst_150 {dimension_numbers = #tpu.dot_dimension_numbers<[1], [0], [0], [1], [0, 0, 1, 1], [], []>} : vector<8x128xbf16>, vector<128x128xbf16>, vector<8x128xf32> -> vector<8x128xf32>
    %562 = arith.addf %561, %556 : vector<8x128xf32>
    %563 = vector.extract_strided_slice %562 {offsets = [0, 0], sizes = [8, 32], strides = [1, 1]} : vector<8x128xf32> to vector<8x32xf32>
    %564 = arith.negf %563 : vector<8x32xf32>
    %565 = math.exp %564 : vector<8x32xf32>
    %cst_151 = arith.constant 1.000000e+00 : f32
    %566 = vector.broadcast %cst_151 : f32 to vector<8x32xf32>
    %567 = arith.addf %566, %565 : vector<8x32xf32>
    %568 = arith.divf %566, %567 : vector<8x32xf32>
    %569 = vector.extract_strided_slice %562 {offsets = [0, 32], sizes = [8, 32], strides = [1, 1]} : vector<8x128xf32> to vector<8x32xf32>
    %570 = arith.negf %569 : vector<8x32xf32>
    %571 = math.exp %570 : vector<8x32xf32>
    %cst_152 = arith.constant 1.000000e+00 : f32
    %572 = vector.broadcast %cst_152 : f32 to vector<8x32xf32>
    %573 = arith.addf %572, %571 : vector<8x32xf32>
    %574 = arith.divf %572, %573 : vector<8x32xf32>
    %575 = vector.extract_strided_slice %562 {offsets = [0, 64], sizes = [8, 32], strides = [1, 1]} : vector<8x128xf32> to vector<8x32xf32>
    %576 = math.tanh %575 : vector<8x32xf32>
    %577 = vector.extract_strided_slice %562 {offsets = [0, 96], sizes = [8, 32], strides = [1, 1]} : vector<8x128xf32> to vector<8x32xf32>
    %578 = arith.negf %577 : vector<8x32xf32>
    %579 = math.exp %578 : vector<8x32xf32>
    %cst_153 = arith.constant 1.000000e+00 : f32
    %580 = vector.broadcast %cst_153 : f32 to vector<8x32xf32>
    %581 = arith.addf %580, %579 : vector<8x32xf32>
    %582 = arith.divf %580, %581 : vector<8x32xf32>
    %583 = arith.mulf %574, %499 : vector<8x32xf32>
    %584 = arith.mulf %568, %576 : vector<8x32xf32>
    %585 = arith.addf %583, %584 : vector<8x32xf32>
    %586 = math.tanh %585 : vector<8x32xf32>
    %587 = arith.mulf %582, %586 : vector<8x32xf32>
    %588 = arith.truncf %587 : vector<8x32xf32> to vector<8x32xbf16>
    %cst_154 = arith.constant dense<0.000000e+00> : vector<8x128xf32>
    %589 = tpu.matmul %588, %15, %cst_154 {dimension_numbers = #tpu.dot_dimension_numbers<[1], [0], [0], [1], [0, 0, 1, 1], [], []>} : vector<8x32xbf16>, vector<32x128xbf16>, vector<8x128xf32> -> vector<8x128xf32>
    %590 = arith.addf %589, %559 : vector<8x128xf32>
    %591 = vector.extract_strided_slice %590 {offsets = [0, 0], sizes = [8, 32], strides = [1, 1]} : vector<8x128xf32> to vector<8x32xf32>
    %592 = arith.negf %591 : vector<8x32xf32>
    %593 = math.exp %592 : vector<8x32xf32>
    %cst_155 = arith.constant 1.000000e+00 : f32
    %594 = vector.broadcast %cst_155 : f32 to vector<8x32xf32>
    %595 = arith.addf %594, %593 : vector<8x32xf32>
    %596 = arith.divf %594, %595 : vector<8x32xf32>
    %597 = vector.extract_strided_slice %590 {offsets = [0, 32], sizes = [8, 32], strides = [1, 1]} : vector<8x128xf32> to vector<8x32xf32>
    %598 = arith.negf %597 : vector<8x32xf32>
    %599 = math.exp %598 : vector<8x32xf32>
    %cst_156 = arith.constant 1.000000e+00 : f32
    %600 = vector.broadcast %cst_156 : f32 to vector<8x32xf32>
    %601 = arith.addf %600, %599 : vector<8x32xf32>
    %602 = arith.divf %600, %601 : vector<8x32xf32>
    %603 = vector.extract_strided_slice %590 {offsets = [0, 64], sizes = [8, 32], strides = [1, 1]} : vector<8x128xf32> to vector<8x32xf32>
    %604 = math.tanh %603 : vector<8x32xf32>
    %605 = vector.extract_strided_slice %590 {offsets = [0, 96], sizes = [8, 32], strides = [1, 1]} : vector<8x128xf32> to vector<8x32xf32>
    %606 = arith.negf %605 : vector<8x32xf32>
    %607 = math.exp %606 : vector<8x32xf32>
    %cst_157 = arith.constant 1.000000e+00 : f32
    %608 = vector.broadcast %cst_157 : f32 to vector<8x32xf32>
    %609 = arith.addf %608, %607 : vector<8x32xf32>
    %610 = arith.divf %608, %609 : vector<8x32xf32>
    %611 = arith.mulf %602, %527 : vector<8x32xf32>
    %612 = arith.mulf %596, %604 : vector<8x32xf32>
    %613 = arith.addf %611, %612 : vector<8x32xf32>
    %614 = math.tanh %613 : vector<8x32xf32>
    %615 = arith.mulf %610, %614 : vector<8x32xf32>
    %616 = arith.truncf %615 : vector<8x32xf32> to vector<8x32xbf16>
    %cst_158 = arith.constant dense<0.000000e+00> : vector<8x128xf32>
    %617 = tpu.matmul %616, %28, %cst_158 {dimension_numbers = #tpu.dot_dimension_numbers<[1], [0], [0], [1], [0, 0, 1, 1], [], []>} : vector<8x32xbf16>, vector<32x128xbf16>, vector<8x128xf32> -> vector<8x128xf32>
    %618 = arith.addf %617, %31 : vector<8x128xf32>
    %c6 = arith.constant 6 : index
    %c0_159 = arith.constant 0 : index
    %c0_160 = arith.constant 0 : index
    %619 = vector.load %arg10[%c6, %c0_159, %c0_160] : memref<8x8x128xi8, #tpu.memory_space<vmem>>, vector<1x8x128xi8>
    %620 = vector.shape_cast %619 : vector<1x8x128xi8> to vector<8x128xi8>
    %621 = arith.sitofp %620 : vector<8x128xi8> to vector<8x128xf32>
    %cst_161 = arith.constant -1.000000e+08 : f32
    %622 = vector.broadcast %cst_161 : f32 to vector<8x128xf32>
    %623 = arith.mulf %621, %622 : vector<8x128xf32>
    %624 = arith.addf %618, %623 : vector<8x128xf32>
    %cst_162 = arith.constant dense<0xFF800000> : vector<8xf32>
    %625 = vector.multi_reduction <maximumf>, %624, %cst_162 [1] : vector<8x128xf32> to vector<8xf32>
    %626 = vector.shape_cast %625 : vector<8xf32> to vector<8x1xf32>
    %627 = vector.broadcast %626 : vector<8x1xf32> to vector<8x128xf32>
    %628 = arith.cmpf oeq, %624, %627 : vector<8x128xf32>
    %cst_163 = arith.constant 1.280000e+02 : f32
    %629 = vector.broadcast %cst_163 : f32 to vector<8x128xf32>
    %630 = arith.select %628, %33, %629 : vector<8x128xi1>, vector<8x128xf32>
    %cst_164 = arith.constant dense<0x7F800000> : vector<8xf32>
    %631 = vector.multi_reduction <minimumf>, %630, %cst_164 [1] : vector<8x128xf32> to vector<8xf32>
    %632 = vector.shape_cast %631 : vector<8xf32> to vector<8x1xf32>
    %633 = vector.broadcast %632 : vector<8x1xf32> to vector<8x128xf32>
    %634 = arith.cmpf oeq, %33, %633 : vector<8x128xf32>
    %635 = arith.extui %634 : vector<8x128xi1> to vector<8x128xi32>
    %636 = arith.sitofp %635 : vector<8x128xi32> to vector<8x128xf32>
    %c6_165 = arith.constant 6 : index
    %c0_166 = arith.constant 0 : index
    %c0_167 = arith.constant 0 : index
    %637 = vector.load %arg12[%c6_165, %c0_166, %c0_167] : memref<8x8x128xf32, #tpu.memory_space<vmem>>, vector<1x8x128xf32>
    %638 = vector.shape_cast %637 : vector<1x8x128xf32> to vector<8x128xf32>
    %639 = vector.shape_cast %618 : vector<8x128xf32> to vector<1x8x128xf32>
    tpu.vector_store %arg12[%c6_165, %c0_166, %c0_167], %639 {strides = array<i32>} : memref<8x8x128xf32, #tpu.memory_space<vmem>>, vector<1x8x128xf32>,
    %640 = arith.truncf %587 : vector<8x32xf32> to vector<8x32xbf16>
    %cst_168 = arith.constant dense<0.000000e+00> : vector<8x128xf32>
    %641 = tpu.matmul %640, %17, %cst_168 {dimension_numbers = #tpu.dot_dimension_numbers<[1], [0], [0], [1], [0, 0, 1, 1], [], []>} : vector<8x32xbf16>, vector<32x128xbf16>, vector<8x128xf32> -> vector<8x128xf32>
    %642 = arith.addf %641, %23 : vector<8x128xf32>
    %643 = arith.truncf %615 : vector<8x32xf32> to vector<8x32xbf16>
    %cst_169 = arith.constant dense<0.000000e+00> : vector<8x128xf32>
    %644 = tpu.matmul %643, %19, %cst_169 {dimension_numbers = #tpu.dot_dimension_numbers<[1], [0], [0], [1], [0, 0, 1, 1], [], []>} : vector<8x32xbf16>, vector<32x128xbf16>, vector<8x128xf32> -> vector<8x128xf32>
    %645 = arith.addf %644, %27 : vector<8x128xf32>
    %646 = arith.truncf %636 : vector<8x128xf32> to vector<8x128xbf16>
    %cst_170 = arith.constant dense<0.000000e+00> : vector<8x128xf32>
    %647 = tpu.matmul %646, %13, %cst_170 {dimension_numbers = #tpu.dot_dimension_numbers<[1], [0], [0], [1], [0, 0, 1, 1], [], []>} : vector<8x128xbf16>, vector<128x128xbf16>, vector<8x128xf32> -> vector<8x128xf32>
    %648 = arith.addf %647, %642 : vector<8x128xf32>
    %649 = vector.extract_strided_slice %648 {offsets = [0, 0], sizes = [8, 32], strides = [1, 1]} : vector<8x128xf32> to vector<8x32xf32>
    %650 = arith.negf %649 : vector<8x32xf32>
    %651 = math.exp %650 : vector<8x32xf32>
    %cst_171 = arith.constant 1.000000e+00 : f32
    %652 = vector.broadcast %cst_171 : f32 to vector<8x32xf32>
    %653 = arith.addf %652, %651 : vector<8x32xf32>
    %654 = arith.divf %652, %653 : vector<8x32xf32>
    %655 = vector.extract_strided_slice %648 {offsets = [0, 32], sizes = [8, 32], strides = [1, 1]} : vector<8x128xf32> to vector<8x32xf32>
    %656 = arith.negf %655 : vector<8x32xf32>
    %657 = math.exp %656 : vector<8x32xf32>
    %cst_172 = arith.constant 1.000000e+00 : f32
    %658 = vector.broadcast %cst_172 : f32 to vector<8x32xf32>
    %659 = arith.addf %658, %657 : vector<8x32xf32>
    %660 = arith.divf %658, %659 : vector<8x32xf32>
    %661 = vector.extract_strided_slice %648 {offsets = [0, 64], sizes = [8, 32], strides = [1, 1]} : vector<8x128xf32> to vector<8x32xf32>
    %662 = math.tanh %661 : vector<8x32xf32>
    %663 = vector.extract_strided_slice %648 {offsets = [0, 96], sizes = [8, 32], strides = [1, 1]} : vector<8x128xf32> to vector<8x32xf32>
    %664 = arith.negf %663 : vector<8x32xf32>
    %665 = math.exp %664 : vector<8x32xf32>
    %cst_173 = arith.constant 1.000000e+00 : f32
    %666 = vector.broadcast %cst_173 : f32 to vector<8x32xf32>
    %667 = arith.addf %666, %665 : vector<8x32xf32>
    %668 = arith.divf %666, %667 : vector<8x32xf32>
    %669 = arith.mulf %660, %585 : vector<8x32xf32>
    %670 = arith.mulf %654, %662 : vector<8x32xf32>
    %671 = arith.addf %669, %670 : vector<8x32xf32>
    %672 = math.tanh %671 : vector<8x32xf32>
    %673 = arith.mulf %668, %672 : vector<8x32xf32>
    %674 = arith.truncf %673 : vector<8x32xf32> to vector<8x32xbf16>
    %cst_174 = arith.constant dense<0.000000e+00> : vector<8x128xf32>
    %675 = tpu.matmul %674, %15, %cst_174 {dimension_numbers = #tpu.dot_dimension_numbers<[1], [0], [0], [1], [0, 0, 1, 1], [], []>} : vector<8x32xbf16>, vector<32x128xbf16>, vector<8x128xf32> -> vector<8x128xf32>
    %676 = arith.addf %675, %645 : vector<8x128xf32>
    %677 = vector.extract_strided_slice %676 {offsets = [0, 0], sizes = [8, 32], strides = [1, 1]} : vector<8x128xf32> to vector<8x32xf32>
    %678 = arith.negf %677 : vector<8x32xf32>
    %679 = math.exp %678 : vector<8x32xf32>
    %cst_175 = arith.constant 1.000000e+00 : f32
    %680 = vector.broadcast %cst_175 : f32 to vector<8x32xf32>
    %681 = arith.addf %680, %679 : vector<8x32xf32>
    %682 = arith.divf %680, %681 : vector<8x32xf32>
    %683 = vector.extract_strided_slice %676 {offsets = [0, 32], sizes = [8, 32], strides = [1, 1]} : vector<8x128xf32> to vector<8x32xf32>
    %684 = arith.negf %683 : vector<8x32xf32>
    %685 = math.exp %684 : vector<8x32xf32>
    %cst_176 = arith.constant 1.000000e+00 : f32
    %686 = vector.broadcast %cst_176 : f32 to vector<8x32xf32>
    %687 = arith.addf %686, %685 : vector<8x32xf32>
    %688 = arith.divf %686, %687 : vector<8x32xf32>
    %689 = vector.extract_strided_slice %676 {offsets = [0, 64], sizes = [8, 32], strides = [1, 1]} : vector<8x128xf32> to vector<8x32xf32>
    %690 = math.tanh %689 : vector<8x32xf32>
    %691 = vector.extract_strided_slice %676 {offsets = [0, 96], sizes = [8, 32], strides = [1, 1]} : vector<8x128xf32> to vector<8x32xf32>
    %692 = arith.negf %691 : vector<8x32xf32>
    %693 = math.exp %692 : vector<8x32xf32>
    %cst_177 = arith.constant 1.000000e+00 : f32
    %694 = vector.broadcast %cst_177 : f32 to vector<8x32xf32>
    %695 = arith.addf %694, %693 : vector<8x32xf32>
    %696 = arith.divf %694, %695 : vector<8x32xf32>
    %697 = arith.mulf %688, %613 : vector<8x32xf32>
    %698 = arith.mulf %682, %690 : vector<8x32xf32>
    %699 = arith.addf %697, %698 : vector<8x32xf32>
    %700 = math.tanh %699 : vector<8x32xf32>
    %701 = arith.mulf %696, %700 : vector<8x32xf32>
    %702 = arith.truncf %701 : vector<8x32xf32> to vector<8x32xbf16>
    %cst_178 = arith.constant dense<0.000000e+00> : vector<8x128xf32>
    %703 = tpu.matmul %702, %28, %cst_178 {dimension_numbers = #tpu.dot_dimension_numbers<[1], [0], [0], [1], [0, 0, 1, 1], [], []>} : vector<8x32xbf16>, vector<32x128xbf16>, vector<8x128xf32> -> vector<8x128xf32>
    %704 = arith.addf %703, %31 : vector<8x128xf32>
    %c7 = arith.constant 7 : index
    %c0_179 = arith.constant 0 : index
    %c0_180 = arith.constant 0 : index
    %705 = vector.load %arg10[%c7, %c0_179, %c0_180] : memref<8x8x128xi8, #tpu.memory_space<vmem>>, vector<1x8x128xi8>
    %706 = vector.shape_cast %705 : vector<1x8x128xi8> to vector<8x128xi8>
    %707 = arith.sitofp %706 : vector<8x128xi8> to vector<8x128xf32>
    %cst_181 = arith.constant -1.000000e+08 : f32
    %708 = vector.broadcast %cst_181 : f32 to vector<8x128xf32>
    %709 = arith.mulf %707, %708 : vector<8x128xf32>
    %710 = arith.addf %704, %709 : vector<8x128xf32>
    %cst_182 = arith.constant dense<0xFF800000> : vector<8xf32>
    %711 = vector.multi_reduction <maximumf>, %710, %cst_182 [1] : vector<8x128xf32> to vector<8xf32>
    %712 = vector.shape_cast %711 : vector<8xf32> to vector<8x1xf32>
    %713 = vector.broadcast %712 : vector<8x1xf32> to vector<8x128xf32>
    %714 = arith.cmpf oeq, %710, %713 : vector<8x128xf32>
    %cst_183 = arith.constant 1.280000e+02 : f32
    %715 = vector.broadcast %cst_183 : f32 to vector<8x128xf32>
    %716 = arith.select %714, %33, %715 : vector<8x128xi1>, vector<8x128xf32>
    %cst_184 = arith.constant dense<0x7F800000> : vector<8xf32>
    %717 = vector.multi_reduction <minimumf>, %716, %cst_184 [1] : vector<8x128xf32> to vector<8xf32>
    %718 = vector.shape_cast %717 : vector<8xf32> to vector<8x1xf32>
    %c7_185 = arith.constant 7 : index
    %c0_186 = arith.constant 0 : index
    %c0_187 = arith.constant 0 : index
    %719 = vector.load %arg12[%c7_185, %c0_186, %c0_187] : memref<8x8x128xf32, #tpu.memory_space<vmem>>, vector<1x8x128xf32>
    %720 = vector.shape_cast %719 : vector<1x8x128xf32> to vector<8x128xf32>
    %721 = vector.shape_cast %704 : vector<8x128xf32> to vector<1x8x128xf32>
    tpu.vector_store %arg12[%c7_185, %c0_186, %c0_187], %721 {strides = array<i32>} : memref<8x8x128xf32, #tpu.memory_space<vmem>>, vector<1x8x128xf32>,
    %722 = tpu.concatenate %116, %202, %288, %374, %460, %546, %632, %718 in 1 : vector<8x1xf32>, vector<8x1xf32>, vector<8x1xf32>, vector<8x1xf32>, vector<8x1xf32>, vector<8x1xf32>, vector<8x1xf32>, vector<8x1xf32> -> vector<8x8xf32>
    %723 = arith.fptosi %722 : vector<8x8xf32> to vector<8x8xi32>
    %c0_188 = arith.constant 0 : index
    %c0_189 = arith.constant 0 : index
    %724 = vector.load %arg11[%c0_188, %c0_189] : memref<8x8xi32, #tpu.memory_space<vmem>>, vector<8x8xi32>
    tpu.vector_store %arg11[%c0_188, %c0_189], %723 {strides = array<i32>} : memref<8x8xi32, #tpu.memory_space<vmem>>, vector<8x8xi32>,
    return
  }
  func.func @transform_0(%arg0: i32) -> (i32, i32) {
    %c0_i32 = arith.constant 0 : i32
    %c0_i32_0 = arith.constant 0 : i32
    return %arg0, %c0_i32 : i32, i32
  }
  func.func @transform_1(%arg0: i32) -> (i32, i32) {
    %c0_i32 = arith.constant 0 : i32
    %c0_i32_0 = arith.constant 0 : i32
    %c0_i32_1 = arith.constant 0 : i32
    return %c0_i32, %c0_i32_0 : i32, i32
  }
  func.func @transform_2(%arg0: i32) -> (i32, i32) {
    %c0_i32 = arith.constant 0 : i32
    %c0_i32_0 = arith.constant 0 : i32
    %c0_i32_1 = arith.constant 0 : i32
    return %c0_i32, %c0_i32_0 : i32, i32
  }
  func.func @transform_3(%arg0: i32) -> (i32, i32) {
    %c0_i32 = arith.constant 0 : i32
    %c0_i32_0 = arith.constant 0 : i32
    %c0_i32_1 = arith.constant 0 : i32
    return %c0_i32, %c0_i32_0 : i32, i32
  }
  func.func @transform_4(%arg0: i32) -> (i32, i32, i32) {
    %c0_i32 = arith.constant 0 : i32
    %c0_i32_0 = arith.constant 0 : i32
    %c0_i32_1 = arith.constant 0 : i32
    %c0_i32_2 = arith.constant 0 : i32
    return %c0_i32, %c0_i32_0, %c0_i32_1 : i32, i32, i32
  }
  func.func @transform_5(%arg0: i32) -> (i32, i32, i32) {
    %c0_i32 = arith.constant 0 : i32
    %c0_i32_0 = arith.constant 0 : i32
    %c0_i32_1 = arith.constant 0 : i32
    %c0_i32_2 = arith.constant 0 : i32
    return %c0_i32, %c0_i32_0, %c0_i32_1 : i32, i32, i32
  }
  func.func @transform_6(%arg0: i32) -> (i32, i32, i32) {
    %c0_i32 = arith.constant 0 : i32
    %c0_i32_0 = arith.constant 0 : i32
    %c0_i32_1 = arith.constant 0 : i32
    %c0_i32_2 = arith.constant 0 : i32
    return %c0_i32, %c0_i32_0, %c0_i32_1 : i32, i32, i32
  }
  func.func @transform_7(%arg0: i32) -> (i32, i32) {
    %c0_i32 = arith.constant 0 : i32
    %c0_i32_0 = arith.constant 0 : i32
    %c0_i32_1 = arith.constant 0 : i32
    return %c0_i32, %c0_i32_0 : i32, i32
  }
  func.func @transform_8(%arg0: i32) -> (i32, i32) {
    %c0_i32 = arith.constant 0 : i32
    %c0_i32_0 = arith.constant 0 : i32
    %c0_i32_1 = arith.constant 0 : i32
    return %c0_i32, %c0_i32_0 : i32, i32
  }
  func.func @transform_9(%arg0: i32) -> (i32, i32, i32) {
    %c0_i32 = arith.constant 0 : i32
    %c0_i32_0 = arith.constant 0 : i32
    %c0_i32_1 = arith.constant 0 : i32
    return %c0_i32, %arg0, %c0_i32_0 : i32, i32, i32
  }
  func.func @transform_10(%arg0: i32) -> (i32, i32) {
    %c0_i32 = arith.constant 0 : i32
    %c0_i32_0 = arith.constant 0 : i32
    return %arg0, %c0_i32 : i32, i32
  }
  func.func @transform_11(%arg0: i32) -> (i32, i32, i32) {
    %c0_i32 = arith.constant 0 : i32
    %c0_i32_0 = arith.constant 0 : i32
    %c0_i32_1 = arith.constant 0 : i32
    return %c0_i32, %arg0, %c0_i32_0 : i32, i32, i32
  }
}

</mosaic_0001>

<bundles_post_ra>
// kernel: tpu_custom_call.1
= control target key start
LH: loop header
LB: loop body
LE: loop exit
PB: predicated region body
PF: predicated region fallthrough
CT: control target
= control target key end

     0   :  { %17 = vsyncpa [#allocation3], 0  ;;  %s4616_s0 = inlined_call_operand.hbm [shape: f32[8,16], index: 0, kind: input, shape index: {}]   ;;  %s4617_s1 = inlined_call_operand.hbm [shape: bf16[16,128], index: 1, kind: input, shape index: {}]   ;;  %s4618_s2 = inlined_call_operand.hbm [shape: f32[1,128], index: 2, kind: input, shape index: {}]   ;;  %s4619_s3 = inlined_call_operand.hbm [shape: bf16[128,128], index: 3, kind: input, shape index: {}]   ;;  %s4620_s4 = inlined_call_operand.hbm [shape: bf16[1,32,128], index: 4, kind: input, shape index: {}]   ;;  %s4621_s5 = inlined_call_operand.hbm [shape: bf16[2,32,128], index: 5, kind: input, shape index: {}]   ;;  %s4622_s6 = inlined_call_operand.hbm [shape: f32[2,1,128], index: 6, kind: input, shape index: {}]   ;;  %s4623_s7 = inlined_call_operand.hbm [shape: bf16[32,128], index: 7, kind: input, shape index: {}]   ;;  %s4624_s8 = inlined_call_operand.hbm [shape: f32[1,128], index: 8, kind: input, shape index: {}]   ;;  %s4625_s9 = inlined_call_operand.vmem [shape: s8[8,8,128], index: 9, kind: input, shape index: {}]   ;;  %s4626_s10 = inlined_call_operand.hbm [shape: s32[8,8], index: 10, kind: output, shape index: {0}]   ;;  %s4627_s11 = inlined_call_operand.hbm [shape: f32[8,8,128], index: 11, kind: output, shape index: {1}]  }
   0x1   :  { %18 = vsyncpa [#allocation6], 0 }
   0x2   :  { %19 = vsyncpa [#allocation9], 0 }
   0x3   :  { %20 = vsyncpa [#allocation12], 0 }
   0x4   :  { %21 = vsyncpa [#allocation15], 0 }
   0x5   :  { %22 = vsyncpa [#allocation4], 0 }
   0x6   :  { %23 = vsyncpa [#allocation19], 0  ;;  %s3795_s17 = smov [#allocation5]  }
   0x7   :  { %s39_s18 = sshll.u32 %s3795_s17, 4  ;;  %s40_s18 = int_to_ptr.vmem [resolvable:$true] %s39_s18 }
   0x8   :  { %s3569_s19 = scalar_lea.vmem %s40_s18, 128  ;;  %p3574_p1 = scmp.lt.s32.totalorder %s40_s18, %s40_s18 }
   0x9   :  { %p3570_p0 = scmp.ne.s32.totalorder %s40_s18, %s3569_s19  ;;  %p3575_p2 = scmp.lt.s32.totalorder %s3569_s19, %s3569_s19 }
   0xb   :  { %p3576_p3 = por %p3575_p2, %p3574_p1 }
   0xd   :  { %p3577_p4 = pnand %p3576_p3, %p3570_p0 }
   0xf   :  { %3580 = shalt.err (!%p3577_p4)
}
  0x10   :  { %s3796_s20 = smov 64   ;;  %s3797_s21 = smov 4  }
  0x11   :  { %45 = dma.hbm_to_vmem [thread:$0]  %s4617_s1, 128, %s40_s18, [#allocation6], %s3796_s20, %s3796_s20, %s3797_s21  }
  0x12   :  { %s3798_s24 = smov [#allocation8]   ;;  %s3799_s26 = smov [#allocation11]  }
  0x13   :  { %s61_s25 = sshll.u32 %s3798_s24, 4  ;;  %s85_s27 = sshll.u32 %s3799_s26, 4  ;;  %s62_s25 = int_to_ptr.vmem [resolvable:$true] %s61_s25  ;;  %s86_s27 = int_to_ptr.vmem [resolvable:$true] %s85_s27 }
  0x14   :  { %s3589_s28 = scalar_lea.vmem %s62_s25, 1024  ;;  %p3594_p6 = scmp.lt.s32.totalorder %s62_s25, %s62_s25 }
  0x15   :  { %p3590_p5 = scmp.ne.s32.totalorder %s62_s25, %s3589_s28  ;;  %p3595_p7 = scmp.lt.s32.totalorder %s3589_s28, %s3589_s28 }
  0x17   :  { %p3596_p8 = por %p3595_p7, %p3594_p6 }
  0x19   :  { %p3597_p9 = pnand %p3596_p8, %p3590_p5 }
  0x1b   :  { %3600 = shalt.err (!%p3597_p9)
}
  0x1c   :  { %67 = dma.hbm_to_vmem [thread:$0]  %s4619_s3, 1024, %s62_s25, [#allocation9], %s3796_s20, %s3796_s20, %s3797_s21  }
  0x1d   :  { %s3609_s1 = scalar_lea.vmem %s86_s27, 512  ;;  %p3614_p11 = scmp.lt.s32.totalorder %s86_s27, %s86_s27 }
  0x1e   :  { %p3610_p10 = scmp.ne.s32.totalorder %s86_s27, %s3609_s1  ;;  %p3615_p12 = scmp.lt.s32.totalorder %s3609_s1, %s3609_s1 }
  0x20   :  { %p3616_p13 = por %p3615_p12, %p3614_p11 }
  0x22   :  { %p3617_p0 = pnand %p3616_p13, %p3610_p10 }
  0x24   :  { %3620 = shalt.err (!%p3617_p0)
}
  0x25   :  { %91 = dma.hbm_to_vmem [thread:$0]  %s4621_s5, 512, %s86_s27, [#allocation12], %s3796_s20, %s3796_s20, %s3797_s21  }
  0x26   :  { %s3800_s14 = smov [#allocation14]   ;;  %s3801_s16 = smov [#allocation2]  }
  0x27   :  { %s109_s15 = sshll.u32 %s3800_s14, 4  ;;  %s30_s3 = sshll.u32 %s3801_s16, 4  ;;  %s110_s15 = int_to_ptr.vmem [resolvable:$true] %s109_s15  ;;  %s31_s3 = int_to_ptr.vmem [resolvable:$true] %s30_s3 }
  0x28   :  { %s3629_s17 = scalar_lea.vmem %s110_s15, 256  ;;  %p3634_p2 = scmp.lt.s32.totalorder %s110_s15, %s110_s15 }
  0x29   :  { %p3630_p1 = scmp.ne.s32.totalorder %s110_s15, %s3629_s17  ;;  %p3635_p3 = scmp.lt.s32.totalorder %s3629_s17, %s3629_s17 }
  0x2b   :  { %p3636_p4 = por %p3635_p3, %p3634_p2 }
  0x2d   :  { %p3637_p5 = pnand %p3636_p4, %p3630_p1 }
  0x2f   :  { %3640 = shalt.err (!%p3637_p5)
}
  0x30   :  { %115 = dma.hbm_to_vmem [thread:$0]  %s4623_s7, 256, %s110_s15, [#allocation15], %s3796_s20, %s3796_s20, %s3797_s21  }
  0x31   :  { %s3649_s5 = scalar_lea.vmem %s31_s3, 128  ;;  %p3654_p7 = scmp.lt.s32.totalorder %s31_s3, %s31_s3 }
  0x32   :  { %p3650_p6 = scmp.ne.s32.totalorder %s31_s3, %s3649_s5  ;;  %p3655_p8 = scmp.lt.s32.totalorder %s3649_s5, %s3649_s5 }
  0x34   :  { %p3656_p9 = por %p3655_p8, %p3654_p7 }
  0x36   :  { %p3657_p10 = pnand %p3656_p9, %p3650_p6 }
  0x38   :  { %3660 = shalt.err (!%p3657_p10)
}
  0x39   :  { %33 = dma.hbm_to_vmem [thread:$0]  %s4616_s0, 128, %s31_s3, [#allocation3]  }
  0x3a   :  { %s3802_s24 = smov [#allocation7]   ;;  %s3803_s26 = smov [#allocation10]  }
  0x3b   :  { %s52_s25 = sshll.u32 %s3802_s24, 4  ;;  %s73_s27 = sshll.u32 %s3803_s26, 4  ;;  %s53_s25 = int_to_ptr.vmem [resolvable:$true] %s52_s25  ;;  %s74_s27 = int_to_ptr.vmem [resolvable:$true] %s73_s27 }
  0x3c   :  { %s3669_s28 = scalar_lea.vmem %s53_s25, 16  ;;  %s3673_s7 = scalar_lea.vmem %s53_s25, 32 }
  0x3d   :  { %p3670_p11 = scmp.ne.s32.totalorder %s53_s25, %s3669_s28  ;;  %p3674_p12 = scmp.lt.s32.totalorder %s53_s25, %s53_s25 }
  0x3e   :  { %p3675_p13 = scmp.lt.s32.totalorder %s3673_s7, %s3669_s28 }
  0x40   :  { %p3676_p0 = por %p3675_p13, %p3674_p12 }
  0x42   :  { %p3677_p1 = pnand %p3676_p0, %p3670_p11 }
  0x44   :  { %3680 = shalt.err (!%p3677_p1)
}
  0x45   :  { %55 = dma.hbm_to_vmem [thread:$0]  %s4618_s2, 16, %s53_s25, [#allocation6]  }
  0x46   :  { %s3689_s1 = scalar_lea.vmem %s74_s27, 256  ;;  %p3694_p3 = scmp.lt.s32.totalorder %s74_s27, %s74_s27 }
  0x47   :  { %p3690_p2 = scmp.ne.s32.totalorder %s74_s27, %s3689_s1  ;;  %p3695_p4 = scmp.lt.s32.totalorder %s3689_s1, %s3689_s1 }
  0x49   :  { %p3696_p5 = por %p3695_p4, %p3694_p3 }
  0x4b   :  { %p3697_p6 = pnand %p3696_p5, %p3690_p2 }
  0x4d   :  { %3700 = shalt.err (!%p3697_p6)
}
  0x4e   :  { %79 = dma.hbm_to_vmem [thread:$0]  %s4620_s4, 256, %s74_s27, [#allocation9], %s3796_s20, %s3796_s20, %s3797_s21  }
  0x4f   :  { %s3804_s13 = smov [#allocation13]  }
  0x50   :  { %s97_s14 = sshll.u32 %s3804_s13, 4  ;;  %s98_s14 = int_to_ptr.vmem [resolvable:$true] %s97_s14 }
  0x51   :  { %s3709_s15 = scalar_lea.vmem %s98_s14, 32  ;;  %p3714_p8 = scmp.lt.s32.totalorder %s98_s14, %s98_s14 }
  0x52   :  { %p3710_p7 = scmp.ne.s32.totalorder %s98_s14, %s3709_s15  ;;  %p3715_p9 = scmp.lt.s32.totalorder %s3709_s15, %s3709_s15 }
  0x54   :  { %p3716_p10 = por %p3715_p9, %p3714_p8 }
  0x56   :  { %p3717_p11 = pnand %p3716_p10, %p3710_p7 }
  0x58   :  { %3720 = shalt.err (!%p3717_p11)
}
  0x59   :  { %s3805_s2 = smov 16   ;;  %s3806_s16 = smov 1  }
  0x5a   :  { %103 = dma.hbm_to_vmem [thread:$0]  %s4622_s6, 32, %s98_s14, [#allocation12], %s3805_s2, %s3805_s2, %s3806_s16  }
  0x5b   :  { %s3807_s18 = smov [#allocation16]  }
  0x5c   :  { %s122_s19 = sshll.u32 %s3807_s18, 4  ;;  %s123_s19 = int_to_ptr.vmem [resolvable:$true] %s122_s19 }
  0x5d   :  { %s3729_s4 = scalar_lea.vmem %s123_s19, 16  ;;  %s3733_s21 = scalar_lea.vmem %s123_s19, 32 }
  0x5e   :  { %p3730_p12 = scmp.ne.s32.totalorder %s123_s19, %s3729_s4  ;;  %p3734_p13 = scmp.lt.s32.totalorder %s123_s19, %s123_s19 }
  0x5f   :  { %p3735_p0 = scmp.lt.s32.totalorder %s3733_s21, %s3729_s4 }
  0x61   :  { %p3736_p1 = por %p3735_p0, %p3734_p13 }
  0x63   :  { %p3737_p2 = pnand %p3736_p1, %p3730_p12 }
  0x65   :  { %3740 = shalt.err (!%p3737_p2)
}
  0x66   :  { %125 = dma.hbm_to_vmem [thread:$0]  %s4624_s8, 16, %s123_s19, [#allocation15]  }
  0x67   :  { %3781 = dma.done.wait [#allocation3], 128  }
  0x68   :  { %3782 = vsyncadd [#allocation3], 4294967168 }
  0x69   :  { %3783 = dma.done.wait [#allocation6], 144  }
  0x6a   :  { %3784 = vsyncadd [#allocation6], 4294967152 }
  0x6b   :  { %3785 = dma.done.wait [#allocation9], 1280  }
  0x6c   :  { %3786 = vsyncadd [#allocation9], 4294966016 }
  0x6d   :  { %3787 = dma.done.wait [#allocation12], 544  }
  0x6e   :  { %3788 = vsyncadd [#allocation12], 4294966752 }
  0x6f   :  { %3789 = dma.done.wait [#allocation15], 272  }
  0x70   :  { %3790 = vsyncadd [#allocation15], 4294967024  ;;  %v3808_v0 = vmov 0.0   ;;  %vm3809_vm0 = vmmov 0   ;;  %v3397_v1 = vld [vmem:[#allocation5] sm:$0xff]   ;;  %v156_v2 = vld [vmem:[#allocation2] sm:$0xff]  ;;  %v273_v12 = vlaneseq }
  0x71   :  { %2951 = vmatprep.subr.bf16.mxu0 %v3808_v0  ;;  %2953 = vmatprep.mubr.msk.bf16.mxu0 %vm3809_vm0, %v3808_v0  ;;  %v157_v3 = vpack.c.bf16 %v156_v2, %v156_v2  ;;  %vm173_vm1 = vcmask 130048   ;;  %v3925_v4 = vld [vmem:[#allocation8 + $0x38] sm:$0xff]   ;;  %v3929_v5 = vld [vmem:[#allocation8 + $0x30] sm:$0xff]   ;;  %v3935_v6 = vld [vmem:[#allocation8 + $0x28] sm:$0xff]   ;;  %v3810_v16 = vmov 1.0|1.0  }
  0x72   :  { %2973 = vmatprep.subr.bf16.mxu1 %v3808_v0  ;;  %2989 = vmatprep.mubr.msk.bf16.mxu1 %vm3809_vm0, %v3808_v0  ;;  %v3938_v7 = vld [vmem:[#allocation11 + $0x8] sm:$0xff]   ;;  %v3940_v8 = vld [vmem:[#allocation8 + $0x20] sm:$0xff]   ;;  %v3951_v10 = vld [vmem:[#allocation8 + $0x10] sm:$0xff]   ;;  %v3962_v14 = vand.u32 127, %v273_v12  ;;  %vm290_vm4 = vcmask 261120   ;;  %s3811_s6 = smov 96  }
  0x73   :  { %2952 = vmatpush3.bf16.msra.mxu0 %v3397_v1  ;;  %2974 = vmatpush3.bf16.msra.mxu1 %v3925_v4  ;;  %v3947_v9 = vld [vmem:[#allocation8 + $0x18] sm:$0xff]   ;;  %v3955_v11 = vld [vmem:[#allocation8 + $0x8] sm:$0xff]   ;;  %v3960_v13 = vld [vmem:[#allocation8] sm:$0xff]   ;;  %s3812_s8 = smov 32  }
  0x74   :  { %2957 = vmatprep.subr.bf16.mxu0 %v3808_v0  ;;  %2975 = vmatprep.subr.bf16.mxu1 %v3808_v0  ;;  %vm276_vm2 = vcmp.eq.s32.totalorder %v3962_v14, 12  ;;  %v3967_v15 = vld [vmem:[#allocation11] sm:$0xff]   ;;  %v2680_v17 = vld [vmem:[#allocation7] ss:$0 sm:$0xff]  ;;  %v4000_v35 = vld [vmem:[#allocation11 + $0x18] sm:$0xff]  }
  0x75   :  { %vm2701_vm3 = vmpackc.low %vm276_vm2, %vm276_vm2  ;;  %v3997_v29 = vld [vmem:[#allocation13] ss:$0 sm:$0xff]  ;;  %v4004_v37 = vld [vmem:[#allocation11 + $0x10] sm:$0xff]  }
  0x76   :  { %2954 = vmatmul.mubr.msk.bf16.vlgmr.msra.gmra.mxu0 %vm173_vm1, %v157_v3  ;;  %v4017_v50 = vld [vmem:[#allocation10 + $0x8] sm:$0xff]   ;;  %v4020_v51 = vld [vmem:[#allocation10] sm:$0xff]   ;;  %v4032_v61 = vld [vmem:[#allocation13 + $0x1] ss:$0 sm:$0xff] }
  0x77   :  { %2961 = vmatprep.mubr.msk.bf16.mxu0 %vm3809_vm0, %v3808_v0  ;;  %2976 = vmatpush3.bf16.msra.mxu1 %v3929_v5 }
  0x78   :  { %2977 = vmatprep.subr.bf16.mxu1 %v3808_v0  ;;  %2958 = vmatpush3.bf16.msra.mxu0 %v3938_v7 }
  0x79   :  { %2959 = vmatprep.subr.bf16.mxu0 %v3808_v0 }
  0x7b   :  { %2978 = vmatpush3.bf16.msra.mxu1 %v3935_v6 }
  0x7c   :  { %2979 = vmatprep.subr.bf16.mxu1 %v3808_v0  ;;  %2960 = vmatpush3.bf16.msra.mxu0 %v3967_v15 }
  0x7d   :  { %2965 = vmatprep.subr.bf16.mxu0 %v3808_v0 }
  0x7f   :  { %2980 = vmatpush3.bf16.msra.mxu1 %v3940_v8 }
  0x80   :  { %2981 = vmatprep.subr.bf16.mxu1 %v3808_v0 }
  0x83   :  { %2982 = vmatpush3.bf16.msra.mxu1 %v3947_v9 }
  0x84   :  { %2983 = vmatprep.subr.bf16.mxu1 %v3808_v0 }
  0x87   :  { %2984 = vmatpush3.bf16.msra.mxu1 %v3951_v10 }
  0x88   :  { %2985 = vmatprep.subr.bf16.mxu1 %v3808_v0 }
  0x8b   :  { %2986 = vmatpush3.bf16.msra.mxu1 %v3955_v11 }
  0x8c   :  { %2987 = vmatprep.subr.bf16.mxu1 %v3808_v0 }
  0x8f   :  { %2988 = vmatpush3.bf16.msra.mxu1 %v3960_v13 }
  0x90   :  { %3025 = vmatprep.subr.bf16.mxu1 %v3808_v0 }
  0x92   :  { %2990 = vmatmul.mubr.msk.bf16.vlgmr.msra.gmra.mxu1 %vm2701_vm3, %v3810_v16 }
  0x93   :  { %3026 = vmatpush3.bf16.msra.mxu1 %v3925_v4  ;;  %3041 = vmatprep.mubr.msk.bf16.mxu1 %vm3809_vm0, %v3808_v0 }
  0x94   :  { %3027 = vmatprep.subr.bf16.mxu1 %v3808_v0 }
  0x97   :  { %3028 = vmatpush3.bf16.msra.mxu1 %v3929_v5 }
  0x98   :  { %3029 = vmatprep.subr.bf16.mxu1 %v3808_v0 }
  0x9b   :  { %3030 = vmatpush3.bf16.msra.mxu1 %v3935_v6 }
  0x9c   :  { %3031 = vmatprep.subr.bf16.mxu1 %v3808_v0 }
  0x9f   :  { %3032 = vmatpush3.bf16.msra.mxu1 %v3940_v8 }
  0xa0   :  { %3033 = vmatprep.subr.bf16.mxu1 %v3808_v0 }
  0xa3   :  { %3034 = vmatpush3.bf16.msra.mxu1 %v3947_v9 }
  0xa4   :  { %3035 = vmatprep.subr.bf16.mxu1 %v3808_v0 }
  0xa7   :  { %3036 = vmatpush3.bf16.msra.mxu1 %v3951_v10 }
  0xa8   :  { %3037 = vmatprep.subr.bf16.mxu1 %v3808_v0 }
  0xab   :  { %3038 = vmatpush3.bf16.msra.mxu1 %v3955_v11 }
  0xac   :  { %3039 = vmatprep.subr.bf16.mxu1 %v3808_v0 }
  0xaf   :  { %3040 = vmatpush3.bf16.msra.mxu1 %v3960_v13 }
  0xb0   :  { %3077 = vmatprep.subr.bf16.mxu1 %v3808_v0 }
 0x136   :  { %v211_v18 = vpop.f32.mrf.mxu0 }
 0x137   :  { %v212_v19 = vadd.f32 %v2680_v17, %v211_v18 }
 0x138   :  { %v2955_v20 = vpop.f32.mrf.mxu0 }
 0x139   :  { %v3990_v21 = vmax.f32 %v212_v19, 0.0 }
 0x13a   :  { %v214_v22 = vpop.f32.mrf.mxu0 }
 0x13b   :  { %v277_v23 = vpack.c.bf16 %v3990_v21, %v3990_v21 }
 0x13c   :  { %v2956_v24 = vpop.f32.mrf.mxu0 }
 0x13d   :  { %2962 = vmatmul.mubr.msk.bf16.vlgmr.msra.gmra.mxu0 %vm290_vm4, %v277_v23 }
 0x13e   :  { %2969 = vmatprep.mubr.msk.bf16.mxu0 %vm3809_vm0, %v3808_v0  ;;  %2966 = vmatpush3.bf16.msra.mxu0 %v4000_v35 }
 0x13f   :  { %2967 = vmatprep.subr.bf16.mxu0 %v3808_v0 }
 0x142   :  { %2968 = vmatpush3.bf16.msra.mxu0 %v4004_v37 }
 0x143   :  { %2993 = vmatprep.subr.bf16.mxu0 %v3808_v0 }
 0x152   :  { %v477_v25 = vpop.f32.mrf.mxu1 }
 0x154   :  { %v2991_v26 = vpop.f32.mrf.mxu1 }
 0x156   :  { %v480_v27 = vpop.f32.mrf.mxu1 }
 0x158   :  { %v2992_v28 = vpop.f32.mrf.mxu1 }
 0x159   :  { %v4040_v28 = vld [vmem:[#allocation14 + $0x8] sm:$0xff]  }
 0x1fd   :  { %v328_v30 = vpop.f32.mrf.mxu0 }
 0x1fe   :  { %v329_v31 = vadd.f32 %v3997_v29, %v328_v30  ;;  %v4043_v30 = vld [vmem:[#allocation14] sm:$0xff]  }
 0x1ff   :  { %v2963_v32 = vpop.f32.mrf.mxu0 }
 0x200   :  { %v478_v33 = vadd.f32 %v477_v25, %v329_v31 }
 0x201   :  { %v331_v34 = vpop.f32.mrf.mxu0 }
 0x202   :  { %3414 = vtanh.f32 %v478_v33  ;;  %v2703_v39 = vmul.f32 -1.442695, %v478_v33 }
 0x203   :  { %v2964_v36 = vpop.f32.mrf.mxu0 }
 0x204   :  { %3416 = vpow2.f32 %v2703_v39 }
 0x20f   :  { %v3415_v38 = vpop.eup %3414 }
 0x210   :  { %496 = vrot.lane.b32.xlu0 %v3415_v38, %s3796_s20  ;;  %v4074_v38 = vld [vmem:[%s4625_s9] sm:$0xff]  }
 0x211   :  { %v3417_v40 = vpop.eup %3416  ;;  %v657_v39 = vunpack.c.0.s8 %v4074_v38 }
 0x212   :  { %v486_v41 = vadd.f32 1.0, %v3417_v40 }
 0x213   :  { %v658_v40 = vcvt.s32.f32 %v657_v39 }
 0x214   :  { %491 = vrot.lane.b32.xlu0 %v3990_v21, %s3811_s6  ;;  %3418 = vrcp.f32 %v486_v41  ;;  %v4077_v41 = vld [vmem:[#allocation16] ss:$0 sm:$0xff] }
 0x218   :  { %335 = vrot.lane.b32.xlu0 %v277_v23, %s3811_s6 }
 0x221   :  { %v3419_v42 = vpop.eup %3418 }
 0x282   :  { %v497_v43 = vpop.permute.xlu0 %496 }
 0x283   :  { %v499_v44 = vmul.f32 %v3419_v42, %v497_v43 }
 0x285   :  { %501 = vrot.lane.b32.xlu1 %v499_v44, %s3812_s8 }
 0x286   :  { %v492_v45 = vpop.permute.xlu0 %491 }
 0x287   :  { %v494_v47 = vmul.f32 %v3419_v42, %v492_v45 }
 0x28a   :  { %v336_v46 = vpop.permute.xlu0 %335 }
 0x28b   :  { %2970 = vmatmul.mubr.msk.bf16.vlgmr.msra.gmra.mxu0 %vm290_vm4, %v336_v46 }
 0x28c   :  { %2997 = vmatprep.mubr.msk.bf16.mxu0 %vm3809_vm0, %v3808_v0  ;;  %2994 = vmatpush3.bf16.msra.mxu0 %v4017_v50 }
 0x28d   :  { %2995 = vmatprep.subr.bf16.mxu0 %v3808_v0 }
 0x290   :  { %2996 = vmatpush3.bf16.msra.mxu0 %v4020_v51 }
 0x291   :  { %3001 = vmatprep.subr.bf16.mxu0 %v3808_v0 }
 0x2f7   :  { %v502_v48 = vpop.permute.xlu1 %501 }
 0x2f8   :  { %v4014_v49 = vadd.f32 %v502_v48, %v494_v47 }
 0x2fa   :  { %3420 = vtanh.f32 %v4014_v49 }
 0x307   :  { %v3421_v52 = vpop.eup %3420 }
 0x308   :  { %507 = vrot.lane.b32.xlu1 %v3421_v52, %s3796_s20 }
 0x34b   :  { %v386_v53 = vpop.f32.mrf.mxu0 }
 0x34c   :  { %v387_v62 = vadd.f32 %v4032_v61, %v386_v53 }
 0x34d   :  { %v2971_v54 = vpop.f32.mrf.mxu0 }
 0x34f   :  { %v389_v55 = vpop.f32.mrf.mxu0 }
 0x351   :  { %v2972_v56 = vpop.f32.mrf.mxu0 }
 0x37a   :  { %v508_v57 = vpop.permute.xlu1 %507 }
 0x37b   :  { %v510_v58 = vmul.f32 %v3419_v42, %v508_v57  ;;  %v659_v42 = vmul.f32 -1e+08, %v658_v40 }
 0x37d   :  { %v511_v59 = vpack.c.bf16 %v510_v58, %v510_v58 }
 0x37f   :  { %513 = vrot.lane.b32.xlu1 %v511_v59, %s3812_s8 }
 0x383   :  { %577 = vrot.lane.b32.xlu1 %v3990_v21, %s3796_s20 }
 0x3f1   :  { %v514_v60 = vpop.permute.xlu1 %513 }
 0x3f2   :  { %2998 = vmatmul.mubr.msk.bf16.vlgmr.msra.gmra.mxu0 %vm290_vm4, %v514_v60 }
 0x3f3   :  { %3005 = vmatprep.mubr.msk.bf16.mxu0 %vm3809_vm0, %v3808_v0  ;;  %3002 = vmatpush3.bf16.msra.mxu0 %v4040_v28 }
 0x3f4   :  { %3003 = vmatprep.subr.bf16.mxu0 %v3808_v0 }
 0x3f5   :  { %v578_v24 = vpop.permute.xlu1 %577 }
 0x3f7   :  { %3004 = vmatpush3.bf16.msra.mxu0 %v4043_v30 }
 0x3f8   :  { %3009 = vmatprep.subr.bf16.mxu0 %v3808_v0 }
 0x4b2   :  { %v564_v63 = vpop.f32.mrf.mxu0 }
 0x4b3   :  { %v565_v1 = vadd.f32 %v564_v63, %v387_v62 }
 0x4b4   :  { %v2999_v2 = vpop.f32.mrf.mxu0 }
 0x4b5   :  { %3422 = vtanh.f32 %v565_v1  ;;  %v2707_v18 = vmul.f32 -1.442695, %v565_v1 }
 0x4b6   :  { %v567_v3 = vpop.f32.mrf.mxu0 }
 0x4b7   :  { %3424 = vpow2.f32 %v2707_v18 }
 0x4b8   :  { %v3000_v12 = vpop.f32.mrf.mxu0 }
 0x4c2   :  { %v3423_v17 = vpop.eup %3422 }
 0x4c3   :  { %582 = vrot.lane.b32.xlu0 %v3423_v17, %s3796_s20 }
 0x4c4   :  { %v3425_v19 = vpop.eup %3424 }
 0x4c5   :  { %v573_v20 = vadd.f32 1.0, %v3425_v19 }
 0x4c7   :  { %3426 = vrcp.f32 %v573_v20 }
 0x4d4   :  { %v3427_v21 = vpop.eup %3426 }
 0x4d5   :  { %v580_v25 = vmul.f32 %v3427_v21, %v578_v24 }
 0x535   :  { %v583_v22 = vpop.permute.xlu0 %582 }
 0x536   :  { %v585_v23 = vmul.f32 %v3427_v21, %v583_v22 }
 0x538   :  { %587 = vrot.lane.b32.xlu0 %v585_v23, %s3812_s8 }
 0x5aa   :  { %v588_v26 = vpop.permute.xlu0 %587 }
 0x5ab   :  { %v4037_v27 = vadd.f32 %v588_v26, %v580_v25 }
 0x5ad   :  { %3428 = vtanh.f32 %v4037_v27 }
 0x5ba   :  { %v3429_v31 = vpop.eup %3428 }
 0x5bb   :  { %593 = vrot.lane.b32.xlu1 %v3429_v31, %s3796_s20 }
 0x62d   :  { %v594_v32 = vpop.permute.xlu1 %593 }
 0x62e   :  { %v596_v33 = vmul.f32 %v3427_v21, %v594_v32 }
 0x630   :  { %v597_v34 = vpack.c.bf16 %v596_v33, %v596_v33 }
 0x632   :  { %599 = vrot.lane.b32.xlu0 %v597_v34, %s3812_s8 }
 0x6a4   :  { %v600_v36 = vpop.permute.xlu0 %599 }
 0x6a5   :  { %3006 = vmatmul.mubr.msk.bf16.vlgmr.msra.gmra.mxu0 %vm290_vm4, %v600_v36 }
 0x6a6   :  { %3010 = vmatpush3.bf16.msra.mxu0 %v3938_v7  ;;  %3013 = vmatprep.mubr.msk.bf16.mxu0 %vm3809_vm0, %v3808_v0 }
 0x6a7   :  { %3011 = vmatprep.subr.bf16.mxu0 %v3808_v0 }
 0x6aa   :  { %3012 = vmatpush3.bf16.msra.mxu0 %v3967_v15 }
 0x6ab   :  { %3017 = vmatprep.subr.bf16.mxu0 %v3808_v0 }
 0x6ad   :  { %3014 = vmatmul.mubr.msk.bf16.vlgmr.msra.gmra.mxu0 %vm290_vm4, %v514_v60  ;;  %v4083_v60 = vcvt.s32.f32 %v3962_v14 }
 0x6ae   :  { %3018 = vmatpush3.bf16.msra.mxu0 %v4000_v35  ;;  %3021 = vmatprep.mubr.msk.bf16.mxu0 %vm3809_vm0, %v3808_v0 }
 0x6af   :  { %3019 = vmatprep.subr.bf16.mxu0 %v3808_v0 }
 0x6b2   :  { %3020 = vmatpush3.bf16.msra.mxu0 %v4004_v37 }
 0x6b3   :  { %3045 = vmatprep.subr.bf16.mxu0 %v3808_v0 }
 0x6b5   :  { %3022 = vmatmul.mubr.msk.bf16.vlgmr.msra.gmra.mxu0 %vm290_vm4, %v600_v36 }
 0x6b6   :  { %3046 = vmatpush3.bf16.msra.mxu0 %v4017_v50  ;;  %3049 = vmatprep.mubr.msk.bf16.mxu0 %vm3809_vm0, %v3808_v0 }
 0x6b7   :  { %3047 = vmatprep.subr.bf16.mxu0 %v3808_v0 }
 0x6ba   :  { %3048 = vmatpush3.bf16.msra.mxu0 %v4020_v51 }
 0x6bb   :  { %3053 = vmatprep.subr.bf16.mxu0 %v3808_v0 }
 0x765   :  { %v650_v43 = vpop.f32.mrf.mxu0 }
 0x766   :  { %v651_v44 = vadd.f32 %v4077_v41, %v650_v43 }
 0x767   :  { %v3007_v45 = vpop.f32.mrf.mxu0 }
 0x768   :  { %668 = vst [vmem:[#allocation18] sm:$0xff] %v651_v44  ;;  %v660_v46 = vadd.f32 %v659_v42, %v651_v44 }
 0x769   :  { %v653_v47 = vpop.f32.mrf.mxu0 }
 0x76a   :  { %661 = vmax.xlane.f32.xlu1 %v660_v46 }
 0x76b   :  { %v3008_v48 = vpop.f32.mrf.mxu0 }
 0x76d   :  { %v703_v52 = vpop.f32.mrf.mxu0 }
 0x76e   :  { %v704_v14 = vadd.f32 %v3997_v29, %v703_v52 }
 0x76f   :  { %v3015_v53 = vpop.f32.mrf.mxu0 }
 0x771   :  { %v706_v54 = vpop.f32.mrf.mxu0 }
 0x773   :  { %v3016_v55 = vpop.f32.mrf.mxu0 }
 0x775   :  { %v4080_v56 = vpop.f32.mrf.mxu0 }
 0x777   :  { %v3023_v57 = vpop.f32.mrf.mxu0 }
 0x779   :  { %v746_v58 = vpop.f32.mrf.mxu0 }
 0x77b   :  { %v3024_v59 = vpop.f32.mrf.mxu0 }
 0x7f3   :  { %v662_v62 = vpop.xlane.xlu1 %661 }
 0x7f4   :  { %vm663_vm5 = vcmp.eq.f32.partialorder %v660_v46, %v662_v62 }
 0x7f5   :  { %v664_v63 = vsel %vm663_vm5, %v4083_v60, 128.0 }
 0x7f6   :  { %665 = vmin.xlane.f32.xlu0 %v664_v63 }
 0x87f   :  { %v4086_v1 = vpop.xlane.xlu0 %665 }
 0x880   :  { %vm667_vm6 = vcmp.eq.f32.partialorder %v4083_v60, %v4086_v1 }
 0x881   :  { %vm2714_vm7 = vmpackc.low %vm667_vm6, %vm667_vm6 }
 0x882   :  { %3042 = vmatmul.mubr.msk.bf16.vlgmr.msra.gmra.mxu1 %vm2714_vm7, %v3810_v16 }
 0x883   :  { %3078 = vmatpush3.bf16.msra.mxu1 %v3925_v4  ;;  %3093 = vmatprep.mubr.msk.bf16.mxu1 %vm3809_vm0, %v3808_v0 }
 0x884   :  { %3079 = vmatprep.subr.bf16.mxu1 %v3808_v0 }
 0x887   :  { %3080 = vmatpush3.bf16.msra.mxu1 %v3929_v5 }
 0x888   :  { %3081 = vmatprep.subr.bf16.mxu1 %v3808_v0 }
 0x88b   :  { %3082 = vmatpush3.bf16.msra.mxu1 %v3935_v6 }
 0x88c   :  { %3083 = vmatprep.subr.bf16.mxu1 %v3808_v0 }
 0x88f   :  { %3084 = vmatpush3.bf16.msra.mxu1 %v3940_v8 }
 0x890   :  { %3085 = vmatprep.subr.bf16.mxu1 %v3808_v0 }
 0x893   :  { %3086 = vmatpush3.bf16.msra.mxu1 %v3947_v9 }
 0x894   :  { %3087 = vmatprep.subr.bf16.mxu1 %v3808_v0 }
 0x897   :  { %3088 = vmatpush3.bf16.msra.mxu1 %v3951_v10 }
 0x898   :  { %3089 = vmatprep.subr.bf16.mxu1 %v3808_v0 }
 0x89b   :  { %3090 = vmatpush3.bf16.msra.mxu1 %v3955_v11 }
 0x89c   :  { %3091 = vmatprep.subr.bf16.mxu1 %v3808_v0 }
 0x89f   :  { %3092 = vmatpush3.bf16.msra.mxu1 %v3960_v13 }
 0x8a0   :  { %3129 = vmatprep.subr.bf16.mxu1 %v3808_v0 }
 0x942   :  { %v786_v2 = vpop.f32.mrf.mxu1 }
 0x943   :  { %v787_v3 = vadd.f32 %v786_v2, %v704_v14 }
 0x944   :  { %v3043_v12 = vpop.f32.mrf.mxu1 }
 0x945   :  { %3430 = vtanh.f32 %v787_v3  ;;  %v2716_v20 = vmul.f32 -1.442695, %v787_v3 }
 0x946   :  { %v789_v17 = vpop.f32.mrf.mxu1 }
 0x947   :  { %3432 = vpow2.f32 %v2716_v20 }
 0x948   :  { %v3044_v18 = vpop.f32.mrf.mxu1 }
 0x952   :  { %v3431_v19 = vpop.eup %3430 }
 0x953   :  { %801 = vrot.lane.b32.xlu0 %v3431_v19, %s3796_s20 }
 0x954   :  { %v3433_v21 = vpop.eup %3432 }
 0x955   :  { %v795_v22 = vadd.f32 1.0, %v3433_v21 }
 0x957   :  { %3434 = vrcp.f32 %v795_v22 }
 0x964   :  { %v3435_v23 = vpop.eup %3434 }
 0x965   :  { %v799_v26 = vmul.f32 %v3435_v23, %v4014_v49  ;;  %v744_v49 = vadd.f32 %v4032_v61, %v4080_v56 }
 0x9c5   :  { %v802_v24 = vpop.permute.xlu0 %801 }
 0x9c6   :  { %v804_v25 = vmul.f32 %v3435_v23, %v802_v24 }
 0x9c8   :  { %806 = vrot.lane.b32.xlu1 %v804_v25, %s3812_s8 }
 0xa3a   :  { %v807_v31 = vpop.permute.xlu1 %806 }
 0xa3b   :  { %v4113_v32 = vadd.f32 %v807_v31, %v799_v26 }
 0xa3d   :  { %3436 = vtanh.f32 %v4113_v32 }
 0xa4a   :  { %v3437_v33 = vpop.eup %3436 }
 0xa4b   :  { %812 = vrot.lane.b32.xlu1 %v3437_v33, %s3796_s20 }
 0xabd   :  { %v813_v34 = vpop.permute.xlu1 %812 }
 0xabe   :  { %v815_v36 = vmul.f32 %v3435_v23, %v813_v34 }
 0xac0   :  { %v816_v39 = vpack.c.bf16 %v815_v36, %v815_v36 }
 0xac2   :  { %818 = vrot.lane.b32.xlu0 %v816_v39, %s3812_s8 }
 0xb34   :  { %v819_v40 = vpop.permute.xlu0 %818 }
 0xb35   :  { %3050 = vmatmul.mubr.msk.bf16.vlgmr.msra.gmra.mxu0 %vm290_vm4, %v819_v40 }
 0xb36   :  { %3054 = vmatpush3.bf16.msra.mxu0 %v4040_v28  ;;  %3057 = vmatprep.mubr.msk.bf16.mxu0 %vm3809_vm0, %v3808_v0 }
 0xb37   :  { %3055 = vmatprep.subr.bf16.mxu0 %v3808_v0 }
 0xb3a   :  { %3056 = vmatpush3.bf16.msra.mxu0 %v4043_v30 }
 0xb3b   :  { %3061 = vmatprep.subr.bf16.mxu0 %v3808_v0 }
 0xbf5   :  { %v857_v42 = vpop.f32.mrf.mxu0 }
 0xbf6   :  { %v858_v43 = vadd.f32 %v857_v42, %v744_v49 }
 0xbf7   :  { %v3051_v44 = vpop.f32.mrf.mxu0 }
 0xbf8   :  { %3438 = vtanh.f32 %v858_v43  ;;  %v2718_v48 = vmul.f32 -1.442695, %v858_v43 }
 0xbf9   :  { %v860_v45 = vpop.f32.mrf.mxu0 }
 0xbfa   :  { %3440 = vpow2.f32 %v2718_v48 }
 0xbfb   :  { %v3052_v46 = vpop.f32.mrf.mxu0 }
 0xc05   :  { %v3439_v47 = vpop.eup %3438 }
 0xc06   :  { %872 = vrot.lane.b32.xlu1 %v3439_v47, %s3796_s20 }
 0xc07   :  { %v3441_v52 = vpop.eup %3440 }
 0xc08   :  { %v866_v53 = vadd.f32 1.0, %v3441_v52 }
 0xc0a   :  { %3442 = vrcp.f32 %v866_v53 }
 0xc17   :  { %v3443_v54 = vpop.eup %3442 }
 0xc18   :  { %v870_v56 = vmul.f32 %v3443_v54, %v4037_v27  ;;  %v936_v27 = vunpack.c.1.s8 %v4074_v38 }
 0xc1a   :  { %v937_v12 = vcvt.s32.f32 %v936_v27 }
 0xc1c   :  { %v938_v17 = vmul.f32 -1e+08, %v937_v12 }
 0xc78   :  { %v873_v55 = vpop.permute.xlu1 %872 }
 0xc79   :  { %v875_v57 = vmul.f32 %v3443_v54, %v873_v55 }
 0xc7b   :  { %877 = vrot.lane.b32.xlu0 %v875_v57, %s3812_s8 }
 0xced   :  { %v878_v58 = vpop.permute.xlu0 %877 }
 0xcee   :  { %v4130_v59 = vadd.f32 %v878_v58, %v870_v56 }
 0xcf0   :  { %3444 = vtanh.f32 %v4130_v59 }
 0xcfd   :  { %v3445_v62 = vpop.eup %3444 }
 0xcfe   :  { %883 = vrot.lane.b32.xlu1 %v3445_v62, %s3796_s20 }
 0xd70   :  { %v884_v63 = vpop.permute.xlu1 %883 }
 0xd71   :  { %v886_v14 = vmul.f32 %v3443_v54, %v884_v63 }
 0xd73   :  { %v887_v2 = vpack.c.bf16 %v886_v14, %v886_v14 }
 0xd75   :  { %889 = vrot.lane.b32.xlu0 %v887_v2, %s3812_s8 }
 0xde7   :  { %v890_v3 = vpop.permute.xlu0 %889 }
 0xde8   :  { %3058 = vmatmul.mubr.msk.bf16.vlgmr.msra.gmra.mxu0 %vm290_vm4, %v890_v3 }
 0xde9   :  { %3062 = vmatpush3.bf16.msra.mxu0 %v3938_v7  ;;  %3065 = vmatprep.mubr.msk.bf16.mxu0 %vm3809_vm0, %v3808_v0 }
 0xdea   :  { %3063 = vmatprep.subr.bf16.mxu0 %v3808_v0 }
 0xded   :  { %3064 = vmatpush3.bf16.msra.mxu0 %v3967_v15 }
 0xdee   :  { %3069 = vmatprep.subr.bf16.mxu0 %v3808_v0 }
 0xdf0   :  { %3066 = vmatmul.mubr.msk.bf16.vlgmr.msra.gmra.mxu0 %vm290_vm4, %v819_v40 }
 0xdf1   :  { %3070 = vmatpush3.bf16.msra.mxu0 %v4000_v35  ;;  %3073 = vmatprep.mubr.msk.bf16.mxu0 %vm3809_vm0, %v3808_v0 }
 0xdf2   :  { %3071 = vmatprep.subr.bf16.mxu0 %v3808_v0 }
 0xdf5   :  { %3072 = vmatpush3.bf16.msra.mxu0 %v4004_v37 }
 0xdf6   :  { %3097 = vmatprep.subr.bf16.mxu0 %v3808_v0 }
 0xdf8   :  { %3074 = vmatmul.mubr.msk.bf16.vlgmr.msra.gmra.mxu0 %vm290_vm4, %v890_v3 }
 0xdf9   :  { %3098 = vmatpush3.bf16.msra.mxu0 %v4017_v50  ;;  %3101 = vmatprep.mubr.msk.bf16.mxu0 %vm3809_vm0, %v3808_v0 }
 0xdfa   :  { %3099 = vmatprep.subr.bf16.mxu0 %v3808_v0 }
 0xdfd   :  { %3100 = vmatpush3.bf16.msra.mxu0 %v4020_v51 }
 0xdfe   :  { %3105 = vmatprep.subr.bf16.mxu0 %v3808_v0 }
 0xea8   :  { %v928_v18 = vpop.f32.mrf.mxu0 }
 0xea9   :  { %v929_v19 = vadd.f32 %v4077_v41, %v928_v18 }
 0xeaa   :  { %v3059_v20 = vpop.f32.mrf.mxu0 }
 0xeab   :  { %948 = vst [vmem:[#allocation18 + $0x8] sm:$0xff] %v929_v19  ;;  %v939_v21 = vadd.f32 %v938_v17, %v929_v19 }
 0xeac   :  { %v931_v22 = vpop.f32.mrf.mxu0 }
 0xead   :  { %940 = vmax.xlane.f32.xlu1 %v939_v21 }
 0xeae   :  { %v3060_v23 = vpop.f32.mrf.mxu0 }
 0xeb0   :  { %v983_v24 = vpop.f32.mrf.mxu0 }
 0xeb1   :  { %v984_v43 = vadd.f32 %v3997_v29, %v983_v24 }
 0xeb2   :  { %v3067_v25 = vpop.f32.mrf.mxu0 }
 0xeb4   :  { %v986_v26 = vpop.f32.mrf.mxu0 }
 0xeb6   :  { %v3068_v31 = vpop.f32.mrf.mxu0 }
 0xeb8   :  { %v4158_v33 = vpop.f32.mrf.mxu0 }
 0xeba   :  { %v3075_v34 = vpop.f32.mrf.mxu0 }
 0xebc   :  { %v1026_v36 = vpop.f32.mrf.mxu0 }
 0xebe   :  { %v3076_v39 = vpop.f32.mrf.mxu0 }
 0xf36   :  { %v941_v40 = vpop.xlane.xlu1 %940 }
 0xf37   :  { %vm942_vm8 = vcmp.eq.f32.partialorder %v939_v21, %v941_v40 }
 0xf38   :  { %v943_v49 = vsel %vm942_vm8, %v4083_v60, 128.0 }
 0xf39   :  { %944 = vmin.xlane.f32.xlu0 %v943_v49 }
 0xfc2   :  { %v4161_v42 = vpop.xlane.xlu0 %944 }
 0xfc3   :  { %vm946_vm9 = vcmp.eq.f32.partialorder %v4083_v60, %v4161_v42 }
 0xfc4   :  { %vm2724_vm10 = vmpackc.low %vm946_vm9, %vm946_vm9 }
 0xfc5   :  { %3094 = vmatmul.mubr.msk.bf16.vlgmr.msra.gmra.mxu1 %vm2724_vm10, %v3810_v16 }
 0xfc6   :  { %3130 = vmatpush3.bf16.msra.mxu1 %v3925_v4  ;;  %3145 = vmatprep.mubr.msk.bf16.mxu1 %vm3809_vm0, %v3808_v0 }
 0xfc7   :  { %3131 = vmatprep.subr.bf16.mxu1 %v3808_v0 }
 0xfca   :  { %3132 = vmatpush3.bf16.msra.mxu1 %v3929_v5 }
 0xfcb   :  { %3133 = vmatprep.subr.bf16.mxu1 %v3808_v0 }
 0xfce   :  { %3134 = vmatpush3.bf16.msra.mxu1 %v3935_v6 }
 0xfcf   :  { %3135 = vmatprep.subr.bf16.mxu1 %v3808_v0 }
 0xfd2   :  { %3136 = vmatpush3.bf16.msra.mxu1 %v3940_v8 }
 0xfd3   :  { %3137 = vmatprep.subr.bf16.mxu1 %v3808_v0 }
 0xfd6   :  { %3138 = vmatpush3.bf16.msra.mxu1 %v3947_v9 }
 0xfd7   :  { %3139 = vmatprep.subr.bf16.mxu1 %v3808_v0 }
 0xfda   :  { %3140 = vmatpush3.bf16.msra.mxu1 %v3951_v10 }
 0xfdb   :  { %3141 = vmatprep.subr.bf16.mxu1 %v3808_v0 }
 0xfde   :  { %3142 = vmatpush3.bf16.msra.mxu1 %v3955_v11 }
 0xfdf   :  { %3143 = vmatprep.subr.bf16.mxu1 %v3808_v0 }
 0xfe2   :  { %3144 = vmatpush3.bf16.msra.mxu1 %v3960_v13 }
 0xfe3   :  { %3181 = vmatprep.subr.bf16.mxu1 %v3808_v0 }
0x1085   :  { %v1066_v44 = vpop.f32.mrf.mxu1 }
0x1086   :  { %v1067_v45 = vadd.f32 %v1066_v44, %v984_v43 }
0x1087   :  { %v3095_v46 = vpop.f32.mrf.mxu1 }
0x1088   :  { %3446 = vtanh.f32 %v1067_v45  ;;  %v2726_v53 = vmul.f32 -1.442695, %v1067_v45 }
0x1089   :  { %v1069_v47 = vpop.f32.mrf.mxu1 }
0x108a   :  { %3448 = vpow2.f32 %v2726_v53 }
0x108b   :  { %v3096_v48 = vpop.f32.mrf.mxu1 }
0x1095   :  { %v3447_v52 = vpop.eup %3446 }
0x1096   :  { %1081 = vrot.lane.b32.xlu0 %v3447_v52, %s3796_s20 }
0x1097   :  { %v3449_v54 = vpop.eup %3448 }
0x1098   :  { %v1075_v55 = vadd.f32 1.0, %v3449_v54 }
0x109a   :  { %3450 = vrcp.f32 %v1075_v55 }
0x10a7   :  { %v3451_v57 = vpop.eup %3450 }
0x10a8   :  { %v1079_v62 = vmul.f32 %v3451_v57, %v4113_v32  ;;  %v1024_v32 = vadd.f32 %v4032_v61, %v4158_v33 }
0x1108   :  { %v1082_v56 = vpop.permute.xlu0 %1081 }
0x1109   :  { %v1084_v58 = vmul.f32 %v3451_v57, %v1082_v56 }
0x110b   :  { %1086 = vrot.lane.b32.xlu1 %v1084_v58, %s3812_s8 }
0x117d   :  { %v1087_v63 = vpop.permute.xlu1 %1086 }
0x117e   :  { %v4188_v14 = vadd.f32 %v1087_v63, %v1079_v62 }
0x1180   :  { %3452 = vtanh.f32 %v4188_v14 }
0x118d   :  { %v3453_v2 = vpop.eup %3452 }
0x118e   :  { %1092 = vrot.lane.b32.xlu1 %v3453_v2, %s3796_s20 }
0x1200   :  { %v1093_v3 = vpop.permute.xlu1 %1092 }
0x1201   :  { %v1095_v27 = vmul.f32 %v3451_v57, %v1093_v3 }
0x1203   :  { %v1096_v12 = vpack.c.bf16 %v1095_v27, %v1095_v27 }
0x1205   :  { %1098 = vrot.lane.b32.xlu0 %v1096_v12, %s3812_s8 }
0x1277   :  { %v1099_v17 = vpop.permute.xlu0 %1098 }
0x1278   :  { %3102 = vmatmul.mubr.msk.bf16.vlgmr.msra.gmra.mxu0 %vm290_vm4, %v1099_v17 }
0x1279   :  { %3106 = vmatpush3.bf16.msra.mxu0 %v4040_v28  ;;  %3109 = vmatprep.mubr.msk.bf16.mxu0 %vm3809_vm0, %v3808_v0 }
0x127a   :  { %3107 = vmatprep.subr.bf16.mxu0 %v3808_v0 }
0x127d   :  { %3108 = vmatpush3.bf16.msra.mxu0 %v4043_v30 }
0x127e   :  { %3113 = vmatprep.subr.bf16.mxu0 %v3808_v0 }
0x1338   :  { %v1137_v18 = vpop.f32.mrf.mxu0 }
0x1339   :  { %v1138_v19 = vadd.f32 %v1137_v18, %v1024_v32 }
0x133a   :  { %v3103_v20 = vpop.f32.mrf.mxu0 }
0x133b   :  { %3454 = vtanh.f32 %v1138_v19  ;;  %v2728_v24 = vmul.f32 -1.442695, %v1138_v19 }
0x133c   :  { %v1140_v21 = vpop.f32.mrf.mxu0 }
0x133d   :  { %3456 = vpow2.f32 %v2728_v24 }
0x133e   :  { %v3104_v22 = vpop.f32.mrf.mxu0 }
0x1348   :  { %v3455_v23 = vpop.eup %3454 }
0x1349   :  { %1152 = vrot.lane.b32.xlu1 %v3455_v23, %s3796_s20 }
0x134a   :  { %v3457_v25 = vpop.eup %3456 }
0x134b   :  { %v1146_v26 = vadd.f32 1.0, %v3457_v25 }
0x134d   :  { %3458 = vrcp.f32 %v1146_v26 }
0x135a   :  { %v3459_v31 = vpop.eup %3458 }
0x135b   :  { %v1150_v33 = vmul.f32 %v3459_v31, %v4130_v59 }
0x13bb   :  { %v1153_v34 = vpop.permute.xlu1 %1152 }
0x13bc   :  { %v1155_v36 = vmul.f32 %v3459_v31, %v1153_v34 }
0x13be   :  { %1157 = vrot.lane.b32.xlu0 %v1155_v36, %s3812_s8 }
0x1430   :  { %v1158_v39 = vpop.permute.xlu0 %1157 }
0x1431   :  { %v4205_v40 = vadd.f32 %v1158_v39, %v1150_v33 }
0x1433   :  { %3460 = vtanh.f32 %v4205_v40 }
0x1440   :  { %v3461_v49 = vpop.eup %3460 }
0x1441   :  { %1163 = vrot.lane.b32.xlu1 %v3461_v49, %s3796_s20 }
0x14b3   :  { %v1164_v43 = vpop.permute.xlu1 %1163 }
0x14b4   :  { %v1166_v44 = vmul.f32 %v3459_v31, %v1164_v43 }
0x14b6   :  { %v1167_v45 = vpack.c.bf16 %v1166_v44, %v1166_v44 }
0x14b8   :  { %1169 = vrot.lane.b32.xlu0 %v1167_v45, %s3812_s8 }
0x152a   :  { %v1170_v46 = vpop.permute.xlu0 %1169 }
0x152b   :  { %3110 = vmatmul.mubr.msk.bf16.vlgmr.msra.gmra.mxu0 %vm290_vm4, %v1170_v46 }
0x152c   :  { %3114 = vmatpush3.bf16.msra.mxu0 %v3938_v7  ;;  %3117 = vmatprep.mubr.msk.bf16.mxu0 %vm3809_vm0, %v3808_v0  ;;  %v1216_v7 = vunpack.c.2.s8 %v4074_v38 }
0x152d   :  { %3115 = vmatprep.subr.bf16.mxu0 %v3808_v0 }
0x1530   :  { %3116 = vmatpush3.bf16.msra.mxu0 %v3967_v15  ;;  %v1217_v15 = vcvt.s32.f32 %v1216_v7 }
0x1531   :  { %3121 = vmatprep.subr.bf16.mxu0 %v3808_v0 }
0x1532   :  { %v1218_v59 = vmul.f32 -1e+08, %v1217_v15 }
0x1533   :  { %3118 = vmatmul.mubr.msk.bf16.vlgmr.msra.gmra.mxu0 %vm290_vm4, %v1099_v17 }
0x1534   :  { %3122 = vmatpush3.bf16.msra.mxu0 %v4000_v35  ;;  %3125 = vmatprep.mubr.msk.bf16.mxu0 %vm3809_vm0, %v3808_v0 }
0x1535   :  { %3123 = vmatprep.subr.bf16.mxu0 %v3808_v0 }
0x1538   :  { %3124 = vmatpush3.bf16.msra.mxu0 %v4004_v37 }
0x1539   :  { %3149 = vmatprep.subr.bf16.mxu0 %v3808_v0 }
0x153b   :  { %3126 = vmatmul.mubr.msk.bf16.vlgmr.msra.gmra.mxu0 %vm290_vm4, %v1170_v46 }
0x153c   :  { %3150 = vmatpush3.bf16.msra.mxu0 %v4017_v50  ;;  %3153 = vmatprep.mubr.msk.bf16.mxu0 %vm3809_vm0, %v3808_v0 }
0x153d   :  { %3151 = vmatprep.subr.bf16.mxu0 %v3808_v0 }
0x1540   :  { %3152 = vmatpush3.bf16.msra.mxu0 %v4020_v51 }
0x1541   :  { %3157 = vmatprep.subr.bf16.mxu0 %v3808_v0 }
0x15eb   :  { %v1208_v47 = vpop.f32.mrf.mxu0 }
0x15ec   :  { %v1209_v48 = vadd.f32 %v4077_v41, %v1208_v47 }
0x15ed   :  { %v3111_v52 = vpop.f32.mrf.mxu0 }
0x15ee   :  { %1228 = vst [vmem:[#allocation18 + $0x10] sm:$0xff] %v1209_v48  ;;  %v1219_v53 = vadd.f32 %v1218_v59, %v1209_v48 }
0x15ef   :  { %v1211_v54 = vpop.f32.mrf.mxu0 }
0x15f0   :  { %1220 = vmax.xlane.f32.xlu1 %v1219_v53 }
0x15f1   :  { %v3112_v55 = vpop.f32.mrf.mxu0 }
0x15f3   :  { %v1263_v57 = vpop.f32.mrf.mxu0 }
0x15f5   :  { %v3119_v56 = vpop.f32.mrf.mxu0 }
0x15f7   :  { %v1266_v58 = vpop.f32.mrf.mxu0 }
0x15f9   :  { %v3120_v62 = vpop.f32.mrf.mxu0 }
0x15fa   :  { %v4286_v62 = vld [vmem:[#allocation11 + $0x8] sm:$0xff]  }
0x15fb   :  { %v4233_v63 = vpop.f32.mrf.mxu0 }
0x15fd   :  { %v3127_v2 = vpop.f32.mrf.mxu0 }
0x15ff   :  { %v1306_v3 = vpop.f32.mrf.mxu0 }
0x1601   :  { %v3128_v27 = vpop.f32.mrf.mxu0 }
0x1679   :  { %v1221_v12 = vpop.xlane.xlu1 %1220 }
0x167a   :  { %vm1222_vm11 = vcmp.eq.f32.partialorder %v1219_v53, %v1221_v12 }
0x167b   :  { %v1223_v17 = vsel %vm1222_vm11, %v4083_v60, 128.0 }
0x167c   :  { %1224 = vmin.xlane.f32.xlu0 %v1223_v17 }
0x1705   :  { %v4236_v32 = vpop.xlane.xlu0 %1224 }
0x1706   :  { %vm1226_vm12 = vcmp.eq.f32.partialorder %v4083_v60, %v4236_v32 }
0x1707   :  { %vm2734_vm13 = vmpackc.low %vm1226_vm12, %vm1226_vm12 }
0x1708   :  { %3146 = vmatmul.mubr.msk.bf16.vlgmr.msra.gmra.mxu1 %vm2734_vm13, %v3810_v16 }
0x1709   :  { %3182 = vmatpush3.bf16.msra.mxu1 %v3925_v4  ;;  %3197 = vmatprep.mubr.msk.bf16.mxu1 %vm3809_vm0, %v3808_v0  ;;  %v1264_v4 = vadd.f32 %v3997_v29, %v1263_v57 }
0x170a   :  { %3183 = vmatprep.subr.bf16.mxu1 %v3808_v0 }
0x170d   :  { %3184 = vmatpush3.bf16.msra.mxu1 %v3929_v5 }
0x170e   :  { %3185 = vmatprep.subr.bf16.mxu1 %v3808_v0 }
0x1711   :  { %3186 = vmatpush3.bf16.msra.mxu1 %v3935_v6 }
0x1712   :  { %3187 = vmatprep.subr.bf16.mxu1 %v3808_v0 }
0x1715   :  { %3188 = vmatpush3.bf16.msra.mxu1 %v3940_v8 }
0x1716   :  { %3189 = vmatprep.subr.bf16.mxu1 %v3808_v0 }
0x1719   :  { %3190 = vmatpush3.bf16.msra.mxu1 %v3947_v9 }
0x171a   :  { %3191 = vmatprep.subr.bf16.mxu1 %v3808_v0 }
0x171d   :  { %3192 = vmatpush3.bf16.msra.mxu1 %v3951_v10 }
0x171e   :  { %3193 = vmatprep.subr.bf16.mxu1 %v3808_v0 }
0x1721   :  { %3194 = vmatpush3.bf16.msra.mxu1 %v3955_v11 }
0x1722   :  { %3195 = vmatprep.subr.bf16.mxu1 %v3808_v0 }
0x1725   :  { %3196 = vmatpush3.bf16.msra.mxu1 %v3960_v13 }
0x1726   :  { %3233 = vmatprep.subr.bf16.mxu1 %v3808_v0 }
0x17c8   :  { %v1346_v5 = vpop.f32.mrf.mxu1 }
0x17c9   :  { %v1347_v6 = vadd.f32 %v1346_v5, %v1264_v4 }
0x17ca   :  { %v3147_v8 = vpop.f32.mrf.mxu1 }
0x17cb   :  { %3462 = vtanh.f32 %v1347_v6  ;;  %v2736_v10 = vmul.f32 -1.442695, %v1347_v6 }
0x17cc   :  { %v1349_v9 = vpop.f32.mrf.mxu1 }
0x17cd   :  { %3464 = vpow2.f32 %v2736_v10 }
0x17ce   :  { %v3148_v18 = vpop.f32.mrf.mxu1 }
0x17d8   :  { %v3463_v19 = vpop.eup %3462 }
0x17d9   :  { %1361 = vrot.lane.b32.xlu0 %v3463_v19, %s3796_s20 }
0x17da   :  { %v3465_v11 = vpop.eup %3464 }
0x17db   :  { %v1355_v20 = vadd.f32 1.0, %v3465_v11 }
0x17dd   :  { %3466 = vrcp.f32 %v1355_v20  ;;  %v4320_v20 = vld [vmem:[#allocation8 + $0x38] sm:$0xff]  }
0x17ea   :  { %v3467_v21 = vpop.eup %3466 }
0x17eb   :  { %v1359_v29 = vmul.f32 %v3467_v21, %v4188_v14  ;;  %v1304_v14 = vadd.f32 %v4032_v61, %v4233_v63 }
0x184b   :  { %v1362_v13 = vpop.permute.xlu0 %1361 }
0x184c   :  { %v1364_v22 = vmul.f32 %v3467_v21, %v1362_v13  ;;  %v4330_v13 = vld [vmem:[#allocation8 + $0x28] sm:$0xff]  }
0x184e   :  { %1366 = vrot.lane.b32.xlu1 %v1364_v22, %s3812_s8  ;;  %v4334_v22 = vld [vmem:[#allocation8 + $0x20] sm:$0xff]  }
0x18c0   :  { %v1367_v23 = vpop.permute.xlu1 %1366 }
0x18c1   :  { %v4263_v24 = vadd.f32 %v1367_v23, %v1359_v29  ;;  %v4338_v29 = vld [vmem:[#allocation8 + $0x18] sm:$0xff]   ;;  %v4342_v23 = vld [vmem:[#allocation8 + $0x10] sm:$0xff]  }
0x18c3   :  { %3468 = vtanh.f32 %v4263_v24 }
0x18d0   :  { %v3469_v25 = vpop.eup %3468 }
0x18d1   :  { %1372 = vrot.lane.b32.xlu1 %v3469_v25, %s3796_s20  ;;  %v4346_v25 = vld [vmem:[#allocation8 + $0x8] sm:$0xff]  }
0x1943   :  { %v1373_v26 = vpop.permute.xlu1 %1372 }
0x1944   :  { %v1375_v31 = vmul.f32 %v3467_v21, %v1373_v26  ;;  %v4326_v21 = vld [vmem:[#allocation8 + $0x30] sm:$0xff]   ;;  %v4350_v26 = vld [vmem:[#allocation8] sm:$0xff]  }
0x1946   :  { %v1376_v34 = vpack.c.bf16 %v1375_v31, %v1375_v31  ;;  %v4354_v31 = vld [vmem:[#allocation13] ss:$0 sm:$0xff] }
0x1948   :  { %1378 = vrot.lane.b32.xlu0 %v1376_v34, %s3812_s8 }
0x19ba   :  { %v1379_v36 = vpop.permute.xlu0 %1378 }
0x19bb   :  { %3154 = vmatmul.mubr.msk.bf16.vlgmr.msra.gmra.mxu0 %vm290_vm4, %v1379_v36 }
0x19bc   :  { %3158 = vmatpush3.bf16.msra.mxu0 %v4040_v28  ;;  %3161 = vmatprep.mubr.msk.bf16.mxu0 %vm3809_vm0, %v3808_v0 }
0x19bd   :  { %3159 = vmatprep.subr.bf16.mxu0 %v3808_v0 }
0x19c0   :  { %3160 = vmatpush3.bf16.msra.mxu0 %v4043_v30 }
0x19c1   :  { %3165 = vmatprep.subr.bf16.mxu0 %v3808_v0 }
0x1a7b   :  { %v1417_v33 = vpop.f32.mrf.mxu0 }
0x1a7c   :  { %v1418_v39 = vadd.f32 %v1417_v33, %v1304_v14 }
0x1a7d   :  { %v3155_v49 = vpop.f32.mrf.mxu0 }
0x1a7e   :  { %3470 = vtanh.f32 %v1418_v39  ;;  %v2738_v46 = vmul.f32 -1.442695, %v1418_v39 }
0x1a7f   :  { %v1420_v43 = vpop.f32.mrf.mxu0 }
0x1a80   :  { %3472 = vpow2.f32 %v2738_v46 }
0x1a81   :  { %v3156_v44 = vpop.f32.mrf.mxu0 }
0x1a8b   :  { %v3471_v45 = vpop.eup %3470 }
0x1a8c   :  { %1432 = vrot.lane.b32.xlu1 %v3471_v45, %s3796_s20 }
0x1a8d   :  { %v3473_v7 = vpop.eup %3472 }
0x1a8e   :  { %v1426_v15 = vadd.f32 1.0, %v3473_v7 }
0x1a90   :  { %3474 = vrcp.f32 %v1426_v15 }
0x1a9d   :  { %v3475_v59 = vpop.eup %3474 }
0x1a9e   :  { %v1430_v61 = vmul.f32 %v3475_v59, %v4205_v40  ;;  %v4292_v40 = vld [vmem:[#allocation11] sm:$0xff]  }
0x1afe   :  { %v1433_v47 = vpop.permute.xlu1 %1432 }
0x1aff   :  { %v1435_v48 = vmul.f32 %v3475_v59, %v1433_v47 }
0x1b01   :  { %1437 = vrot.lane.b32.xlu0 %v1435_v48, %s3812_s8 }
0x1b73   :  { %v1438_v52 = vpop.permute.xlu0 %1437 }
0x1b74   :  { %v4280_v53 = vadd.f32 %v1438_v52, %v1430_v61 }
0x1b76   :  { %3476 = vtanh.f32 %v4280_v53 }
0x1b83   :  { %v3477_v54 = vpop.eup %3476 }
0x1b84   :  { %1443 = vrot.lane.b32.xlu1 %v3477_v54, %s3796_s20 }
0x1bf6   :  { %v1444_v55 = vpop.permute.xlu1 %1443 }
0x1bf7   :  { %v1446_v57 = vmul.f32 %v3475_v59, %v1444_v55 }
0x1bf9   :  { %v1447_v56 = vpack.c.bf16 %v1446_v57, %v1446_v57 }
0x1bfb   :  { %1449 = vrot.lane.b32.xlu0 %v1447_v56, %s3812_s8 }
0x1c6d   :  { %v1450_v58 = vpop.permute.xlu0 %1449 }
0x1c6e   :  { %3162 = vmatmul.mubr.msk.bf16.vlgmr.msra.gmra.mxu0 %vm290_vm4, %v1450_v58 }
0x1c6f   :  { %3166 = vmatpush3.bf16.msra.mxu0 %v4286_v62  ;;  %3169 = vmatprep.mubr.msk.bf16.mxu0 %vm3809_vm0, %v3808_v0 }
0x1c70   :  { %3167 = vmatprep.subr.bf16.mxu0 %v3808_v0 }
0x1c73   :  { %3168 = vmatpush3.bf16.msra.mxu0 %v4292_v40 }
0x1c74   :  { %3173 = vmatprep.subr.bf16.mxu0 %v3808_v0 }
0x1c76   :  { %3170 = vmatmul.mubr.msk.bf16.vlgmr.msra.gmra.mxu0 %vm290_vm4, %v1379_v36 }
0x1c77   :  { %3174 = vmatpush3.bf16.msra.mxu0 %v4000_v35  ;;  %3177 = vmatprep.mubr.msk.bf16.mxu0 %vm3809_vm0, %v3808_v0  ;;  %v1496_v35 = vunpack.c.3.s8 %v4074_v38 }
0x1c78   :  { %3175 = vmatprep.subr.bf16.mxu0 %v3808_v0 }
0x1c79   :  { %v1497_v63 = vcvt.s32.f32 %v1496_v35 }
0x1c7b   :  { %3176 = vmatpush3.bf16.msra.mxu0 %v4004_v37  ;;  %v1498_v2 = vmul.f32 -1e+08, %v1497_v63 }
0x1c7c   :  { %3201 = vmatprep.subr.bf16.mxu0 %v3808_v0 }
0x1c7e   :  { %3178 = vmatmul.mubr.msk.bf16.vlgmr.msra.gmra.mxu0 %vm290_vm4, %v1450_v58 }
0x1c7f   :  { %3202 = vmatpush3.bf16.msra.mxu0 %v4017_v50  ;;  %3205 = vmatprep.mubr.msk.bf16.mxu0 %vm3809_vm0, %v3808_v0 }
0x1c80   :  { %3203 = vmatprep.subr.bf16.mxu0 %v3808_v0 }
0x1c83   :  { %3204 = vmatpush3.bf16.msra.mxu0 %v4020_v51 }
0x1c84   :  { %3209 = vmatprep.subr.bf16.mxu0 %v3808_v0 }
0x1d2e   :  { %v1488_v37 = vpop.f32.mrf.mxu0 }
0x1d2f   :  { %v1489_v3 = vadd.f32 %v4077_v41, %v1488_v37 }
0x1d30   :  { %v3163_v27 = vpop.f32.mrf.mxu0 }
0x1d31   :  { %1508 = vst [vmem:[#allocation18 + $0x18] sm:$0xff] %v1489_v3  ;;  %v1499_v12 = vadd.f32 %v1498_v2, %v1489_v3 }
0x1d32   :  { %v1491_v50 = vpop.f32.mrf.mxu0 }
0x1d33   :  { %1500 = vmax.xlane.f32.xlu1 %v1499_v12 }
0x1d34   :  { %v3164_v17 = vpop.f32.mrf.mxu0 }
0x1d36   :  { %v1543_v4 = vpop.f32.mrf.mxu0 }
0x1d37   :  { %v1544_v34 = vadd.f32 %v4354_v31, %v1543_v4 }
0x1d38   :  { %v3171_v5 = vpop.f32.mrf.mxu0 }
0x1d3a   :  { %v1546_v6 = vpop.f32.mrf.mxu0 }
0x1d3c   :  { %v3172_v8 = vpop.f32.mrf.mxu0 }
0x1d3e   :  { %v4312_v51 = vpop.f32.mrf.mxu0 }
0x1d40   :  { %v3179_v9 = vpop.f32.mrf.mxu0 }
0x1d42   :  { %v1586_v18 = vpop.f32.mrf.mxu0 }
0x1d44   :  { %v3180_v38 = vpop.f32.mrf.mxu0 }
0x1dbc   :  { %v1501_v19 = vpop.xlane.xlu1 %1500 }
0x1dbd   :  { %vm1502_vm14 = vcmp.eq.f32.partialorder %v1499_v12, %v1501_v19 }
0x1dbe   :  { %v1503_v10 = vsel %vm1502_vm14, %v4083_v60, 128.0 }
0x1dbf   :  { %1504 = vmin.xlane.f32.xlu0 %v1503_v10  ;;  %v4398_v10 = vld [vmem:[#allocation11 + $0x10] sm:$0xff]  }
0x1e48   :  { %v4315_v11 = vpop.xlane.xlu0 %1504 }
0x1e49   :  { %vm1506_vm15 = vcmp.eq.f32.partialorder %v4083_v60, %v4315_v11 }
0x1e4a   :  { %vm2744_vm1 = vmpackc.low %vm1506_vm15, %vm1506_vm15 }
0x1e4b   :  { %3198 = vmatmul.mubr.msk.bf16.vlgmr.msra.gmra.mxu1 %vm2744_vm1, %v3810_v16 }
0x1e4c   :  { %3234 = vmatpush3.bf16.msra.mxu1 %v4320_v20  ;;  %3249 = vmatprep.mubr.msk.bf16.mxu1 %vm3809_vm0, %v3808_v0 }
0x1e4d   :  { %3235 = vmatprep.subr.bf16.mxu1 %v3808_v0 }
0x1e50   :  { %3236 = vmatpush3.bf16.msra.mxu1 %v4326_v21 }
0x1e51   :  { %3237 = vmatprep.subr.bf16.mxu1 %v3808_v0 }
0x1e54   :  { %3238 = vmatpush3.bf16.msra.mxu1 %v4330_v13 }
0x1e55   :  { %3239 = vmatprep.subr.bf16.mxu1 %v3808_v0 }
0x1e58   :  { %3240 = vmatpush3.bf16.msra.mxu1 %v4334_v22 }
0x1e59   :  { %3241 = vmatprep.subr.bf16.mxu1 %v3808_v0 }
0x1e5c   :  { %3242 = vmatpush3.bf16.msra.mxu1 %v4338_v29 }
0x1e5d   :  { %3243 = vmatprep.subr.bf16.mxu1 %v3808_v0 }
0x1e60   :  { %3244 = vmatpush3.bf16.msra.mxu1 %v4342_v23 }
0x1e61   :  { %3245 = vmatprep.subr.bf16.mxu1 %v3808_v0 }
0x1e64   :  { %3246 = vmatpush3.bf16.msra.mxu1 %v4346_v25 }
0x1e65   :  { %3247 = vmatprep.subr.bf16.mxu1 %v3808_v0 }
0x1e68   :  { %3248 = vmatpush3.bf16.msra.mxu1 %v4350_v26 }
0x1e69   :  { %3285 = vmatprep.subr.bf16.mxu1 %v3808_v0 }
0x1f0b   :  { %v1626_v36 = vpop.f32.mrf.mxu1 }
0x1f0c   :  { %v1627_v14 = vadd.f32 %v1626_v36, %v1544_v34  ;;  %v4403_v34 = vld [vmem:[#allocation10 + $0x8] sm:$0xff]   ;;  %v4409_v36 = vld [vmem:[#allocation10] sm:$0xff]  }
0x1f0d   :  { %v3199_v33 = vpop.f32.mrf.mxu1 }
0x1f0e   :  { %3478 = vtanh.f32 %v1627_v14  ;;  %v2746_v44 = vmul.f32 -1.442695, %v1627_v14  ;;  %v4416_v14 = vld [vmem:[%s4625_s9 + $0x8] sm:$0xff]   ;;  %s3813_s9 = smov [#allocation18]  }
0x1f0f   :  { %v1629_v39 = vpop.f32.mrf.mxu1  ;;  %v1776_v33 = vunpack.c.0.s8 %v4416_v14 }
0x1f10   :  { %3480 = vpow2.f32 %v2746_v44 }
0x1f11   :  { %v3200_v49 = vpop.f32.mrf.mxu1  ;;  %v1777_v39 = vcvt.s32.f32 %v1776_v33 }
0x1f13   :  { %v1778_v49 = vmul.f32 -1e+08, %v1777_v39 }
0x1f1b   :  { %v3479_v43 = vpop.eup %3478 }
0x1f1c   :  { %1641 = vrot.lane.b32.xlu0 %v3479_v43, %s3796_s20 }
0x1f1d   :  { %v3481_v45 = vpop.eup %3480 }
0x1f1e   :  { %v1635_v46 = vadd.f32 1.0, %v3481_v45 }
0x1f20   :  { %3482 = vrcp.f32 %v1635_v46 }
0x1f2d   :  { %v3483_v7 = vpop.eup %3482 }
0x1f2e   :  { %v1639_v47 = vmul.f32 %v3483_v7, %v4263_v24  ;;  %v4372_v24 = vld [vmem:[#allocation13 + $0x1] ss:$0 sm:$0xff] }
0x1f2f   :  { %v1584_v58 = vadd.f32 %v4372_v24, %v4312_v51 }
0x1f8e   :  { %v1642_v15 = vpop.permute.xlu0 %1641 }
0x1f8f   :  { %v1644_v59 = vmul.f32 %v3483_v7, %v1642_v15 }
0x1f91   :  { %1646 = vrot.lane.b32.xlu1 %v1644_v59, %s3812_s8 }
0x2003   :  { %v1647_v48 = vpop.permute.xlu1 %1646 }
0x2004   :  { %v4360_v61 = vadd.f32 %v1647_v48, %v1639_v47 }
0x2006   :  { %3484 = vtanh.f32 %v4360_v61 }
0x2013   :  { %v3485_v52 = vpop.eup %3484 }
0x2014   :  { %1652 = vrot.lane.b32.xlu1 %v3485_v52, %s3796_s20 }
0x2086   :  { %v1653_v54 = vpop.permute.xlu1 %1652 }
0x2087   :  { %v1655_v55 = vmul.f32 %v3483_v7, %v1653_v54 }
0x2089   :  { %v1656_v57 = vpack.c.bf16 %v1655_v55, %v1655_v55 }
0x208b   :  { %1658 = vrot.lane.b32.xlu0 %v1656_v57, %s3812_s8 }
0x20fd   :  { %v1659_v56 = vpop.permute.xlu0 %1658 }
0x20fe   :  { %3206 = vmatmul.mubr.msk.bf16.vlgmr.msra.gmra.mxu0 %vm290_vm4, %v1659_v56 }
0x20ff   :  { %3210 = vmatpush3.bf16.msra.mxu0 %v4040_v28  ;;  %3213 = vmatprep.mubr.msk.bf16.mxu0 %vm3809_vm0, %v3808_v0 }
0x2100   :  { %3211 = vmatprep.subr.bf16.mxu0 %v3808_v0 }
0x2103   :  { %3212 = vmatpush3.bf16.msra.mxu0 %v4043_v30 }
0x2104   :  { %3217 = vmatprep.subr.bf16.mxu0 %v3808_v0 }
0x21be   :  { %v1697_v35 = vpop.f32.mrf.mxu0 }
0x21bf   :  { %v1698_v63 = vadd.f32 %v1697_v35, %v1584_v58 }
0x21c0   :  { %v3207_v2 = vpop.f32.mrf.mxu0 }
0x21c1   :  { %3486 = vtanh.f32 %v1698_v63  ;;  %v2748_v27 = vmul.f32 -1.442695, %v1698_v63 }
0x21c2   :  { %v1700_v37 = vpop.f32.mrf.mxu0 }
0x21c3   :  { %3488 = vpow2.f32 %v2748_v27 }
0x21c4   :  { %v3208_v28 = vpop.f32.mrf.mxu0 }
0x21ce   :  { %v3487_v3 = vpop.eup %3486 }
0x21cf   :  { %1712 = vrot.lane.b32.xlu1 %v3487_v3, %s3796_s20 }
0x21d0   :  { %v3489_v12 = vpop.eup %3488 }
0x21d1   :  { %v1706_v30 = vadd.f32 1.0, %v3489_v12 }
0x21d3   :  { %3490 = vrcp.f32 %v1706_v30 }
0x21e0   :  { %v3491_v50 = vpop.eup %3490 }
0x21e1   :  { %v1710_v5 = vmul.f32 %v3491_v50, %v4280_v53  ;;  %v4392_v53 = vld [vmem:[#allocation11 + $0x18] sm:$0xff]  }
0x2241   :  { %v1713_v17 = vpop.permute.xlu1 %1712 }
0x2242   :  { %v1715_v4 = vmul.f32 %v3491_v50, %v1713_v17 }
0x2244   :  { %1717 = vrot.lane.b32.xlu0 %v1715_v4, %s3812_s8 }
0x22b6   :  { %v1718_v6 = vpop.permute.xlu0 %1717 }
0x22b7   :  { %v4379_v8 = vadd.f32 %v1718_v6, %v1710_v5 }
0x22b9   :  { %3492 = vtanh.f32 %v4379_v8 }
0x22c6   :  { %v3493_v51 = vpop.eup %3492 }
0x22c7   :  { %1723 = vrot.lane.b32.xlu1 %v3493_v51, %s3796_s20 }
0x2339   :  { %v1724_v9 = vpop.permute.xlu1 %1723 }
0x233a   :  { %v1726_v18 = vmul.f32 %v3491_v50, %v1724_v9 }
0x233c   :  { %v1727_v38 = vpack.c.bf16 %v1726_v18, %v1726_v18 }
0x233e   :  { %1729 = vrot.lane.b32.xlu0 %v1727_v38, %s3812_s8 }
0x23b0   :  { %v1730_v19 = vpop.permute.xlu0 %1729 }
0x23b1   :  { %3214 = vmatmul.mubr.msk.bf16.vlgmr.msra.gmra.mxu0 %vm290_vm4, %v1730_v19 }
0x23b2   :  { %3218 = vmatpush3.bf16.msra.mxu0 %v4286_v62  ;;  %3221 = vmatprep.mubr.msk.bf16.mxu0 %vm3809_vm0, %v3808_v0 }
0x23b3   :  { %3219 = vmatprep.subr.bf16.mxu0 %v3808_v0 }
0x23b6   :  { %3220 = vmatpush3.bf16.msra.mxu0 %v4292_v40 }
0x23b7   :  { %3225 = vmatprep.subr.bf16.mxu0 %v3808_v0 }
0x23b9   :  { %3222 = vmatmul.mubr.msk.bf16.vlgmr.msra.gmra.mxu0 %vm290_vm4, %v1659_v56 }
0x23ba   :  { %3226 = vmatpush3.bf16.msra.mxu0 %v4392_v53  ;;  %3229 = vmatprep.mubr.msk.bf16.mxu0 %vm3809_vm0, %v3808_v0 }
0x23bb   :  { %3227 = vmatprep.subr.bf16.mxu0 %v3808_v0 }
0x23be   :  { %3228 = vmatpush3.bf16.msra.mxu0 %v4398_v10 }
0x23bf   :  { %3253 = vmatprep.subr.bf16.mxu0 %v3808_v0 }
0x23c1   :  { %3230 = vmatmul.mubr.msk.bf16.vlgmr.msra.gmra.mxu0 %vm290_vm4, %v1730_v19 }
0x23c2   :  { %3254 = vmatpush3.bf16.msra.mxu0 %v4403_v34  ;;  %3257 = vmatprep.mubr.msk.bf16.mxu0 %vm3809_vm0, %v3808_v0 }
0x23c3   :  { %3255 = vmatprep.subr.bf16.mxu0 %v3808_v0 }
0x23c6   :  { %3256 = vmatpush3.bf16.msra.mxu0 %v4409_v36 }
0x23c7   :  { %3261 = vmatprep.subr.bf16.mxu0 %v3808_v0 }
0x2471   :  { %v1768_v43 = vpop.f32.mrf.mxu0 }
0x2472   :  { %v1769_v44 = vadd.f32 %v4077_v41, %v1768_v43  ;;  %v4456_v43 = vld [vmem:[#allocation14 + $0x8] sm:$0xff]  }
0x2473   :  { %v3215_v45 = vpop.f32.mrf.mxu0 }
0x2474   :  { %1788 = vst [vmem:[#allocation18 + $0x20] sm:$0xff] %v1769_v44  ;;  %v1779_v46 = vadd.f32 %v1778_v49, %v1769_v44 }
0x2475   :  { %v1771_v7 = vpop.f32.mrf.mxu0 }
0x2476   :  { %1780 = vmax.xlane.f32.xlu1 %v1779_v46 }
0x2477   :  { %v3216_v15 = vpop.f32.mrf.mxu0 }
0x2479   :  { %v1823_v59 = vpop.f32.mrf.mxu0 }
0x247a   :  { %v1824_v63 = vadd.f32 %v4354_v31, %v1823_v59 }
0x247b   :  { %v3223_v47 = vpop.f32.mrf.mxu0 }
0x247d   :  { %v1826_v48 = vpop.f32.mrf.mxu0 }
0x247f   :  { %v3224_v52 = vpop.f32.mrf.mxu0 }
0x2481   :  { %v4420_v54 = vpop.f32.mrf.mxu0 }
0x2482   :  { %v1864_v44 = vadd.f32 %v4372_v24, %v4420_v54 }
0x2483   :  { %v3231_v55 = vpop.f32.mrf.mxu0 }
0x2485   :  { %v1866_v57 = vpop.f32.mrf.mxu0 }
0x2487   :  { %v3232_v56 = vpop.f32.mrf.mxu0 }
0x24ff   :  { %v1781_v58 = vpop.xlane.xlu1 %1780 }
0x2500   :  { %vm1782_vm2 = vcmp.eq.f32.partialorder %v1779_v46, %v1781_v58 }
0x2501   :  { %v1783_v35 = vsel %vm1782_vm2, %v4083_v60, 128.0 }
0x2502   :  { %1784 = vmin.xlane.f32.xlu0 %v1783_v35 }
0x258b   :  { %v4423_v41 = vpop.xlane.xlu0 %1784 }
0x258c   :  { %vm1786_vm3 = vcmp.eq.f32.partialorder %v4083_v60, %v4423_v41 }
0x258d   :  { %vm2754_vm5 = vmpackc.low %vm1786_vm3, %vm1786_vm3 }
0x258e   :  { %3250 = vmatmul.mubr.msk.bf16.vlgmr.msra.gmra.mxu1 %vm2754_vm5, %v3810_v16 }
0x258f   :  { %3286 = vmatpush3.bf16.msra.mxu1 %v4320_v20  ;;  %3301 = vmatprep.mubr.msk.bf16.mxu1 %vm3809_vm0, %v3808_v0 }
0x2590   :  { %3287 = vmatprep.subr.bf16.mxu1 %v3808_v0 }
0x2593   :  { %3288 = vmatpush3.bf16.msra.mxu1 %v4326_v21 }
0x2594   :  { %3289 = vmatprep.subr.bf16.mxu1 %v3808_v0 }
0x2597   :  { %3290 = vmatpush3.bf16.msra.mxu1 %v4330_v13 }
0x2598   :  { %3291 = vmatprep.subr.bf16.mxu1 %v3808_v0 }
0x259b   :  { %3292 = vmatpush3.bf16.msra.mxu1 %v4334_v22 }
0x259c   :  { %3293 = vmatprep.subr.bf16.mxu1 %v3808_v0 }
0x259f   :  { %3294 = vmatpush3.bf16.msra.mxu1 %v4338_v29 }
0x25a0   :  { %3295 = vmatprep.subr.bf16.mxu1 %v3808_v0 }
0x25a3   :  { %3296 = vmatpush3.bf16.msra.mxu1 %v4342_v23 }
0x25a4   :  { %3297 = vmatprep.subr.bf16.mxu1 %v3808_v0 }
0x25a7   :  { %3298 = vmatpush3.bf16.msra.mxu1 %v4346_v25 }
0x25a8   :  { %3299 = vmatprep.subr.bf16.mxu1 %v3808_v0 }
0x25ab   :  { %3300 = vmatpush3.bf16.msra.mxu1 %v4350_v26 }
0x25ac   :  { %3337 = vmatprep.subr.bf16.mxu1 %v3808_v0 }
0x264e   :  { %v1906_v2 = vpop.f32.mrf.mxu1 }
0x264f   :  { %v1907_v37 = vadd.f32 %v1906_v2, %v1824_v63 }
0x2650   :  { %v3251_v28 = vpop.f32.mrf.mxu1 }
0x2651   :  { %3494 = vtanh.f32 %v1907_v37  ;;  %v2756_v30 = vmul.f32 -1.442695, %v1907_v37 }
0x2652   :  { %v1909_v3 = vpop.f32.mrf.mxu1 }
0x2653   :  { %3496 = vpow2.f32 %v2756_v30 }
0x2654   :  { %v3252_v27 = vpop.f32.mrf.mxu1 }
0x265e   :  { %v3495_v12 = vpop.eup %3494 }
0x265f   :  { %1921 = vrot.lane.b32.xlu0 %v3495_v12, %s3796_s20 }
0x2660   :  { %v3497_v50 = vpop.eup %3496 }
0x2661   :  { %v1915_v17 = vadd.f32 1.0, %v3497_v50 }
0x2663   :  { %3498 = vrcp.f32 %v1915_v17  ;;  %v4498_v17 = vld [vmem:[#allocation16] ss:$0 sm:$0xff] }
0x2670   :  { %v3499_v4 = vpop.eup %3498 }
0x2671   :  { %v1919_v51 = vmul.f32 %v3499_v4, %v4360_v61  ;;  %v4462_v61 = vld [vmem:[#allocation14] sm:$0xff]  }
0x26d1   :  { %v1922_v5 = vpop.permute.xlu0 %1921 }
0x26d2   :  { %v1924_v6 = vmul.f32 %v3499_v4, %v1922_v5 }
0x26d4   :  { %1926 = vrot.lane.b32.xlu1 %v1924_v6, %s3812_s8 }
0x2746   :  { %v1927_v9 = vpop.permute.xlu1 %1926 }
0x2747   :  { %v4450_v18 = vadd.f32 %v1927_v9, %v1919_v51 }
0x2749   :  { %3500 = vtanh.f32 %v4450_v18 }
0x2756   :  { %v3501_v38 = vpop.eup %3500 }
0x2757   :  { %1932 = vrot.lane.b32.xlu1 %v3501_v38, %s3796_s20 }
0x27c9   :  { %v1933_v19 = vpop.permute.xlu1 %1932 }
0x27ca   :  { %v1935_v33 = vmul.f32 %v3499_v4, %v1933_v19 }
0x27cc   :  { %v1936_v39 = vpack.c.bf16 %v1935_v33, %v1935_v33 }
0x27ce   :  { %1938 = vrot.lane.b32.xlu0 %v1936_v39, %s3812_s8 }
0x2840   :  { %v1939_v49 = vpop.permute.xlu0 %1938 }
0x2841   :  { %3258 = vmatmul.mubr.msk.bf16.vlgmr.msra.gmra.mxu0 %vm290_vm4, %v1939_v49 }
0x2842   :  { %3262 = vmatpush3.bf16.msra.mxu0 %v4456_v43  ;;  %3265 = vmatprep.mubr.msk.bf16.mxu0 %vm3809_vm0, %v3808_v0 }
0x2843   :  { %3263 = vmatprep.subr.bf16.mxu0 %v3808_v0 }
0x2846   :  { %3264 = vmatpush3.bf16.msra.mxu0 %v4462_v61 }
0x2847   :  { %3269 = vmatprep.subr.bf16.mxu0 %v3808_v0 }
0x2901   :  { %v1977_v45 = vpop.f32.mrf.mxu0 }
0x2902   :  { %v1978_v46 = vadd.f32 %v1977_v45, %v1864_v44 }
0x2903   :  { %v3259_v7 = vpop.f32.mrf.mxu0 }
0x2904   :  { %3502 = vtanh.f32 %v1978_v46  ;;  %v2758_v48 = vmul.f32 -1.442695, %v1978_v46 }
0x2905   :  { %v1980_v15 = vpop.f32.mrf.mxu0 }
0x2906   :  { %3504 = vpow2.f32 %v2758_v48 }
0x2907   :  { %v3260_v59 = vpop.f32.mrf.mxu0 }
0x2911   :  { %v3503_v47 = vpop.eup %3502 }
0x2912   :  { %1992 = vrot.lane.b32.xlu1 %v3503_v47, %s3796_s20 }
0x2913   :  { %v3505_v52 = vpop.eup %3504 }
0x2914   :  { %v1986_v55 = vadd.f32 1.0, %v3505_v52 }
0x2916   :  { %3506 = vrcp.f32 %v1986_v55 }
0x2923   :  { %v3507_v57 = vpop.eup %3506 }
0x2924   :  { %v1990_v54 = vmul.f32 %v3507_v57, %v4379_v8  ;;  %v2056_v8 = vunpack.c.1.s8 %v4416_v14 }
0x2926   :  { %v2057_v12 = vcvt.s32.f32 %v2056_v8 }
0x2928   :  { %v2058_v30 = vmul.f32 -1e+08, %v2057_v12 }
0x2984   :  { %v1993_v56 = vpop.permute.xlu1 %1992 }
0x2985   :  { %v1995_v58 = vmul.f32 %v3507_v57, %v1993_v56 }
0x2987   :  { %1997 = vrot.lane.b32.xlu0 %v1995_v58, %s3812_s8 }
0x29f9   :  { %v1998_v35 = vpop.permute.xlu0 %1997 }
0x29fa   :  { %v4471_v63 = vadd.f32 %v1998_v35, %v1990_v54 }
0x29fc   :  { %3508 = vtanh.f32 %v4471_v63 }
0x2a09   :  { %v3509_v2 = vpop.eup %3508 }
0x2a0a   :  { %2003 = vrot.lane.b32.xlu1 %v3509_v2, %s3796_s20 }
0x2a7c   :  { %v2004_v37 = vpop.permute.xlu1 %2003 }
0x2a7d   :  { %v2006_v28 = vmul.f32 %v3507_v57, %v2004_v37 }
0x2a7f   :  { %v2007_v3 = vpack.c.bf16 %v2006_v28, %v2006_v28 }
0x2a81   :  { %2009 = vrot.lane.b32.xlu0 %v2007_v3, %s3812_s8 }
0x2af3   :  { %v2010_v27 = vpop.permute.xlu0 %2009 }
0x2af4   :  { %3266 = vmatmul.mubr.msk.bf16.vlgmr.msra.gmra.mxu0 %vm290_vm4, %v2010_v27 }
0x2af5   :  { %3270 = vmatpush3.bf16.msra.mxu0 %v4286_v62  ;;  %3273 = vmatprep.mubr.msk.bf16.mxu0 %vm3809_vm0, %v3808_v0 }
0x2af6   :  { %3271 = vmatprep.subr.bf16.mxu0 %v3808_v0 }
0x2af9   :  { %3272 = vmatpush3.bf16.msra.mxu0 %v4292_v40 }
0x2afa   :  { %3277 = vmatprep.subr.bf16.mxu0 %v3808_v0 }
0x2afc   :  { %3274 = vmatmul.mubr.msk.bf16.vlgmr.msra.gmra.mxu0 %vm290_vm4, %v1939_v49 }
0x2afd   :  { %3278 = vmatpush3.bf16.msra.mxu0 %v4392_v53  ;;  %3281 = vmatprep.mubr.msk.bf16.mxu0 %vm3809_vm0, %v3808_v0 }
0x2afe   :  { %3279 = vmatprep.subr.bf16.mxu0 %v3808_v0 }
0x2b01   :  { %3280 = vmatpush3.bf16.msra.mxu0 %v4398_v10 }
0x2b02   :  { %3305 = vmatprep.subr.bf16.mxu0 %v3808_v0 }
0x2b04   :  { %3282 = vmatmul.mubr.msk.bf16.vlgmr.msra.gmra.mxu0 %vm290_vm4, %v2010_v27 }
0x2b05   :  { %3306 = vmatpush3.bf16.msra.mxu0 %v4403_v34  ;;  %3309 = vmatprep.mubr.msk.bf16.mxu0 %vm3809_vm0, %v3808_v0 }
0x2b06   :  { %3307 = vmatprep.subr.bf16.mxu0 %v3808_v0 }
0x2b09   :  { %3308 = vmatpush3.bf16.msra.mxu0 %v4409_v36 }
0x2b0a   :  { %3313 = vmatprep.subr.bf16.mxu0 %v3808_v0 }
0x2bb4   :  { %v2048_v50 = vpop.f32.mrf.mxu0 }
0x2bb5   :  { %v2049_v4 = vadd.f32 %v4498_v17, %v2048_v50 }
0x2bb6   :  { %v3267_v5 = vpop.f32.mrf.mxu0 }
0x2bb7   :  { %2068 = vst [vmem:[#allocation18 + $0x28] sm:$0xff] %v2049_v4  ;;  %v2059_v6 = vadd.f32 %v2058_v30, %v2049_v4 }
0x2bb8   :  { %v2051_v51 = vpop.f32.mrf.mxu0 }
0x2bb9   :  { %2060 = vmax.xlane.f32.xlu1 %v2059_v6 }
0x2bba   :  { %v3268_v9 = vpop.f32.mrf.mxu0 }
0x2bbc   :  { %v2103_v38 = vpop.f32.mrf.mxu0 }
0x2bbe   :  { %v3275_v19 = vpop.f32.mrf.mxu0 }
0x2bc0   :  { %v2106_v33 = vpop.f32.mrf.mxu0 }
0x2bc2   :  { %v3276_v39 = vpop.f32.mrf.mxu0 }
0x2bc4   :  { %v4501_v49 = vpop.f32.mrf.mxu0 }
0x2bc6   :  { %v3283_v44 = vpop.f32.mrf.mxu0 }
0x2bc8   :  { %v2146_v45 = vpop.f32.mrf.mxu0 }
0x2bca   :  { %v3284_v46 = vpop.f32.mrf.mxu0 }
0x2c42   :  { %v2061_v7 = vpop.xlane.xlu1 %2060 }
0x2c43   :  { %vm2062_vm6 = vcmp.eq.f32.partialorder %v2059_v6, %v2061_v7 }
0x2c44   :  { %v2063_v15 = vsel %vm2062_vm6, %v4083_v60, 128.0 }
0x2c45   :  { %2064 = vmin.xlane.f32.xlu0 %v2063_v15 }
0x2cce   :  { %v4504_v59 = vpop.xlane.xlu0 %2064 }
0x2ccf   :  { %vm2066_vm7 = vcmp.eq.f32.partialorder %v4083_v60, %v4504_v59 }
0x2cd0   :  { %vm2764_vm8 = vmpackc.low %vm2066_vm7, %vm2066_vm7 }
0x2cd1   :  { %3302 = vmatmul.mubr.msk.bf16.vlgmr.msra.gmra.mxu1 %vm2764_vm8, %v3810_v16 }
0x2cd2   :  { %3338 = vmatpush3.bf16.msra.mxu1 %v4320_v20  ;;  %3353 = vmatprep.mubr.msk.bf16.mxu1 %vm3809_vm0, %v3808_v0  ;;  %v2104_v20 = vadd.f32 %v4354_v31, %v2103_v38 }
0x2cd3   :  { %3339 = vmatprep.subr.bf16.mxu1 %v3808_v0 }
0x2cd6   :  { %3340 = vmatpush3.bf16.msra.mxu1 %v4326_v21 }
0x2cd7   :  { %3341 = vmatprep.subr.bf16.mxu1 %v3808_v0 }
0x2cda   :  { %3342 = vmatpush3.bf16.msra.mxu1 %v4330_v13 }
0x2cdb   :  { %3343 = vmatprep.subr.bf16.mxu1 %v3808_v0 }
0x2cde   :  { %3344 = vmatpush3.bf16.msra.mxu1 %v4334_v22 }
0x2cdf   :  { %3345 = vmatprep.subr.bf16.mxu1 %v3808_v0 }
0x2ce2   :  { %3346 = vmatpush3.bf16.msra.mxu1 %v4338_v29 }
0x2ce3   :  { %3347 = vmatprep.subr.bf16.mxu1 %v3808_v0 }
0x2ce6   :  { %3348 = vmatpush3.bf16.msra.mxu1 %v4342_v23 }
0x2ce7   :  { %3349 = vmatprep.subr.bf16.mxu1 %v3808_v0 }
0x2cea   :  { %3350 = vmatpush3.bf16.msra.mxu1 %v4346_v25 }
0x2ceb   :  { %3351 = vmatprep.subr.bf16.mxu1 %v3808_v0 }
0x2cee   :  { %3352 = vmatpush3.bf16.msra.mxu1 %v4350_v26 }
0x2d91   :  { %v2186_v21 = vpop.f32.mrf.mxu1 }
0x2d92   :  { %v2187_v13 = vadd.f32 %v2186_v21, %v2104_v20 }
0x2d93   :  { %v3303_v22 = vpop.f32.mrf.mxu1 }
0x2d94   :  { %3510 = vtanh.f32 %v2187_v13  ;;  %v2766_v23 = vmul.f32 -1.442695, %v2187_v13 }
0x2d95   :  { %v2189_v47 = vpop.f32.mrf.mxu1 }
0x2d96   :  { %3512 = vpow2.f32 %v2766_v23 }
0x2d97   :  { %v3304_v29 = vpop.f32.mrf.mxu1 }
0x2da1   :  { %v3511_v48 = vpop.eup %3510 }
0x2da2   :  { %2201 = vrot.lane.b32.xlu0 %v3511_v48, %s3796_s20 }
0x2da3   :  { %v3513_v52 = vpop.eup %3512 }
0x2da4   :  { %v2195_v55 = vadd.f32 1.0, %v3513_v52 }
0x2da6   :  { %3514 = vrcp.f32 %v2195_v55 }
0x2db3   :  { %v3515_v25 = vpop.eup %3514 }
0x2db4   :  { %v2199_v26 = vmul.f32 %v3515_v25, %v4450_v18  ;;  %v2144_v18 = vadd.f32 %v4372_v24, %v4501_v49 }
0x2e14   :  { %v2202_v57 = vpop.permute.xlu0 %2201 }
0x2e15   :  { %v2204_v56 = vmul.f32 %v3515_v25, %v2202_v57 }
0x2e17   :  { %2206 = vrot.lane.b32.xlu1 %v2204_v56, %s3812_s8 }
0x2e89   :  { %v2207_v58 = vpop.permute.xlu1 %2206 }
0x2e8a   :  { %v4530_v54 = vadd.f32 %v2207_v58, %v2199_v26 }
0x2e8c   :  { %3516 = vtanh.f32 %v4530_v54 }
0x2e99   :  { %v3517_v35 = vpop.eup %3516 }
0x2e9a   :  { %2212 = vrot.lane.b32.xlu1 %v3517_v35, %s3796_s20 }
0x2f0c   :  { %v2213_v2 = vpop.permute.xlu1 %2212 }
0x2f0d   :  { %v2215_v37 = vmul.f32 %v3515_v25, %v2213_v2 }
0x2f0f   :  { %v2216_v28 = vpack.c.bf16 %v2215_v37, %v2215_v37 }
0x2f11   :  { %2218 = vrot.lane.b32.xlu0 %v2216_v28, %s3812_s8 }
0x2f83   :  { %v2219_v3 = vpop.permute.xlu0 %2218 }
0x2f84   :  { %3310 = vmatmul.mubr.msk.bf16.vlgmr.msra.gmra.mxu0 %vm290_vm4, %v2219_v3 }
0x2f85   :  { %3314 = vmatpush3.bf16.msra.mxu0 %v4456_v43  ;;  %3317 = vmatprep.mubr.msk.bf16.mxu0 %vm3809_vm0, %v3808_v0 }
0x2f86   :  { %3315 = vmatprep.subr.bf16.mxu0 %v3808_v0 }
0x2f89   :  { %3316 = vmatpush3.bf16.msra.mxu0 %v4462_v61 }
0x2f8a   :  { %3321 = vmatprep.subr.bf16.mxu0 %v3808_v0 }
0x3044   :  { %v2257_v27 = vpop.f32.mrf.mxu0 }
0x3045   :  { %v2258_v8 = vadd.f32 %v2257_v27, %v2144_v18 }
0x3046   :  { %v3311_v12 = vpop.f32.mrf.mxu0 }
0x3047   :  { %3518 = vtanh.f32 %v2258_v8  ;;  %v2768_v5 = vmul.f32 -1.442695, %v2258_v8 }
0x3048   :  { %v2260_v30 = vpop.f32.mrf.mxu0 }
0x3049   :  { %3520 = vpow2.f32 %v2768_v5 }
0x304a   :  { %v3312_v50 = vpop.f32.mrf.mxu0 }
0x3054   :  { %v3519_v4 = vpop.eup %3518 }
0x3055   :  { %2272 = vrot.lane.b32.xlu1 %v3519_v4, %s3796_s20 }
0x3056   :  { %v3521_v6 = vpop.eup %3520 }
0x3057   :  { %v2266_v51 = vadd.f32 1.0, %v3521_v6 }
0x3059   :  { %3522 = vrcp.f32 %v2266_v51 }
0x3066   :  { %v3523_v9 = vpop.eup %3522 }
0x3067   :  { %v2270_v33 = vmul.f32 %v3523_v9, %v4471_v63 }
0x30c7   :  { %v2273_v38 = vpop.permute.xlu1 %2272 }
0x30c8   :  { %v2275_v19 = vmul.f32 %v3523_v9, %v2273_v38 }
0x30ca   :  { %2277 = vrot.lane.b32.xlu0 %v2275_v19, %s3812_s8 }
0x313c   :  { %v2278_v39 = vpop.permute.xlu0 %2277 }
0x313d   :  { %v4547_v49 = vadd.f32 %v2278_v39, %v2270_v33 }
0x313f   :  { %3524 = vtanh.f32 %v4547_v49 }
0x314c   :  { %v3525_v44 = vpop.eup %3524 }
0x314d   :  { %2283 = vrot.lane.b32.xlu1 %v3525_v44, %s3796_s20 }
0x31bf   :  { %v2284_v45 = vpop.permute.xlu1 %2283 }
0x31c0   :  { %v2286_v46 = vmul.f32 %v3523_v9, %v2284_v45 }
0x31c2   :  { %v2287_v7 = vpack.c.bf16 %v2286_v46, %v2286_v46 }
0x31c4   :  { %2289 = vrot.lane.b32.xlu0 %v2287_v7, %s3812_s8 }
0x3236   :  { %v2290_v15 = vpop.permute.xlu0 %2289 }
0x3237   :  { %3318 = vmatmul.mubr.msk.bf16.vlgmr.msra.gmra.mxu0 %vm290_vm4, %v2290_v15 }
0x3238   :  { %3322 = vmatpush3.bf16.msra.mxu0 %v4286_v62  ;;  %3325 = vmatprep.mubr.msk.bf16.mxu0 %vm3809_vm0, %v3808_v0  ;;  %v2336_v62 = vunpack.c.2.s8 %v4416_v14 }
0x3239   :  { %3323 = vmatprep.subr.bf16.mxu0 %v3808_v0 }
0x323c   :  { %3324 = vmatpush3.bf16.msra.mxu0 %v4292_v40  ;;  %v2337_v40 = vcvt.s32.f32 %v2336_v62 }
0x323d   :  { %3329 = vmatprep.subr.bf16.mxu0 %v3808_v0 }
0x323f   :  { %3326 = vmatmul.mubr.msk.bf16.vlgmr.msra.gmra.mxu0 %vm290_vm4, %v2219_v3 }
0x3240   :  { %3330 = vmatpush3.bf16.msra.mxu0 %v4392_v53  ;;  %3333 = vmatprep.mubr.msk.bf16.mxu0 %vm3809_vm0, %v3808_v0  ;;  %v2338_v53 = vmul.f32 -1e+08, %v2337_v40 }
0x3241   :  { %3331 = vmatprep.subr.bf16.mxu0 %v3808_v0 }
0x3244   :  { %3332 = vmatpush3.bf16.msra.mxu0 %v4398_v10 }
0x3245   :  { %3357 = vmatprep.subr.bf16.mxu0 %v3808_v0 }
0x3247   :  { %3334 = vmatmul.mubr.msk.bf16.vlgmr.msra.gmra.mxu0 %vm290_vm4, %v2290_v15 }
0x3248   :  { %3358 = vmatpush3.bf16.msra.mxu0 %v4403_v34  ;;  %3361 = vmatprep.mubr.msk.bf16.mxu0 %vm3809_vm0, %v3808_v0 }
0x3249   :  { %3359 = vmatprep.subr.bf16.mxu0 %v3808_v0 }
0x324c   :  { %3360 = vmatpush3.bf16.msra.mxu0 %v4409_v36 }
0x324d   :  { %3365 = vmatprep.subr.bf16.mxu0 %v3808_v0 }
0x32f7   :  { %v2328_v10 = vpop.f32.mrf.mxu0 }
0x32f8   :  { %v2329_v63 = vadd.f32 %v4498_v17, %v2328_v10 }
0x32f9   :  { %v3319_v20 = vpop.f32.mrf.mxu0 }
0x32fa   :  { %2348 = vst [vmem:[#allocation18 + $0x30] sm:$0xff] %v2329_v63  ;;  %v2339_v21 = vadd.f32 %v2338_v53, %v2329_v63 }
0x32fb   :  { %v2331_v34 = vpop.f32.mrf.mxu0 }
0x32fc   :  { %2340 = vmax.xlane.f32.xlu1 %v2339_v21 }
0x32fd   :  { %v3320_v13 = vpop.f32.mrf.mxu0 }
0x32fe   :  { %v2616_v13 = vunpack.c.3.s8 %v4416_v14 }
0x32ff   :  { %v2383_v22 = vpop.f32.mrf.mxu0 }
0x3300   :  { %v2384_v26 = vadd.f32 %v4354_v31, %v2383_v22  ;;  %v2617_v22 = vcvt.s32.f32 %v2616_v13 }
0x3301   :  { %v3327_v47 = vpop.f32.mrf.mxu0 }
0x3302   :  { %v2618_v47 = vmul.f32 -1e+08, %v2617_v22 }
0x3303   :  { %v2386_v29 = vpop.f32.mrf.mxu0 }
0x3305   :  { %v3328_v48 = vpop.f32.mrf.mxu0 }
0x3307   :  { %v2423_v36 = vpop.f32.mrf.mxu0 }
0x3309   :  { %v3335_v23 = vpop.f32.mrf.mxu0 }
0x330b   :  { %v2426_v52 = vpop.f32.mrf.mxu0 }
0x330d   :  { %v3336_v55 = vpop.f32.mrf.mxu0 }
0x3385   :  { %v2341_v25 = vpop.xlane.xlu1 %2340 }
0x3386   :  { %vm2342_vm9 = vcmp.eq.f32.partialorder %v2339_v21, %v2341_v25 }
0x3387   :  { %v2343_v57 = vsel %vm2342_vm9, %v4083_v60, 128.0 }
0x3388   :  { %2344 = vmin.xlane.f32.xlu0 %v2343_v57 }
0x3411   :  { %v4576_v56 = vpop.xlane.xlu0 %2344 }
0x3412   :  { %vm2346_vm10 = vcmp.eq.f32.partialorder %v4083_v60, %v4576_v56 }
0x3413   :  { %vm2774_vm11 = vmpackc.low %vm2346_vm10, %vm2346_vm10 }
0x3414   :  { %3354 = vmatmul.mubr.msk.bf16.vlgmr.msra.gmra.mxu1 %vm2774_vm11, %v3810_v16 }
0x34d4   :  { %v2466_v58 = vpop.f32.mrf.mxu1 }
0x34d5   :  { %v2467_v35 = vadd.f32 %v2466_v58, %v2384_v26 }
0x34d6   :  { %v3355_v2 = vpop.f32.mrf.mxu1 }
0x34d7   :  { %3526 = vtanh.f32 %v2467_v35  ;;  %v2776_v18 = vmul.f32 -1.442695, %v2467_v35 }
0x34d8   :  { %v2469_v37 = vpop.f32.mrf.mxu1 }
0x34d9   :  { %3528 = vpow2.f32 %v2776_v18 }
0x34da   :  { %v3356_v28 = vpop.f32.mrf.mxu1 }
0x34e4   :  { %v3527_v3 = vpop.eup %3526 }
0x34e5   :  { %2481 = vrot.lane.b32.xlu0 %v3527_v3, %s3796_s20 }
0x34e6   :  { %v3529_v27 = vpop.eup %3528 }
0x34e7   :  { %v2475_v8 = vadd.f32 1.0, %v3529_v27 }
0x34e9   :  { %3530 = vrcp.f32 %v2475_v8 }
0x34f6   :  { %v3531_v12 = vpop.eup %3530 }
0x34f7   :  { %v2479_v16 = vmul.f32 %v3531_v12, %v4530_v54  ;;  %v2424_v54 = vadd.f32 %v4372_v24, %v2423_v36 }
0x3557   :  { %v2482_v30 = vpop.permute.xlu0 %2481 }
0x3558   :  { %v2484_v50 = vmul.f32 %v3531_v12, %v2482_v30 }
0x355a   :  { %2486 = vrot.lane.b32.xlu1 %v2484_v50, %s3812_s8 }
0x35cc   :  { %v2487_v31 = vpop.permute.xlu1 %2486 }
0x35cd   :  { %v2489_v4 = vadd.f32 %v2487_v31, %v2479_v16 }
0x35cf   :  { %3532 = vtanh.f32 %v2489_v4 }
0x35dc   :  { %v3533_v5 = vpop.eup %3532 }
0x35dd   :  { %2492 = vrot.lane.b32.xlu1 %v3533_v5, %s3796_s20 }
0x364f   :  { %v2493_v6 = vpop.permute.xlu1 %2492 }
0x3650   :  { %v2495_v51 = vmul.f32 %v3531_v12, %v2493_v6 }
0x3652   :  { %v2496_v9 = vpack.c.bf16 %v2495_v51, %v2495_v51 }
0x3654   :  { %2498 = vrot.lane.b32.xlu0 %v2496_v9, %s3812_s8 }
0x36c6   :  { %v2499_v38 = vpop.permute.xlu0 %2498 }
0x36c7   :  { %3362 = vmatmul.mubr.msk.bf16.vlgmr.msra.gmra.mxu0 %vm290_vm4, %v2499_v38 }
0x36c8   :  { %3366 = vmatpush3.bf16.msra.mxu0 %v4456_v43  ;;  %3369 = vmatprep.mubr.msk.bf16.mxu0 %vm3809_vm0, %v3808_v0 }
0x36c9   :  { %3367 = vmatprep.subr.bf16.mxu0 %v3808_v0 }
0x36cc   :  { %3368 = vmatpush3.bf16.msra.mxu0 %v4462_v61 }
0x3787   :  { %v2537_v19 = vpop.f32.mrf.mxu0 }
0x3788   :  { %v2538_v33 = vadd.f32 %v2537_v19, %v2424_v54 }
0x3789   :  { %v3363_v39 = vpop.f32.mrf.mxu0 }
0x378a   :  { %3534 = vtanh.f32 %v2538_v33  ;;  %v2778_v7 = vmul.f32 -1.442695, %v2538_v33 }
0x378b   :  { %v2540_v44 = vpop.f32.mrf.mxu0 }
0x378c   :  { %3536 = vpow2.f32 %v2778_v7 }
0x378d   :  { %v3364_v45 = vpop.f32.mrf.mxu0 }
0x3797   :  { %v3535_v46 = vpop.eup %3534 }
0x3798   :  { %2552 = vrot.lane.b32.xlu1 %v3535_v46, %s3796_s20 }
0x3799   :  { %v3537_v43 = vpop.eup %3536 }
0x379a   :  { %v2546_v15 = vadd.f32 1.0, %v3537_v43 }
0x379c   :  { %3538 = vrcp.f32 %v2546_v15 }
0x37a9   :  { %v3539_v62 = vpop.eup %3538 }
0x37aa   :  { %v2550_v24 = vmul.f32 %v3539_v62, %v4547_v49 }
0x380a   :  { %v2553_v0 = vpop.permute.xlu1 %2552 }
0x380b   :  { %v2555_v40 = vmul.f32 %v3539_v62, %v2553_v0 }
0x380d   :  { %2557 = vrot.lane.b32.xlu0 %v2555_v40, %s3812_s8 }
0x387f   :  { %v2558_v61 = vpop.permute.xlu0 %2557 }
0x3880   :  { %v2560_v53 = vadd.f32 %v2558_v61, %v2550_v24 }
0x3882   :  { %3540 = vtanh.f32 %v2560_v53 }
0x388f   :  { %v3541_v10 = vpop.eup %3540 }
0x3890   :  { %2563 = vrot.lane.b32.xlu1 %v3541_v10, %s3796_s20  ;;  %s2660_s20 = sshll.u32 %s3813_s9, 4  ;;  %s2661_s20 = int_to_ptr.vmem [resolvable:$true] %s2660_s20 }
0x3891   :  { %s3741_s27 = scalar_lea.vmem %s2661_s20, 1024  ;;  %p3746_p4 = scmp.lt.s32.totalorder %s2661_s20, %s2661_s20 }
0x3892   :  { %p3742_p3 = scmp.ne.s32.totalorder %s2661_s20, %s3741_s27  ;;  %p3747_p5 = scmp.lt.s32.totalorder %s3741_s27, %s3741_s27 }
0x3894   :  { %p3748_p6 = por %p3747_p5, %p3746_p4 }
0x3896   :  { %p3749_p7 = pnand %p3748_p6, %p3742_p3 }
0x3902   :  { %v2564_v63 = vpop.permute.xlu1 %2563 }
0x3903   :  { %v2566_v20 = vmul.f32 %v3539_v62, %v2564_v63 }
0x3905   :  { %v2567_v21 = vpack.c.bf16 %v2566_v20, %v2566_v20 }
0x3907   :  { %2569 = vrot.lane.b32.xlu0 %v2567_v21, %s3812_s8 }
0x3979   :  { %v2570_v34 = vpop.permute.xlu0 %2569 }
0x397a   :  { %3370 = vmatmul.mubr.msk.bf16.vlgmr.msra.gmra.mxu0 %vm290_vm4, %v2570_v34 }
0x3a3a   :  { %v2608_v29 = vpop.f32.mrf.mxu0 }
0x3a3b   :  { %v2609_v49 = vadd.f32 %v4498_v17, %v2608_v29 }
0x3a3c   :  { %v3371_v48 = vpop.f32.mrf.mxu0 }
0x3a3d   :  { %2627 = vst [vmem:[#allocation18 + $0x38] sm:$0xff] %v2609_v49  ;;  %v2619_v36 = vadd.f32 %v2618_v47, %v2609_v49 }
0x3a3e   :  { %v2611_v23 = vpop.f32.mrf.mxu0 }
0x3a3f   :  { %2620 = vmax.xlane.f32.xlu1 %v2619_v36 }
0x3a40   :  { %v3372_v52 = vpop.f32.mrf.mxu0 }
0x3ac8   :  { %v2621_v55 = vpop.xlane.xlu1 %2620 }
0x3ac9   :  { %vm2622_vm0 = vcmp.eq.f32.partialorder %v2619_v36, %v2621_v55 }
0x3aca   :  { %v2623_v25 = vsel %vm2622_vm0, %v4083_v60, 128.0 }
0x3acb   :  { %2624 = vmin.xlane.f32.xlu0 %v2623_v25 }
0x3acc   :  { %3752 = shalt.err (!%p3749_p7)
}
0x3acd   :  { %s3814_s28 = smov 128   ;;  %s3815_s7 = smov 8   ;;  %vm2628_vm4 = vcmask 7168   ;;  %vm2630_vm12 = vcmask 15360   ;;  %vm2632_vm13 = vcmask 23552   ;;  %vm2634_vm14 = vcmask 31744  }
0x3ace   :  { %2666 = dma.vmem_to_hbm [thread:$0]  %s2661_s20, 1024, %s4627_s11, [#allocation19], %s3814_s28, %s3814_s28, %s3815_s7   ;;  %v2629_v60 = vsel %vm2628_vm4, %v4086_v1, %v4161_v42  ;;  %vm2636_vm15 = vcmask 39936   ;;  %vm2638_vm1 = vcmask 48128   ;;  %vm2640_vm2 = vcmask 56320  }
0x3acf   :  { %v2631_v14 = vsel %vm2630_vm12, %v2629_v60, %v4236_v32  ;;  %s3816_s11 = smov [#allocation17]   ;;  %vm2643_vm3 = vcmask 64512  }
0x3ad0   :  { %v2633_v17 = vsel %vm2632_vm13, %v2631_v14, %v4315_v11  ;;  %s2651_s1 = sshll.u32 %s3816_s11, 4  ;;  %s2652_s1 = int_to_ptr.vmem [resolvable:$true] %s2651_s1 }
0x3ad1   :  { %v2635_v57 = vsel %vm2634_vm14, %v2633_v17, %v4423_v41  ;;  %s3761_s0 = scalar_lea.vmem %s2652_s1, 128  ;;  %p3766_p9 = scmp.lt.s32.totalorder %s2652_s1, %s2652_s1 }
0x3ad2   :  { %v2637_v26 = vsel %vm2636_vm15, %v2635_v57, %v4504_v59  ;;  %p3762_p8 = scmp.ne.s32.totalorder %s2652_s1, %s3761_s0  ;;  %p3767_p10 = scmp.lt.s32.totalorder %s3761_s0, %s3761_s0 }
0x3ad3   :  { %v2639_v58 = vsel %vm2638_vm1, %v2637_v26, %v4576_v56 }
0x3ad4   :  { %p3768_p11 = por %p3767_p10, %p3766_p9 }
0x3ad6   :  { %p3769_p12 = pnand %p3768_p11, %p3762_p8 }
0x3b54   :  { %v2625_v35 = vpop.xlane.xlu0 %2624 }
0x3b55   :  { %v2641_v2 = vsel %vm2640_vm2, %v2639_v58, %v2625_v35 }
0x3b56   :  { %v3373_v37 = vtrunc.f32 %v2641_v2 }
0x3b58   :  { %v3374_v1 = vcvt.f32.s32 %v3373_v37 }
0x3b5a   :  { %2644 = vst.msk [vmem:[#allocation17] sm:$0xff] %vm2643_vm3, %v3374_v1 }
0x3b5b   :  { %3772 = shalt.err (!%p3769_p12)
}
0x3b5c   :  { %2654 = dma.vmem_to_hbm [thread:$0]  %s2652_s1, 128, %s4626_s10, [#allocation4]  }
0x3b5d   :  { %3791 = dma.done.wait [#allocation4], 128  }
0x3b5e   :  { %3792 = vsyncadd [#allocation4], 4294967168 }
0x3b5f   :  { %3793 = dma.done.wait [#allocation19], 1024  }
0x3b60   :  { %3794 = vsyncadd [#allocation19], 4294966272 }
0x3b61   :  { %2673 = vsyncpa [#allocation3], 1 }
0x3b62   :  { %2674 = vsyncpa [#allocation6], 1 }
0x3b63   :  { %2675 = vsyncpa [#allocation9], 1 }
0x3b64   :  { %2676 = vsyncpa [#allocation12], 1 }
0x3b65   :  { %2677 = vsyncpa [#allocation15], 1 }
0x3b66   :  { %2678 = vsyncpa [#allocation4], 1 }
0x3b67   :  { %2679 = vsyncpa [#allocation19], 1 }

</bundles_post_ra>
